<compile_context>
chip_gen: v6e
topology: v6e:2x2x1
jax: 0.10.0
libtpu: 0.0.40
codegen_flags: <defaults>
</compile_context>

<pallas_src>
import functools
import math

import jax
import jax.numpy as jnp
from jax import lax
from jax.experimental import pallas as pl
from jax.experimental.pallas import tpu as pltpu

MEAN = jnp.array([0.485, 0.456, 0.406], jnp.float32)
STD = jnp.array([0.229, 0.224, 0.225], jnp.float32)

# VGG16 features[:23] conv structure (Cin, Cout), grouped as in the module.
_VGG_CFG = (
    ((3, 64), (64, 64)),                              # features[:4]
    ((64, 128), (128, 128)),                          # features[4:9]   (pool first)
    ((128, 256), (256, 256), (256, 256)),             # features[9:16]  (pool first)
    ((256, 512), (512, 512), (512, 512)),             # features[16:23] (pool first)
)

# 48 MiB: above the 16/32 MiB scoped defaults, under v7x's 64 MiB physical VMEM.
_VMEM_LIMIT = 48 * 1024 * 1024


def _round_up(x, m):
    return (x + m - 1) // m * m


def _pick_div(n, cap):
    """Largest divisor of n that is <= cap (leading-dim tile; no (8,128) rule)."""
    for t in range(min(n, cap), 0, -1):
        if n % t == 0:
            return t
    return 1


def _pick_tile(m, cap=1024):
    """Largest tile t<=cap dividing m with t%8==0 (or t==m, full-dim exemption)."""
    for t in range(min(m, cap), 0, -1):
        if m % t == 0 and (t % 8 == 0 or t == m):
            return t
    return m


# ----------------------------------------------------------------------------
# 3x3 conv (pad=1, stride=1) + ReLU, TH output rows per grid step.
#
# The input is zero-padded to width Wpad (multiple of 8) and height H+TH, so
# that two blocked specs (tile r and tile r+1) provide the TH+2 halo rows and
# all in-kernel reshapes are layout-trivial.  Each of the 9 taps is an MXU
# matmul (TH*Wpad, Cin) @ (Cin, Cout); garbage columns beyond W are discarded
# when slicing the output tile.
# ----------------------------------------------------------------------------
def _conv3x3_relu_kernel(xa_ref, xb_ref, w_ref, b_ref, o_ref, *, TH, W, Wpad):
    Cin = xa_ref.shape[-1]
    Cout = o_ref.shape[-1]
    M = TH * Wpad

    a = xa_ref[0].reshape(M, Cin)                     # trivial (Wpad % 8 == 0)
    nxt = xb_ref[0].reshape(M, Cin)
    tail = jnp.zeros((Wpad, Cin), xa_ref.dtype)       # slack for edge-tap reads
    slab0 = jnp.concatenate([a, nxt, tail], axis=0)   # (2*M + Wpad, Cin)
    slabs = (slab0, slab0[1:, :], slab0[2:, :])       # dx-shifted views

    acc = jnp.zeros((M, Cout), jnp.float32)
    for dy in range(3):
        base = dy * Wpad                              # sublane-aligned offset
        for dx in range(3):
            acc = acc + jnp.dot(slabs[dx][base:base + M, :], w_ref[dy, dx],
                                preferred_element_type=jnp.float32)

    out = jnp.maximum(acc + b_ref[...], 0.0)          # bias broadcast + ReLU
    out = out.reshape(TH, Wpad, Cout)[:, :W, :]       # drop garbage columns
    o_ref[0] = out.astype(o_ref.dtype)


@functools.lru_cache(maxsize=None)
def _build_conv(N, H, W, Cin, Cout, TH, Wpad):
    kernel = functools.partial(_conv3x3_relu_kernel, TH=TH, W=W, Wpad=Wpad)
    return pl.pallas_call(
        kernel,
        out_shape=jax.ShapeDtypeStruct((N, H, W, Cout), jnp.float32),
        grid=(N, H // TH),
        in_specs=[
            pl.BlockSpec((1, TH, Wpad, Cin), lambda n, r: (n, r, 0, 0)),
            pl.BlockSpec((1, TH, Wpad, Cin), lambda n, r: (n, r + 1, 0, 0)),
            pl.BlockSpec((3, 3, Cin, Cout), lambda n, r: (0, 0, 0, 0)),
            pl.BlockSpec((1, Cout), lambda n, r: (0, 0)),
        ],
        out_specs=pl.BlockSpec((1, TH, W, Cout), lambda n, r: (n, r, 0, 0)),
        compiler_params=pltpu.CompilerParams(
            dimension_semantics=("parallel", "parallel"),
            vmem_limit_bytes=_VMEM_LIMIT),
    )


def conv3x3_relu(x, w, b):
    N, H, W, Cin = x.shape
    Cout = w.shape[-1]
    # Smaller row tile for 512-channel layers keeps the working set (with the
    # 9.4 MB weight block) inside the scoped VMEM budget on every generation.
    th_cap = 16 if max(Cin, Cout) <= 256 else 8
    TH = _pick_div(H, th_cap)
    assert TH >= 2, "conv row tile must cover at least 2 rows"
    Wpad = _round_up(W + 2, 8)
    # TODO(synk): the zero halo is still materialized via jnp.pad per layer;
    #             generating it in-kernel would save one HBM pass per conv.
    xp = jnp.pad(x, ((0, 0), (1, TH - 1), (1, Wpad - W - 1), (0, 0)))
    return _build_conv(N, H, W, Cin, Cout, TH, Wpad)(xp, xp, w, b)


# ----------------------------------------------------------------------------
# 2x2 max pool, stride 2, TR output rows per grid step.  W is pre-split as
# (Wo, 2) in JAX (metadata-only reshape).
# ----------------------------------------------------------------------------
def _maxpool_kernel(x_ref, o_ref, *, TR):
    v = x_ref[0]                                      # (2*TR, Wo, 2, C)
    v = jnp.max(v, axis=2)                            # col-pair max -> (2*TR, Wo, C)
    v = v.reshape(TR, 2, v.shape[1], v.shape[2])      # leading split (free)
    o_ref[0] = jnp.max(v, axis=1)                     # row-pair max -> (TR, Wo, C)


@functools.lru_cache(maxsize=None)
def _build_pool(N, H, W, C, TR):
    Ho, Wo = H // 2, W // 2
    kernel = functools.partial(_maxpool_kernel, TR=TR)
    return pl.pallas_call(
        kernel,
        out_shape=jax.ShapeDtypeStruct((N, Ho, Wo, C), jnp.float32),
        grid=(N, Ho // TR),
        in_specs=[pl.BlockSpec((1, 2 * TR, Wo, 2, C),
                               lambda n, r: (n, r, 0, 0, 0))],
        out_specs=pl.BlockSpec((1, TR, Wo, C), lambda n, r: (n, r, 0, 0)),
        compiler_params=pltpu.CompilerParams(
            dimension_semantics=("parallel", "parallel"),
            vmem_limit_bytes=_VMEM_LIMIT),
    )


def maxpool2x2(x):
    N, H, W, C = x.shape
    Ho, Wo = H // 2, W // 2
    TR = _pick_div(Ho, 8)
    xr = x.reshape(N, H, Wo, 2, C)                    # contiguous -> free reshape
    return _build_pool(N, H, W, C, TR)(xr)


# ----------------------------------------------------------------------------
# L1 loss: sum(|x - y|) accumulated across the grid into a (1,1) output.
# Lane-dense: blocks are (TM, 512) where possible.
# ----------------------------------------------------------------------------
def _l1_sum_kernel(x_ref, y_ref, o_ref):
    @pl.when(pl.program_id(0) == 0)
    def _():
        o_ref[...] = jnp.zeros_like(o_ref)
    o_ref[...] += jnp.sum(jnp.abs(x_ref[...] - y_ref[...]))


@functools.lru_cache(maxsize=None)
def _build_l1(M, K, TM):
    return pl.pallas_call(
        _l1_sum_kernel,
        out_shape=jax.ShapeDtypeStruct((1, 1), jnp.float32),
        grid=(M // TM,),
        in_specs=[pl.BlockSpec((TM, K), lambda i: (i, 0)),
                  pl.BlockSpec((TM, K), lambda i: (i, 0))],
        out_specs=pl.BlockSpec((1, 1), lambda i: (0, 0)),
        compiler_params=pltpu.CompilerParams(dimension_semantics=("arbitrary",)),
    )


def l1_mean(x, y):
    total = x.size
    K = 512 if total % 512 == 0 else x.shape[-1]      # lane-dense reduction
    x2 = x.reshape(-1, K)
    y2 = y.reshape(-1, K)
    M = x2.shape[0]
    TM = _pick_tile(M, cap=1024)
    s = _build_l1(M, K, TM)(x2, y2)
    return s[0, 0] / jnp.float32(total)


# ----------------------------------------------------------------------------
# Gram matrix: act (N, P, C) -> (N, C, C), accumulated over P tiles on the MXU.
# ----------------------------------------------------------------------------
def _gram_kernel(a_ref, o_ref):
    @pl.when(pl.program_id(1) == 0)
    def _():
        o_ref[...] = jnp.zeros_like(o_ref)
    blk = a_ref[0]                                    # (TP, C)
    o_ref[0] += lax.dot_general(blk, blk, (((0,), (0,)), ((), ())),
                                preferred_element_type=jnp.float32)


@functools.lru_cache(maxsize=None)
def _build_gram(N, P, C, TP):
    return pl.pallas_call(
        _gram_kernel,
        out_shape=jax.ShapeDtypeStruct((N, C, C), jnp.float32),
        grid=(N, P // TP),
        in_specs=[pl.BlockSpec((1, TP, C), lambda n, r: (n, r, 0))],
        out_specs=pl.BlockSpec((1, C, C), lambda n, r: (n, 0, 0)),
        compiler_params=pltpu.CompilerParams(
            dimension_semantics=("parallel", "arbitrary"),
            vmem_limit_bytes=_VMEM_LIMIT),
    )


def gram(x):
    N, H, W, C = x.shape
    P = H * W
    a = x.reshape(N, P, C)
    TP = _pick_tile(P, cap=2048)
    return _build_gram(N, P, C, TP)(a)


# ----------------------------------------------------------------------------
# bilinear resize to (224, 224), align_corners=False (matches F.interpolate).
# TODO(synk): gather-based bilinear resize kept in plain JAX (no clean Pallas
#             gather); not the hot path.
# ----------------------------------------------------------------------------
def _bilinear_resize_nhwc(x, out_h, out_w):
    N, H, W, C = x.shape

    def coords(out_size, in_size):
        i = jnp.arange(out_size, dtype=jnp.float32)
        src = (i + 0.5) * (in_size / out_size) - 0.5
        src = jnp.clip(src, 0.0, in_size - 1)
        lo = jnp.floor(src).astype(jnp.int32)
        hi = jnp.minimum(lo + 1, in_size - 1)
        w = src - lo.astype(jnp.float32)
        return lo, hi, w

    ylo, yhi, wy = coords(out_h, H)
    xlo, xhi, wx = coords(out_w, W)
    top = (x[:, ylo, :, :] * (1.0 - wy)[None, :, None, None]
           + x[:, yhi, :, :] * wy[None, :, None, None])
    out = (top[:, :, xlo, :] * (1.0 - wx)[None, None, :, None]
           + top[:, :, xhi, :] * wx[None, None, :, None])
    return out


# ----------------------------------------------------------------------------
# parameters + forward
# ----------------------------------------------------------------------------
def init_vgg_params(key):
    params = []
    for block in _VGG_CFG:
        bp = []
        for (cin, cout) in block:
            key, kw, kb = jax.random.split(key, 3)
            w = jax.random.normal(kw, (3, 3, cin, cout), jnp.float32) * math.sqrt(2.0 / (9 * cin))
            b = jax.random.normal(kb, (1, cout), jnp.float32) * 0.01
            bp.append((w, b))
        params.append(tuple(bp))
    return tuple(params)


def vgg_perceptual_loss(inp, tgt, params, *, resize=True,
                        feature_layers=(0, 1, 2, 3), style_layers=()):
    # layout: inputs NCHW (PyTorch); Pallas kernels operate on NHWC.
    if inp.shape[1] != 3:
        inp = jnp.tile(inp, (1, 3, 1, 1))
        tgt = jnp.tile(tgt, (1, 3, 1, 1))
    x = jnp.transpose(inp, (0, 2, 3, 1)).astype(jnp.float32)
    y = jnp.transpose(tgt, (0, 2, 3, 1)).astype(jnp.float32)
    # channel normalization is a tiny 3-lane affine -> plain-JAX glue (the old
    # Pallas kernel only used 3/128 lanes and added a full extra memory pass).
    x = (x - MEAN) / STD
    y = (y - MEAN) / STD
    if resize:
        x = _bilinear_resize_nhwc(x, 224, 224)
        y = _bilinear_resize_nhwc(y, 224, 224)
    loss = jnp.float32(0.0)
    for i, block in enumerate(params):
        if i > 0:                               # blocks 1..3 start with maxpool
            x = maxpool2x2(x)
            y = maxpool2x2(y)
        for (w, b) in block:                    # conv3x3 + ReLU
            x = conv3x3_relu(x, w, b)
            y = conv3x3_relu(y, w, b)
        if i in feature_layers:
            loss = loss + l1_mean(x, y)
        if i in style_layers:
            gx = gram(x)
            gy = gram(y)
            loss = loss + l1_mean(gx, gy)
    return loss


# ----------------------------------------------------------------------------
# pure-JAX reference (for correctness check)
# ----------------------------------------------------------------------------
def _reference_loss(inp, tgt, params, resize, feature_layers, style_layers):
    if inp.shape[1] != 3:
        inp = jnp.tile(inp, (1, 3, 1, 1))
        tgt = jnp.tile(tgt, (1, 3, 1, 1))
    x = jnp.transpose(inp, (0, 2, 3, 1)).astype(jnp.float32)
    y = jnp.transpose(tgt, (0, 2, 3, 1)).astype(jnp.float32)
    x = (x - MEAN) / STD
    y = (y - MEAN) / STD
    if resize:
        x = _bilinear_resize_nhwc(x, 224, 224)
        y = _bilinear_resize_nhwc(y, 224, 224)
    dn = ('NHWC', 'HWIO', 'NHWC')
    loss = jnp.float32(0.0)
    for i, block in enumerate(params):
        if i > 0:
            x = lax.reduce_window(x, -jnp.inf, lax.max, (1, 2, 2, 1), (1, 2, 2, 1), 'VALID')
            y = lax.reduce_window(y, -jnp.inf, lax.max, (1, 2, 2, 1), (1, 2, 2, 1), 'VALID')
        for (w, b) in block:
            x = jnp.maximum(lax.conv_general_dilated(x, w, (1, 1), 'SAME',
                                                     dimension_numbers=dn) + b.reshape(1, 1, 1, -1), 0.0)
            y = jnp.maximum(lax.conv_general_dilated(y, w, (1, 1), 'SAME',
                                                     dimension_numbers=dn) + b.reshape(1, 1, 1, -1), 0.0)
        if i in feature_layers:
            loss = loss + jnp.mean(jnp.abs(x - y))
        if i in style_layers:
            ax = x.reshape(x.shape[0], -1, x.shape[-1])
            ay = y.reshape(y.shape[0], -1, y.shape[-1])
            gx = jnp.einsum('npi,npj->nij', ax, ax)
            gy = jnp.einsum('npi,npj->nij', ay, ay)
            loss = loss + jnp.mean(jnp.abs(gx - gy))
    return loss


if __name__ == "__main__":
    key = jax.random.PRNGKey(0)
    kx, ky, kw = jax.random.split(key, 3)
    N, C, H, W = 2, 1, 16, 16                 # 1 channel exercises the repeat path
    x = jax.random.normal(kx, (N, C, H, W), jnp.float32)
    y = jax.random.normal(ky, (N, C, H, W), jnp.float32)
    params = init_vgg_params(kw)

    # resize=False keeps the demo at SMALL shapes; the resize=True path
    # (bilinear to 224x224, align_corners=False) is implemented above.
    loss = vgg_perceptual_loss(x, y, params, resize=False)
    loss = jax.block_until_ready(loss)
    ref = _reference_loss(x, y, params, False, (0, 1, 2, 3), ())
    rel = abs(float(loss) - float(ref)) / max(abs(float(ref)), 1e-6)
    assert jnp.isfinite(loss), loss
    assert rel < 1e-3, (float(loss), float(ref))

    # also exercise the style (Gram) branch once
    loss2 = vgg_perceptual_loss(x, y, params, resize=False,
                                feature_layers=(0, 1, 2, 3), style_layers=(0, 1, 2, 3))
    loss2 = jax.block_until_ready(loss2)
    ref2 = _reference_loss(x, y, params, False, (0, 1, 2, 3), (0, 1, 2, 3))
    rel2 = abs(float(loss2) - float(ref2)) / max(abs(float(ref2)), 1e-6)
    assert rel2 < 1e-3, (float(loss2), float(ref2))

    print("KERNEL_OK")
</pallas_src>

<mosaic_0001>
module attributes {stable_mosaic.version = 11 : i64} {
  func.func @_conv3x3_relu_kernel(%arg0: i32, %arg1: i32, %arg2: memref<1x16x24x3xf32, #tpu.memory_space<vmem>>, %arg3: memref<1x16x24x3xf32, #tpu.memory_space<vmem>>, %arg4: memref<3x3x3x64xf32, #tpu.memory_space<vmem>>, %arg5: memref<1x64xf32, #tpu.memory_space<vmem>>, %arg6: memref<1x16x16x64xf32, #tpu.memory_space<vmem>>) attributes {dimension_semantics = [#tpu.dimension_semantics<parallel>, #tpu.dimension_semantics<parallel>], iteration_bounds = array<i64: 2, 1>, scalar_prefetch = 0 : i64, scratch_operands = 0 : i64, tpu.core_type = #tpu.core_type<tc>, window_params = [{transform_indices = @transform_0, window_bounds = array<i64: 1, 16, 24, 3>}, {transform_indices = @transform_1, window_bounds = array<i64: 1, 16, 24, 3>}, {pipeline_mode = #tpu.pipeline_mode<synchronous>, transform_indices = @transform_2, window_bounds = array<i64: 3, 3, 3, 64>}, {pipeline_mode = #tpu.pipeline_mode<synchronous>, transform_indices = @transform_3, window_bounds = array<i64: 1, 64>}, {transform_indices = @transform_4, window_bounds = array<i64: 1, 16, 16, 64>}]} {
    %c0 = arith.constant 0 : index
    %c0_0 = arith.constant 0 : index
    %c0_1 = arith.constant 0 : index
    %c0_2 = arith.constant 0 : index
    %0 = vector.load %arg2[%c0, %c0_0, %c0_1, %c0_2] : memref<1x16x24x3xf32, #tpu.memory_space<vmem>>, vector<1x16x24x3xf32>
    %1 = vector.shape_cast %0 : vector<1x16x24x3xf32> to vector<16x24x3xf32>
    %2 = vector.shape_cast %1 : vector<16x24x3xf32> to vector<384x3xf32>
    %c0_3 = arith.constant 0 : index
    %c0_4 = arith.constant 0 : index
    %c0_5 = arith.constant 0 : index
    %c0_6 = arith.constant 0 : index
    %3 = vector.load %arg3[%c0_3, %c0_4, %c0_5, %c0_6] : memref<1x16x24x3xf32, #tpu.memory_space<vmem>>, vector<1x16x24x3xf32>
    %4 = vector.shape_cast %3 : vector<1x16x24x3xf32> to vector<16x24x3xf32>
    %5 = vector.shape_cast %4 : vector<16x24x3xf32> to vector<384x3xf32>
    %cst = arith.constant 0.000000e+00 : f32
    %6 = vector.broadcast %cst : f32 to vector<24x3xf32>
    %7 = tpu.concatenate %2, %5, %6 in 0 : vector<384x3xf32>, vector<384x3xf32>, vector<24x3xf32> -> vector<792x3xf32>
    %8 = vector.extract_strided_slice %7 {offsets = [1, 0], sizes = [791, 3], strides = [1, 1]} : vector<792x3xf32> to vector<791x3xf32>
    %9 = vector.extract_strided_slice %7 {offsets = [2, 0], sizes = [790, 3], strides = [1, 1]} : vector<792x3xf32> to vector<790x3xf32>
    %cst_7 = arith.constant 0.000000e+00 : f32
    %10 = vector.broadcast %cst_7 : f32 to vector<384x64xf32>
    %11 = vector.extract_strided_slice %7 {offsets = [0, 0], sizes = [384, 3], strides = [1, 1]} : vector<792x3xf32> to vector<384x3xf32>
    %c0_8 = arith.constant 0 : index
    %c0_9 = arith.constant 0 : index
    %c0_10 = arith.constant 0 : index
    %c0_11 = arith.constant 0 : index
    %12 = vector.load %arg4[%c0_8, %c0_9, %c0_10, %c0_11] : memref<3x3x3x64xf32, #tpu.memory_space<vmem>>, vector<1x1x3x64xf32>
    %13 = vector.shape_cast %12 : vector<1x1x3x64xf32> to vector<3x64xf32>
    %cst_12 = arith.constant dense<0.000000e+00> : vector<384x64xf32>
    %14 = tpu.matmul %11, %13, %cst_12 {dimension_numbers = #tpu.dot_dimension_numbers<[1], [0], [0], [1], [0, 0, 1, 1], [], []>} : vector<384x3xf32>, vector<3x64xf32>, vector<384x64xf32> -> vector<384x64xf32>
    %15 = arith.addf %10, %14 : vector<384x64xf32>
    %16 = vector.extract_strided_slice %8 {offsets = [0, 0], sizes = [384, 3], strides = [1, 1]} : vector<791x3xf32> to vector<384x3xf32>
    %c0_13 = arith.constant 0 : index
    %c1 = arith.constant 1 : index
    %c0_14 = arith.constant 0 : index
    %c0_15 = arith.constant 0 : index
    %17 = vector.load %arg4[%c0_13, %c1, %c0_14, %c0_15] : memref<3x3x3x64xf32, #tpu.memory_space<vmem>>, vector<1x1x3x64xf32>
    %18 = vector.shape_cast %17 : vector<1x1x3x64xf32> to vector<3x64xf32>
    %cst_16 = arith.constant dense<0.000000e+00> : vector<384x64xf32>
    %19 = tpu.matmul %16, %18, %cst_16 {dimension_numbers = #tpu.dot_dimension_numbers<[1], [0], [0], [1], [0, 0, 1, 1], [], []>} : vector<384x3xf32>, vector<3x64xf32>, vector<384x64xf32> -> vector<384x64xf32>
    %20 = arith.addf %15, %19 : vector<384x64xf32>
    %21 = vector.extract_strided_slice %9 {offsets = [0, 0], sizes = [384, 3], strides = [1, 1]} : vector<790x3xf32> to vector<384x3xf32>
    %c0_17 = arith.constant 0 : index
    %c2 = arith.constant 2 : index
    %c0_18 = arith.constant 0 : index
    %c0_19 = arith.constant 0 : index
    %22 = vector.load %arg4[%c0_17, %c2, %c0_18, %c0_19] : memref<3x3x3x64xf32, #tpu.memory_space<vmem>>, vector<1x1x3x64xf32>
    %23 = vector.shape_cast %22 : vector<1x1x3x64xf32> to vector<3x64xf32>
    %cst_20 = arith.constant dense<0.000000e+00> : vector<384x64xf32>
    %24 = tpu.matmul %21, %23, %cst_20 {dimension_numbers = #tpu.dot_dimension_numbers<[1], [0], [0], [1], [0, 0, 1, 1], [], []>} : vector<384x3xf32>, vector<3x64xf32>, vector<384x64xf32> -> vector<384x64xf32>
    %25 = arith.addf %20, %24 : vector<384x64xf32>
    %26 = vector.extract_strided_slice %7 {offsets = [24, 0], sizes = [384, 3], strides = [1, 1]} : vector<792x3xf32> to vector<384x3xf32>
    %c1_21 = arith.constant 1 : index
    %c0_22 = arith.constant 0 : index
    %c0_23 = arith.constant 0 : index
    %c0_24 = arith.constant 0 : index
    %27 = vector.load %arg4[%c1_21, %c0_22, %c0_23, %c0_24] : memref<3x3x3x64xf32, #tpu.memory_space<vmem>>, vector<1x1x3x64xf32>
    %28 = vector.shape_cast %27 : vector<1x1x3x64xf32> to vector<3x64xf32>
    %cst_25 = arith.constant dense<0.000000e+00> : vector<384x64xf32>
    %29 = tpu.matmul %26, %28, %cst_25 {dimension_numbers = #tpu.dot_dimension_numbers<[1], [0], [0], [1], [0, 0, 1, 1], [], []>} : vector<384x3xf32>, vector<3x64xf32>, vector<384x64xf32> -> vector<384x64xf32>
    %30 = arith.addf %25, %29 : vector<384x64xf32>
    %31 = vector.extract_strided_slice %8 {offsets = [24, 0], sizes = [384, 3], strides = [1, 1]} : vector<791x3xf32> to vector<384x3xf32>
    %c1_26 = arith.constant 1 : index
    %c1_27 = arith.constant 1 : index
    %c0_28 = arith.constant 0 : index
    %c0_29 = arith.constant 0 : index
    %32 = vector.load %arg4[%c1_26, %c1_27, %c0_28, %c0_29] : memref<3x3x3x64xf32, #tpu.memory_space<vmem>>, vector<1x1x3x64xf32>
    %33 = vector.shape_cast %32 : vector<1x1x3x64xf32> to vector<3x64xf32>
    %cst_30 = arith.constant dense<0.000000e+00> : vector<384x64xf32>
    %34 = tpu.matmul %31, %33, %cst_30 {dimension_numbers = #tpu.dot_dimension_numbers<[1], [0], [0], [1], [0, 0, 1, 1], [], []>} : vector<384x3xf32>, vector<3x64xf32>, vector<384x64xf32> -> vector<384x64xf32>
    %35 = arith.addf %30, %34 : vector<384x64xf32>
    %36 = vector.extract_strided_slice %9 {offsets = [24, 0], sizes = [384, 3], strides = [1, 1]} : vector<790x3xf32> to vector<384x3xf32>
    %c1_31 = arith.constant 1 : index
    %c2_32 = arith.constant 2 : index
    %c0_33 = arith.constant 0 : index
    %c0_34 = arith.constant 0 : index
    %37 = vector.load %arg4[%c1_31, %c2_32, %c0_33, %c0_34] : memref<3x3x3x64xf32, #tpu.memory_space<vmem>>, vector<1x1x3x64xf32>
    %38 = vector.shape_cast %37 : vector<1x1x3x64xf32> to vector<3x64xf32>
    %cst_35 = arith.constant dense<0.000000e+00> : vector<384x64xf32>
    %39 = tpu.matmul %36, %38, %cst_35 {dimension_numbers = #tpu.dot_dimension_numbers<[1], [0], [0], [1], [0, 0, 1, 1], [], []>} : vector<384x3xf32>, vector<3x64xf32>, vector<384x64xf32> -> vector<384x64xf32>
    %40 = arith.addf %35, %39 : vector<384x64xf32>
    %41 = vector.extract_strided_slice %7 {offsets = [48, 0], sizes = [384, 3], strides = [1, 1]} : vector<792x3xf32> to vector<384x3xf32>
    %c2_36 = arith.constant 2 : index
    %c0_37 = arith.constant 0 : index
    %c0_38 = arith.constant 0 : index
    %c0_39 = arith.constant 0 : index
    %42 = vector.load %arg4[%c2_36, %c0_37, %c0_38, %c0_39] : memref<3x3x3x64xf32, #tpu.memory_space<vmem>>, vector<1x1x3x64xf32>
    %43 = vector.shape_cast %42 : vector<1x1x3x64xf32> to vector<3x64xf32>
    %cst_40 = arith.constant dense<0.000000e+00> : vector<384x64xf32>
    %44 = tpu.matmul %41, %43, %cst_40 {dimension_numbers = #tpu.dot_dimension_numbers<[1], [0], [0], [1], [0, 0, 1, 1], [], []>} : vector<384x3xf32>, vector<3x64xf32>, vector<384x64xf32> -> vector<384x64xf32>
    %45 = arith.addf %40, %44 : vector<384x64xf32>
    %46 = vector.extract_strided_slice %8 {offsets = [48, 0], sizes = [384, 3], strides = [1, 1]} : vector<791x3xf32> to vector<384x3xf32>
    %c2_41 = arith.constant 2 : index
    %c1_42 = arith.constant 1 : index
    %c0_43 = arith.constant 0 : index
    %c0_44 = arith.constant 0 : index
    %47 = vector.load %arg4[%c2_41, %c1_42, %c0_43, %c0_44] : memref<3x3x3x64xf32, #tpu.memory_space<vmem>>, vector<1x1x3x64xf32>
    %48 = vector.shape_cast %47 : vector<1x1x3x64xf32> to vector<3x64xf32>
    %cst_45 = arith.constant dense<0.000000e+00> : vector<384x64xf32>
    %49 = tpu.matmul %46, %48, %cst_45 {dimension_numbers = #tpu.dot_dimension_numbers<[1], [0], [0], [1], [0, 0, 1, 1], [], []>} : vector<384x3xf32>, vector<3x64xf32>, vector<384x64xf32> -> vector<384x64xf32>
    %50 = arith.addf %45, %49 : vector<384x64xf32>
    %51 = vector.extract_strided_slice %9 {offsets = [48, 0], sizes = [384, 3], strides = [1, 1]} : vector<790x3xf32> to vector<384x3xf32>
    %c2_46 = arith.constant 2 : index
    %c2_47 = arith.constant 2 : index
    %c0_48 = arith.constant 0 : index
    %c0_49 = arith.constant 0 : index
    %52 = vector.load %arg4[%c2_46, %c2_47, %c0_48, %c0_49] : memref<3x3x3x64xf32, #tpu.memory_space<vmem>>, vector<1x1x3x64xf32>
    %53 = vector.shape_cast %52 : vector<1x1x3x64xf32> to vector<3x64xf32>
    %cst_50 = arith.constant dense<0.000000e+00> : vector<384x64xf32>
    %54 = tpu.matmul %51, %53, %cst_50 {dimension_numbers = #tpu.dot_dimension_numbers<[1], [0], [0], [1], [0, 0, 1, 1], [], []>} : vector<384x3xf32>, vector<3x64xf32>, vector<384x64xf32> -> vector<384x64xf32>
    %55 = arith.addf %50, %54 : vector<384x64xf32>
    %c0_51 = arith.constant 0 : index
    %c0_52 = arith.constant 0 : index
    %56 = vector.load %arg5[%c0_51, %c0_52] : memref<1x64xf32, #tpu.memory_space<vmem>>, vector<1x64xf32>
    %57 = vector.broadcast %56 : vector<1x64xf32> to vector<384x64xf32>
    %58 = arith.addf %55, %57 : vector<384x64xf32>
    %cst_53 = arith.constant 0.000000e+00 : f32
    %59 = vector.broadcast %cst_53 : f32 to vector<384x64xf32>
    %60 = arith.maximumf %58, %59 : vector<384x64xf32>
    %61 = vector.shape_cast %60 : vector<384x64xf32> to vector<16x24x64xf32>
    %62 = vector.extract_strided_slice %61 {offsets = [0, 0, 0], sizes = [16, 16, 64], strides = [1, 1, 1]} : vector<16x24x64xf32> to vector<16x16x64xf32>
    %c0_54 = arith.constant 0 : index
    %c0_55 = arith.constant 0 : index
    %c0_56 = arith.constant 0 : index
    %c0_57 = arith.constant 0 : index
    %63 = vector.load %arg6[%c0_54, %c0_55, %c0_56, %c0_57] : memref<1x16x16x64xf32, #tpu.memory_space<vmem>>, vector<1x16x16x64xf32>
    %64 = vector.shape_cast %63 : vector<1x16x16x64xf32> to vector<16x16x64xf32>
    %65 = vector.shape_cast %62 : vector<16x16x64xf32> to vector<1x16x16x64xf32>
    tpu.vector_store %arg6[%c0_54, %c0_55, %c0_56, %c0_57], %65 {strides = array<i32>} : memref<1x16x16x64xf32, #tpu.memory_space<vmem>>, vector<1x16x16x64xf32>,
    return
  }
  func.func @transform_0(%arg0: i32, %arg1: i32) -> (i32, i32, i32, i32) {
    %c0_i32 = arith.constant 0 : i32
    %c0_i32_0 = arith.constant 0 : i32
    %c0_i32_1 = arith.constant 0 : i32
    return %arg0, %arg1, %c0_i32, %c0_i32_0 : i32, i32, i32, i32
  }
  func.func @transform_1(%arg0: i32, %arg1: i32) -> (i32, i32, i32, i32) {
    %c1_i32 = arith.constant 1 : i32
    %0 = arith.addi %arg1, %c1_i32 : i32
    %c0_i32 = arith.constant 0 : i32
    %c0_i32_0 = arith.constant 0 : i32
    %c0_i32_1 = arith.constant 0 : i32
    return %arg0, %0, %c0_i32, %c0_i32_0 : i32, i32, i32, i32
  }
  func.func @transform_2(%arg0: i32, %arg1: i32) -> (i32, i32, i32, i32) {
    %c0_i32 = arith.constant 0 : i32
    %c0_i32_0 = arith.constant 0 : i32
    %c0_i32_1 = arith.constant 0 : i32
    %c0_i32_2 = arith.constant 0 : i32
    %c0_i32_3 = arith.constant 0 : i32
    return %c0_i32, %c0_i32_0, %c0_i32_1, %c0_i32_2 : i32, i32, i32, i32
  }
  func.func @transform_3(%arg0: i32, %arg1: i32) -> (i32, i32) {
    %c0_i32 = arith.constant 0 : i32
    %c0_i32_0 = arith.constant 0 : i32
    %c0_i32_1 = arith.constant 0 : i32
    return %c0_i32, %c0_i32_0 : i32, i32
  }
  func.func @transform_4(%arg0: i32, %arg1: i32) -> (i32, i32, i32, i32) {
    %c0_i32 = arith.constant 0 : i32
    %c0_i32_0 = arith.constant 0 : i32
    %c0_i32_1 = arith.constant 0 : i32
    return %arg0, %arg1, %c0_i32, %c0_i32_0 : i32, i32, i32, i32
  }
}

</mosaic_0001>

<bundles_post_ra>
// kernel: tpu_custom_call.1
= control target key start
LH: loop header
LB: loop body
LE: loop exit
PB: predicated region body
PF: predicated region fallthrough
CT: control target
= control target key end

     0   :  { %9 = vsyncpa [#allocation3], 0  ;;  %s7931_s0 = inlined_call_operand.vmem [shape: f32[2,32,24,3], index: 0, kind: input, shape index: {}]   ;;  %s7932_s1 = inlined_call_operand.vmem [shape: f32[2,32,24,3], index: 1, kind: input, shape index: {}]   ;;  %s7933_s2 = inlined_call_operand.vmem [shape: f32[3,3,3,64], index: 2, kind: input, shape index: {}]   ;;  %s7934_s3 = inlined_call_operand.vmem [shape: f32[1,64], index: 3, kind: input, shape index: {}]   ;;  %s7935_s4 = inlined_call_operand.hbm [shape: f32[2,16,16,64], index: 4, kind: output, shape index: {}]  }
   0x1   :  { %11 = vsyncpa [#allocation3 + $0x1], 0  ;;  %s5797_s15 = smov 0   ;;  %s5799_s16 = smov 0  }
   0x2   :  { %s5801_s17 = smov 0   ;;  %s5803_s18 = smov 0  }
   0x3   :  { %s5805_s19 = smov 0   ;;  %s5807_s20 = smov 0  }
   0x4 LB: > { %s4025_s21 = sadd.s32 4294967295, %s5767_s20   ;;  %s4026_s22 = sadd.s32 4294967294, %s5767_s20   ;;  %s5767_s20 = sphi %s5807_s20, %s17_s20   ;;  %s5763_s19 = sphi %s5805_s19, %s8381_s19   ;;  %s5759_s18 = sphi %s5803_s18, %s8380_s18   ;;  %s5755_s17 = sphi %s5801_s17, %s8379_s17   ;;  %s5751_s16 = sphi %s5799_s16, %s8378_s16   ;;  %s5747_s15 = sphi %s5797_s15, %s8377_s15  }
   0x5   : > { %s29_s23 = sadd.s32 1, %s5763_s19  ;;  %s138_s24 = sadd.s32 1, %s5755_s17 }
   0x6   : > { %p31_p0 = scmp.ge.s32.totalorder %s29_s23, 2  ;;  %p148_p1 = scmp.ne.s32.totalorder %s5755_s17, %s5751_s16 }
   0x7   : > { %p149_p2 = scmp.eq.s32.totalorder %s4025_s21, 1  ;;  %p154_p3 = scmp.ne.s32.totalorder %s5751_s16, %s5747_s15 }
   0x8   : > { %s8383_s23 = smov (%p31_p0, %s29_s23), 0  ;;  %p155_p5 = scmp.eq.s32.totalorder %s4026_s22, 1 }
   0x9   : > { %p5837_p4 = por %p149_p2, %p148_p1  ;;  %s133_s26 = ssub.s32 %s5763_s19, %s8383_s23 }
   0xa   : > { %p4029_p6 = scmp.ge.s32.totalorder %s5767_s20, 1  ;;  %p136_p7 = scmp.eq.s32.totalorder %s133_s26, 0 }
   0xb   : > { %p5844_p8 = por %p155_p5, %p154_p3  ;;  %p209_p9 = scmp.lt.s32.totalorder %s5767_s20, 3 }
   0xc   : > { %s5850_s28 = scalar_select %p136_p7, %s5755_s17, %s138_s24  }
   0xd   : > { %p210_p10 = pnand %p4029_p6, %p209_p9 }
   0xf   : > { %213 = sbr.rel (%p210_p10) target bundleno = 678 (0x2a6), region = 36 }
  0x14   : > { %v4033_v0 = vld [vmem:[%s7933_s2 + $0x4] sm:$0x7]  ;;  %vm578_vm0 = vcmask 1042432   ;;  %p252_p11 = scmp.lt.s32.totalorder %s5759_s18, 1  ;;  %v331_v1 = vld [vmem:[%s7933_s2] sm:$0x7] }
  0x15   : > { %5598 = vmatprep.subr.msk.mxu1 %vm578_vm0, %v4033_v0  ;;  %4932 = vmatprep.subr.msk.mxu0 %vm578_vm0, %v4033_v0  ;;  %v4132_v2 = vld [vmem:[%s7933_s2 + $0x8] sm:$0x7]  ;;  %vm383_vm1 = vcmask 1046528   ;;  %vm481_vm2 = vcmask 23552   ;;  %v5959_v36 = vld [vmem:[%s7933_s2 + $0xc] sm:$0x7] }
  0x16   : > { %5599 = vmatpush3.msk.msra.mxu1 %vm578_vm0, %v4033_v0  ;;  %4933 = vmatpush3.msk.msra.mxu0 %vm578_vm0, %v4033_v0  ;;  %s5867_s9 = scalar_select %p252_p11, %s5759_s18, 1  ;;  %v5972_v40 = vld [vmem:[%s7933_s2 + $0x10] sm:$0x7]  ;;  %vm1261_vm3 = vcmask 1045504   ;;  %vm3872_vm4 = vcmask 523264  }
  0x17   : > { %5006 = vmatprep.subr.msk.mxu1 %vm578_vm0, %v331_v1  ;;  %5080 = vmatprep.subr.msk.mxu0 %vm578_vm0, %v4132_v2  ;;  %s4490_s29 = sshll.u32 %s5759_s18, 12 }
  0x18   : > { %s5600_s10 = smul.u32 768, %s5867_s9  ;;  %s7878_s7 = scalar_lea.hbm %s7935_s4, %s4490_s29 }
  0x19   : > { %s5769_s9 = smov [#allocation2]  }
  0x1a   : > { %s5877_s13 = scalar_lea.vmem %s7931_s0, %s5600_s10  ;;  %s4489_s26 = sadd.s32 384, %s5600_s10 }
  0x1b   : > { %v5880_v3 = vld [vmem:[%s5877_s13] sm:$0xff]  ;;  %v5883_v4 = vld [vmem:[%s5877_s13 + $0x8] sm:$0xff]  ;;  %v5895_v10 = vld [vmem:[%s5877_s13 + $0x10] sm:$0xff]  ;;  %s6265_s5 = scalar_lea.vmem %s7932_s1, %s4489_s26  ;;  %s5695_s10 = sshll.u32 %s5769_s9, 4  ;;  %s5696_s10 = int_to_ptr.vmem [resolvable:$false] %s5695_s10 }
  0x1c   : > { %v5886_v5 = vld [vmem:[%s5877_s13 + $0xc0] sm:$0xff]  ;;  %v384_v6 = vrot.slane %v5880_v3, 1  ;;  %v385_v7 = vrot.slane %v5883_v4, 1  ;;  %v5891_v8 = vld [vmem:[%s5877_s13 + $0xc8] sm:$0xff]  ;;  %v5898_v11 = vld [vmem:[%s5877_s13 + $0xd0] sm:$0xff]  ;;  %v387_v13 = vrot.slane %v5895_v10, 1 }
  0x1d   : > { %v7936_v9 = vrot.slane %v5886_v5, 1  ;;  %v433_v12 = vrot.slane %v5891_v8, 1  ;;  %v435_v14 = vrot.slane %v5898_v11, 1  ;;  %v5904_v15 = vld [vmem:[%s5877_s13 + $0x18] sm:$0xff]  ;;  %v5913_v20 = vld [vmem:[%s5877_s13 + $0x20] sm:$0xff]  ;;  %v5919_v22 = vld [vmem:[%s5877_s13 + $0x28] sm:$0xff] }
  0x1e   : > { %v5907_v16 = vld [vmem:[%s5877_s13 + $0xd8] sm:$0xff]  ;;  %v386_v17 = vsel %vm383_vm1, %v384_v6, %v385_v7  ;;  %v389_v18 = vrot.slane %v5904_v15, 1  ;;  %v5916_v21 = vld [vmem:[%s5877_s13 + $0xe0] sm:$0xff]  ;;  %v388_v24 = vsel %vm383_vm1, %v385_v7, %v387_v13  ;;  %v391_v26 = vrot.slane %v5913_v20, 1  ;;  %v5933_v27 = vld [vmem:[%s5877_s13 + $0xe8] sm:$0xff]  ;;  %s5697_s11 = scalar_lea.vmem %s5696_s10, 8192 }
  0x1f   : > { %v437_v19 = vrot.slane %v5907_v16, 1  ;;  %4934 = vmatprep.mubr.msk.f32.mxu0 %vm481_vm2, %v386_v17  ;;  %v5925_v23 = vsel %vm383_vm1, %v7936_v9, %v433_v12  ;;  %v5929_v25 = vsel %vm383_vm1, %v433_v12, %v435_v14  ;;  %v5936_v28 = vld [vmem:[%s5877_s13 + $0x30] sm:$0xff]  ;;  %v439_v32 = vrot.slane %v5916_v21, 1  ;;  %v5951_v34 = vld [vmem:[%s5877_s13 + $0x38] sm:$0xff]  ;;  %v5985_v45 = vld [vmem:[%s5877_s13 + $0x40] sm:$0xff] }
  0x20   : > { %8107 = vst [vmem:[#allocation5_spill] sm:$0xff] %v5925_v23  ;;  %8108 = vst [vmem:[#allocation6_spill] sm:$0xff] %v5929_v25  ;;  %v5939_v29 = vld [vmem:[%s5877_s13 + $0xf0] sm:$0xff]  ;;  %4970 = vmatprep.mubr.msk.f32.mxu1 %vm481_vm2, %v5925_v23  ;;  %4935 = vmatmul.mubr.msk.f32.vlgmr.msra.gmra.mxu0 %vm481_vm2, %v388_v24  ;;  %v390_v30 = vsel %vm383_vm1, %v387_v13, %v389_v18  ;;  %v393_v33 = vrot.slane %v5919_v22, 1  ;;  %v5954_v35 = vld [vmem:[%s5877_s13 + $0xf8] sm:$0xff]  ;;  %v5965_v37 = vsel %vm383_vm1, %v389_v18, %v391_v26 }
  0x21   : > { %v5946_v31 = vsel %vm383_vm1, %v435_v14, %v437_v19  ;;  %4971 = vmatmul.mubr.msk.f32.vlgmr.msra.gmra.mxu1 %vm481_vm2, %v5929_v25  ;;  %5081 = vmatpush3.msk.msra.mxu0 %vm578_vm0, %v4132_v2  ;;  %8110 = vst [vmem:[#allocation8_spill] sm:$0xff] %v5965_v37  ;;  %v441_v38 = vrot.slane %v5933_v27, 1  ;;  %v395_v39 = vrot.slane %v5936_v28, 1  ;;  %v5977_v41 = vsel %vm383_vm1, %v437_v19, %v439_v32  ;;  %v5994_v48 = vld [vmem:[%s5877_s13 + $0x100] sm:$0xff]  ;;  %v5997_v49 = vld [vmem:[%s5877_s13 + $0x48] sm:$0xff]  ;;  %v6027_v57 = vld [vmem:[%s5877_s13 + $0x50] sm:$0xff] }
  0x22   : > { %8109 = vst [vmem:[#allocation7_spill] sm:$0xff] %v5946_v31  ;;  %5007 = vmatpush3.msk.msra.mxu1 %vm578_vm0, %v331_v1  ;;  %4937 = vmatprep.mubr.msk.f32.mxu0 %vm481_vm2, %v390_v30  ;;  %8111 = vst [vmem:[#allocation9_spill] sm:$0xff] %v5977_v41  ;;  %v5980_v42 = vsel %vm383_vm1, %v391_v26, %v393_v33  ;;  %v443_v43 = vrot.slane %v5939_v29, 1  ;;  %v397_v44 = vrot.slane %v5951_v34, 1  ;;  %v445_v47 = vrot.slane %v5954_v35, 1  ;;  %v6004_v50 = vld [vmem:[%s5877_s13 + $0x108] sm:$0xff] }
  0x23   : > { %8112 = vst [vmem:[#allocation10_spill] sm:$0xff] %v5980_v42  ;;  %4973 = vmatprep.mubr.msk.f32.mxu1 %vm481_vm2, %v5946_v31  ;;  %v5990_v46 = vsel %vm383_vm1, %v439_v32, %v441_v38  ;;  %5154 = vmatprep.subr.msk.mxu1 %vm578_vm0, %v5959_v36  ;;  %v6013_v51 = vsel %vm383_vm1, %v393_v33, %v395_v39  ;;  %v399_v52 = vrot.slane %v5985_v45, 1  ;;  %v447_v55 = vrot.slane %v5994_v48, 1  ;;  %v6034_v60 = vld [vmem:[%s5877_s13 + $0x110] sm:$0xff]  ;;  %v6037_v61 = vld [vmem:[%s5877_s13 + $0x58] sm:$0xff]  ;;  %v6063_v12 = vld [vmem:[%s5877_s13 + $0x60] sm:$0xff] }
  0x24   : > { %8113 = vst [vmem:[#allocation11_spill] sm:$0xff] %v5990_v46  ;;  %4938 = vmatmul.mubr.msk.f32.gmra.mxu0 %vm481_vm2, %v5965_v37  ;;  %5228 = vmatprep.subr.msk.mxu0 %vm578_vm0, %v5972_v40  ;;  %8114 = vst [vmem:[#allocation12_spill] sm:$0xff] %v6013_v51  ;;  %v6019_v53 = vsel %vm383_vm1, %v441_v38, %v443_v43  ;;  %v6022_v54 = vsel %vm383_vm1, %v395_v39, %v397_v44  ;;  %v401_v56 = vrot.slane %v5997_v49, 1  ;;  %v6042_v62 = vld [vmem:[%s5877_s13 + $0x118] sm:$0xff]  ;;  %v6070_v17 = vld [vmem:[%s5877_s13 + $0x120] sm:$0xff] }
  0x25   : > { %4974 = vmatmul.mubr.msk.f32.gmra.mxu1 %vm481_vm2, %v5977_v41  ;;  %4940 = vmatprep.mubr.msk.f32.mxu0 %vm481_vm2, %v5980_v42  ;;  %8115 = vst [vmem:[#allocation13_spill] sm:$0xff] %v6019_v53  ;;  %8116 = vst [vmem:[#allocation14_spill] sm:$0xff] %v6022_v54  ;;  %v6030_v58 = vsel %vm383_vm1, %v443_v43, %v445_v47  ;;  %v449_v59 = vrot.slane %v6004_v50, 1  ;;  %v6049_v63 = vsel %vm383_vm1, %v397_v44, %v399_v52  ;;  %v6073_v18 = vld [vmem:[%s5877_s13 + $0x68] sm:$0xff]  ;;  %v6099_v39 = vld [vmem:[%s5877_s13 + $0x70] sm:$0xff] }
  0x26   : > { %4976 = vmatprep.mubr.msk.f32.mxu1 %vm481_vm2, %v5990_v46  ;;  %8117 = vst [vmem:[#allocation15_spill] sm:$0xff] %v6030_v58  ;;  %8118 = vst [vmem:[#allocation16_spill] sm:$0xff] %v6049_v63  ;;  %v403_v0 = vrot.slane %v6027_v57, 1  ;;  %v6055_v1 = vsel %vm383_vm1, %v445_v47, %v447_v55  ;;  %v6058_v2 = vsel %vm383_vm1, %v399_v52, %v401_v56  ;;  %v451_v6 = vrot.slane %v6034_v60, 1  ;;  %v6078_v19 = vld [vmem:[%s5877_s13 + $0x128] sm:$0xff]  ;;  %v6106_v47 = vld [vmem:[%s5877_s13 + $0x130] sm:$0xff] }
  0x27   : > { %8119 = vst [vmem:[#allocation17_spill] sm:$0xff] %v6055_v1  ;;  %8120 = vst [vmem:[#allocation18_spill] sm:$0xff] %v6058_v2  ;;  %v405_v7 = vrot.slane %v6037_v61, 1  ;;  %v6066_v13 = vsel %vm383_vm1, %v447_v55, %v449_v59  ;;  %v453_v14 = vrot.slane %v6042_v62, 1  ;;  %v407_v26 = vrot.slane %v6063_v12, 1  ;;  %v6109_v52 = vld [vmem:[%s5877_s13 + $0x78] sm:$0xff] }
  0x28   : > { %4941 = vmatmul.mubr.msk.f32.gmra.mxu0 %vm481_vm2, %v6013_v51  ;;  %8121 = vst [vmem:[#allocation19_spill] sm:$0xff] %v6066_v13  ;;  %v6085_v24 = vsel %vm383_vm1, %v401_v56, %v403_v0  ;;  %v6091_v30 = vsel %vm383_vm1, %v449_v59, %v451_v6  ;;  %v455_v33 = vrot.slane %v6070_v17, 1  ;;  %v409_v38 = vrot.slane %v6073_v18, 1  ;;  %v6114_v55 = vld [vmem:[%s5877_s13 + $0x138] sm:$0xff]  ;;  %v6171_v31 = vld [vmem:[%s5877_s13 + $0x90] sm:$0xff] }
  0x29   : > { %4977 = vmatmul.mubr.msk.f32.gmra.mxu1 %vm481_vm2, %v6019_v53  ;;  %4943 = vmatprep.mubr.msk.f32.mxu0 %vm481_vm2, %v6022_v54  ;;  %8122 = vst [vmem:[#allocation20_spill] sm:$0xff] %v6085_v24  ;;  %8123 = vst [vmem:[#allocation21_spill] sm:$0xff] %v6091_v30  ;;  %v6094_v32 = vsel %vm383_vm1, %v403_v0, %v405_v7  ;;  %v6102_v43 = vsel %vm383_vm1, %v451_v6, %v453_v14  ;;  %v457_v44 = vrot.slane %v6078_v19, 1  ;;  %v6178_v23 = vld [vmem:[%s5877_s13 + $0x150] sm:$0xff] }
  0x2a   : > { %4979 = vmatprep.mubr.msk.f32.mxu1 %vm481_vm2, %v6030_v58  ;;  %8124 = vst [vmem:[#allocation22_spill] sm:$0xff] %v6094_v32  ;;  %8125 = vst [vmem:[#allocation23_spill] sm:$0xff] %v6102_v43  ;;  %v6121_v56 = vsel %vm383_vm1, %v405_v7, %v407_v26  ;;  %v411_v59 = vrot.slane %v6099_v39, 1  ;;  %v6127_v0 = vsel %vm383_vm1, %v453_v14, %v455_v33  ;;  %v459_v9 = vrot.slane %v6106_v47, 1  ;;  %v6142_v58 = vld [vmem:[%s5877_s13 + $0x140] sm:$0xff]  ;;  %v6145_v14 = vld [vmem:[%s5877_s13 + $0x88] sm:$0xff] }
  0x2b   : > { %8126 = vst [vmem:[#allocation24_spill] sm:$0xff] %v6121_v56  ;;  %8127 = vst [vmem:[#allocation25_spill] sm:$0xff] %v6127_v0  ;;  %v6130_v6 = vsel %vm383_vm1, %v407_v26, %v409_v38  ;;  %v6138_v7 = vsel %vm383_vm1, %v455_v33, %v457_v44  ;;  %v6150_v26 = vld [vmem:[%s5877_s13 + $0x148] sm:$0xff]  ;;  %v463_v41 = vrot.slane %v6142_v58, 1  ;;  %v6252_v51 = vld [vmem:[%s5877_s13 + $0x170] sm:$0xff] }
  0x2c   : > { %4944 = vmatmul.mubr.msk.f32.gmra.mxu0 %vm481_vm2, %v6049_v63  ;;  %8128 = vst [vmem:[#allocation26_spill] sm:$0xff] %v6130_v6  ;;  %8129 = vst [vmem:[#allocation27_spill] sm:$0xff] %v6138_v7  ;;  %v6157_v33 = vsel %vm383_vm1, %v409_v38, %v411_v59  ;;  %v6163_v53 = vsel %vm383_vm1, %v457_v44, %v459_v9  ;;  %v465_v25 = vrot.slane %v6150_v26, 1  ;;  %v6181_v44 = vld [vmem:[%s5877_s13 + $0x98] sm:$0xff]  ;;  %v6245_v63 = vld [vmem:[%s5877_s13 + $0xb0] sm:$0xff]  ;;  %v475_v37 = vrot.slane %v6252_v51, 1 }
  0x2d   : > { %4980 = vmatmul.mubr.msk.f32.gmra.mxu1 %vm481_vm2, %v6055_v1  ;;  %4946 = vmatprep.mubr.msk.f32.mxu0 %vm481_vm2, %v6058_v2  ;;  %v461_v1 = vrot.slane %v6114_v55, 1  ;;  %8130 = vst [vmem:[#allocation28_spill] sm:$0xff] %v6157_v33  ;;  %8131 = vst [vmem:[#allocation29_spill] sm:$0xff] %v6163_v53 }
  0x2e   : > { %4982 = vmatprep.mubr.msk.f32.mxu1 %vm481_vm2, %v6066_v13  ;;  %v6135_v13 = vld [vmem:[%s5877_s13 + $0x80] sm:$0xff] }
  0x2f   : > { %v6174_v38 = vsel %vm383_vm1, %v459_v9, %v461_v1 }
  0x30   : > { %4947 = vmatmul.mubr.msk.f32.gmra.mxu0 %vm481_vm2, %v6085_v24  ;;  %8133 = vst [vmem:[#allocation31_spill] sm:$0xff] %v6174_v38  ;;  %v6217_v24 = vld [vmem:[%s5877_s13 + $0xa8] sm:$0xff] }
  0x31   : > { %4983 = vmatmul.mubr.msk.f32.gmra.mxu1 %vm481_vm2, %v6091_v30  ;;  %4949 = vmatprep.mubr.msk.f32.mxu0 %vm481_vm2, %v6094_v32  ;;  %v413_v30 = vrot.slane %v6109_v52, 1 }
  0x32   : > { %4985 = vmatprep.mubr.msk.f32.mxu1 %vm481_vm2, %v6102_v43  ;;  %v415_v43 = vrot.slane %v6135_v13, 1 }
  0x33   : > { %v6166_v46 = vsel %vm383_vm1, %v411_v59, %v413_v30  ;;  %v6186_v59 = vld [vmem:[%s5877_s13 + $0x158] sm:$0xff] }
  0x34   : > { %4950 = vmatmul.mubr.msk.f32.gmra.mxu0 %vm481_vm2, %v6121_v56  ;;  %8132 = vst [vmem:[#allocation30_spill] sm:$0xff] %v6166_v46  ;;  %v6193_v9 = vsel %vm383_vm1, %v413_v30, %v415_v43  ;;  %v421_v56 = vrot.slane %v6181_v44, 1  ;;  %v6210_v30 = vsel %vm383_vm1, %v463_v41, %v465_v25  ;;  %v469_v32 = vrot.slane %v6186_v59, 1 }
  0x35   : > { %4986 = vmatmul.mubr.msk.f32.gmra.mxu1 %vm481_vm2, %v6127_v0  ;;  %4952 = vmatprep.mubr.msk.f32.mxu0 %vm481_vm2, %v6130_v6  ;;  %v417_v0 = vrot.slane %v6145_v14, 1  ;;  %8134 = vst [vmem:[#allocation32_spill] sm:$0xff] %v6193_v9  ;;  %8137 = vst [vmem:[#allocation35_spill] sm:$0xff] %v6210_v30 }
  0x36   : > { %4988 = vmatprep.mubr.msk.f32.mxu1 %vm481_vm2, %v6138_v7  ;;  %v419_v7 = vrot.slane %v6171_v31, 1 }
  0x37   : > { %v6202_v6 = vsel %vm383_vm1, %v415_v43, %v417_v0 }
  0x38   : > { %4953 = vmatmul.mubr.msk.f32.gmra.mxu0 %vm481_vm2, %v6157_v33  ;;  %v6199_v33 = vsel %vm383_vm1, %v461_v1, %v463_v41  ;;  %8136 = vst [vmem:[#allocation34_spill] sm:$0xff] %v6202_v6  ;;  %v6222_v1 = vld [vmem:[%s5877_s13 + $0x168] sm:$0xff]  ;;  %v6229_v41 = vsel %vm383_vm1, %v417_v0, %v419_v7  ;;  %v6240_v2 = vsel %vm383_vm1, %v419_v7, %v421_v56  ;;  %v427_v7 = vrot.slane %v6245_v63, 1 }
  0x39   : > { %4989 = vmatmul.mubr.msk.f32.gmra.mxu1 %vm481_vm2, %v6163_v53  ;;  %4955 = vmatprep.mubr.msk.f32.mxu0 %vm481_vm2, %v6166_v46  ;;  %8135 = vst [vmem:[#allocation33_spill] sm:$0xff] %v6199_v33  ;;  %v467_v53 = vrot.slane %v6178_v23, 1  ;;  %v6207_v46 = vld [vmem:[%s5877_s13 + $0xa0] sm:$0xff]  ;;  %8138 = vst [vmem:[#allocation36_spill] sm:$0xff] %v6222_v1  ;;  %v473_v54 = vrot.slane %v6222_v1, 1 }
  0x3a   : > { %4991 = vmatprep.mubr.msk.f32.mxu1 %vm481_vm2, %v6174_v38  ;;  %v6214_v38 = vld [vmem:[%s5877_s13 + $0x160] sm:$0xff]  ;;  %8139 = vst [vmem:[#allocation37_spill] sm:$0xff] %v6229_v41  ;;  %v423_v43 = vrot.slane %v6207_v46, 1  ;;  %8141 = vst [vmem:[#allocation39_spill] sm:$0xff] %v6240_v2 }
  0x3b   : > { %v6248_v0 = vsel %vm383_vm1, %v467_v53, %v469_v32  ;;  %v6290_v1 = vld [vmem:[%s6265_s5] sm:$0xff] }
  0x3c   : > { %4956 = vmatmul.mubr.msk.f32.gmra.mxu0 %vm481_vm2, %v6193_v9  ;;  %v6237_v9 = vsel %vm383_vm1, %v465_v25, %v467_v53  ;;  %8142 = vst [vmem:[#allocation40_spill] sm:$0xff] %v6248_v0  ;;  %v6260_v25 = vld [vmem:[%s5877_s13 + $0x178] sm:$0xff]  ;;  %v6272_v53 = vsel %vm383_vm1, %v421_v56, %v423_v43 }
  0x3d   : > { %4992 = vmatmul.mubr.msk.f32.gmra.mxu1 %vm481_vm2, %v6199_v33  ;;  %4958 = vmatprep.mubr.msk.f32.mxu0 %vm481_vm2, %v6202_v6  ;;  %8140 = vst [vmem:[#allocation38_spill] sm:$0xff] %v6237_v9  ;;  %v471_v33 = vrot.slane %v6214_v38, 1  ;;  %v425_v6 = vrot.slane %v6217_v24, 1  ;;  %8143 = vst [vmem:[#allocation41_spill] sm:$0xff] %v6272_v53  ;;  %v477_v56 = vrot.slane %v6260_v25, 1 }
  0x3e   : > { %4994 = vmatprep.mubr.msk.f32.mxu1 %vm481_vm2, %v6210_v30  ;;  %v6255_v30 = vld [vmem:[%s5877_s13 + $0xb8] sm:$0xff] }
  0x3f   : > { %v6281_v42 = vsel %vm383_vm1, %v423_v43, %v425_v6  ;;  %v1262_v43 = vrot.slane %v5880_v3, 2 }
  0x40   : > { %4959 = vmatmul.mubr.msk.f32.gmra.mxu0 %vm481_vm2, %v6229_v41  ;;  %v6278_v41 = vsel %vm383_vm1, %v469_v32, %v471_v33  ;;  %8145 = vst [vmem:[#allocation43_spill] sm:$0xff] %v6281_v42  ;;  %v6299_v32 = vsel %vm383_vm1, %v425_v6, %v427_v7  ;;  %v1265_v6 = vrot.slane %v5895_v10, 2 }
  0x41   : > { %4995 = vmatmul.mubr.msk.f32.gmra.mxu1 %vm481_vm2, %v6237_v9  ;;  %4961 = vmatprep.mubr.msk.f32.mxu0 %vm481_vm2, %v6240_v2  ;;  %8144 = vst [vmem:[#allocation42_spill] sm:$0xff] %v6278_v41  ;;  %v429_v9 = vrot.slane %v6255_v30, 1  ;;  %v6286_v2 = vsel %vm383_vm1, %v471_v33, %v473_v54  ;;  %8147 = vst [vmem:[#allocation45_spill] sm:$0xff] %v6299_v32  ;;  %v6305_v33 = vsel %vm383_vm1, %v473_v54, %v475_v37 }
  0x42   : > { %4997 = vmatprep.mubr.msk.f32.mxu1 %vm481_vm2, %v6248_v0  ;;  %8146 = vst [vmem:[#allocation44_spill] sm:$0xff] %v6286_v2  ;;  %8148 = vst [vmem:[#allocation46_spill] sm:$0xff] %v6305_v33  ;;  %v8151_v54 = vrot.slane %v5886_v5, 1 }
  0x43   : > { %v6308_v0 = vsel %vm383_vm1, %v427_v7, %v429_v9 }
  0x44   : > { %4962 = vmatmul.mubr.msk.f32.gmra.mxu0 %vm481_vm2, %v6272_v53  ;;  %8149 = vst [vmem:[#allocation47_spill] sm:$0xff] %v6308_v0  ;;  %v8016_v53 = vrot.slane %v6290_v1, 1  ;;  %v6325_v7 = vsel %vm383_vm1, %v429_v9, %v8151_v54  ;;  %v1269_v54 = vrot.slane %v5913_v20, 2 }
  0x45   : > { %4998 = vmatmul.mubr.msk.f32.gmra.mxu1 %vm481_vm2, %v6278_v41  ;;  %4964 = vmatprep.mubr.msk.f32.mxu0 %vm481_vm2, %v6281_v42  ;;  %v1263_v41 = vrot.slane %v5883_v4, 2  ;;  %v6313_v42 = vsel %vm383_vm1, %v475_v37, %v477_v56  ;;  %8152 = vst [vmem:[#allocation49_spill] sm:$0xff] %v6325_v7 }
  0x46   : > { %5000 = vmatprep.mubr.msk.f32.mxu1 %vm481_vm2, %v6286_v2  ;;  %8150 = vst [vmem:[#allocation48_spill] sm:$0xff] %v6313_v42  ;;  %v6332_v37 = vsel %vm383_vm1, %v477_v56, %v8016_v53  ;;  %v1271_v56 = vrot.slane %v5919_v22, 2  ;;  %v6351_v53 = vld [vmem:[%s7933_s2 + $0x14] sm:$0x7] }
  0x47   : > { %8153 = vst [vmem:[#allocation50_spill] sm:$0xff] %v6332_v37  ;;  %v1264_v2 = vsel %vm1261_vm3, %v1262_v43, %v1263_v41  ;;  %v1266_v9 = vsel %vm1261_vm3, %v1263_v41, %v1265_v6  ;;  %v6364_v41 = vld [vmem:[%s7933_s2 + $0x18] sm:$0x7] }
  0x48   : > { %4965 = vmatmul.mubr.msk.f32.gmra.mxu0 %vm481_vm2, %v6299_v32 }
  0x49   : > { %5001 = vmatmul.mubr.msk.f32.gmra.mxu1 %vm481_vm2, %v6305_v33  ;;  %4967 = vmatprep.mubr.msk.f32.mxu0 %vm481_vm2, %v6308_v0  ;;  %v1267_v33 = vrot.slane %v5904_v15, 2 }
  0x4a   : > { %5003 = vmatprep.mubr.msk.f32.mxu1 %vm481_vm2, %v6313_v42 }
  0x4b   : > { %v1268_v43 = vsel %vm1261_vm3, %v1265_v6, %v1267_v33  ;;  %v1279_v6 = vrot.slane %v5997_v49, 2 }
  0x4c   : > { %4968 = vmatmul.mubr.msk.f32.gmra.mxu0 %vm481_vm2, %v6325_v7 }
  0x4d   : > { %5004 = vmatmul.mubr.msk.f32.gmra.mxu1 %vm481_vm2, %v6332_v37  ;;  %5082 = vmatprep.mubr.msk.f32.mxu0 %vm481_vm2, %v1264_v2  ;;  %v6358_v2 = vsel %vm1261_vm3, %v1267_v33, %v1269_v54 }
  0x4e   : > { %5008 = vmatprep.mubr.msk.f32.mxu1 %vm481_vm2, %v5880_v3  ;;  %v1273_v3 = vrot.slane %v5936_v28, 2 }
  0x50   : > { %5083 = vmatmul.mubr.msk.f32.vlgmr.msra.gmra.mxu0 %vm481_vm2, %v1266_v9 }
  0x51   : > { %5009 = vmatmul.mubr.msk.f32.vlgmr.msra.gmra.mxu1 %vm481_vm2, %v5883_v4  ;;  %5229 = vmatpush3.msk.msra.mxu0 %vm578_vm0, %v5972_v40  ;;  %v6371_v4 = vsel %vm1261_vm3, %v1269_v54, %v1271_v56  ;;  %v1275_v40 = vrot.slane %v5951_v34, 2  ;;  %v1281_v54 = vrot.slane %v6027_v57, 2 }
  0x52   : > { %5155 = vmatpush3.msk.msra.mxu1 %vm578_vm0, %v5959_v36  ;;  %5011 = vmatprep.mubr.msk.f32.mxu1 %vm481_vm2, %v5895_v10  ;;  %v6386_v10 = vsel %vm1261_vm3, %v1271_v56, %v1273_v3  ;;  %v1277_v36 = vrot.slane %v5985_v45, 2 }
  0x53   : > { %5085 = vmatprep.mubr.msk.f32.mxu0 %vm481_vm2, %v1268_v43  ;;  %5302 = vmatprep.subr.msk.mxu1 %vm578_vm0, %v6351_v53  ;;  %8154 = vst [vmem:[#allocation51_spill] sm:$0xff] %v6386_v10  ;;  %v6392_v33 = vsel %vm1261_vm3, %v1273_v3, %v1275_v40  ;;  %v1283_v43 = vrot.slane %v6037_v61, 2  ;;  %v6418_v3 = vsel %vm1261_vm3, %v1279_v6, %v1281_v54 }
  0x54   : > { %5086 = vmatmul.mubr.msk.f32.gmra.mxu0 %vm481_vm2, %v6358_v2  ;;  %5376 = vmatprep.subr.msk.mxu0 %vm578_vm0, %v6364_v41  ;;  %8155 = vst [vmem:[#allocation52_spill] sm:$0xff] %v6392_v33  ;;  %v6402_v9 = vsel %vm1261_vm3, %v1275_v40, %v1277_v36  ;;  %v6408_v56 = vsel %vm1261_vm3, %v1277_v36, %v1279_v6  ;;  %8158 = vst [vmem:[#allocation55_spill] sm:$0xff] %v6418_v3  ;;  %v1285_v40 = vrot.slane %v6063_v12, 2 }
  0x55   : > { %5012 = vmatmul.mubr.msk.f32.gmra.mxu1 %vm481_vm2, %v5904_v15  ;;  %5088 = vmatprep.mubr.msk.f32.mxu0 %vm481_vm2, %v6371_v4  ;;  %8156 = vst [vmem:[#allocation53_spill] sm:$0xff] %v6402_v9  ;;  %8157 = vst [vmem:[#allocation54_spill] sm:$0xff] %v6408_v56  ;;  %v6424_v36 = vsel %vm1261_vm3, %v1281_v54, %v1283_v43 }
  0x56   : > { %5014 = vmatprep.mubr.msk.f32.mxu1 %vm481_vm2, %v5913_v20  ;;  %8159 = vst [vmem:[#allocation56_spill] sm:$0xff] %v6424_v36  ;;  %v6434_v6 = vsel %vm1261_vm3, %v1283_v43, %v1285_v40 }
  0x57   : > { %8160 = vst [vmem:[#allocation57_spill] sm:$0xff] %v6434_v6 }
  0x58   : > { %5089 = vmatmul.mubr.msk.f32.gmra.mxu0 %vm481_vm2, %v6386_v10 }
  0x59   : > { %5015 = vmatmul.mubr.msk.f32.gmra.mxu1 %vm481_vm2, %v5919_v22  ;;  %5091 = vmatprep.mubr.msk.f32.mxu0 %vm481_vm2, %v6392_v33  ;;  %v1287_v33 = vrot.slane %v6073_v18, 2 }
  0x5a   : > { %5017 = vmatprep.mubr.msk.f32.mxu1 %vm481_vm2, %v5936_v28 }
  0x5b   : > { %v6440_v54 = vsel %vm1261_vm3, %v1285_v40, %v1287_v33 }
  0x5c   : > { %5092 = vmatmul.mubr.msk.f32.gmra.mxu0 %vm481_vm2, %v6402_v9  ;;  %8161 = vst [vmem:[#allocation58_spill] sm:$0xff] %v6440_v54  ;;  %v1291_v9 = vrot.slane %v6109_v52, 2 }
  0x5d   : > { %5018 = vmatmul.mubr.msk.f32.gmra.mxu1 %vm481_vm2, %v5951_v34  ;;  %5094 = vmatprep.mubr.msk.f32.mxu0 %vm481_vm2, %v6408_v56  ;;  %v1289_v56 = vrot.slane %v6099_v39, 2 }
  0x5e   : > { %5020 = vmatprep.mubr.msk.f32.mxu1 %vm481_vm2, %v5985_v45 }
  0x5f   : > { %v6450_v43 = vsel %vm1261_vm3, %v1287_v33, %v1289_v56  ;;  %v6456_v40 = vsel %vm1261_vm3, %v1289_v56, %v1291_v9 }
  0x60   : > { %5095 = vmatmul.mubr.msk.f32.gmra.mxu0 %vm481_vm2, %v6418_v3  ;;  %8162 = vst [vmem:[#allocation59_spill] sm:$0xff] %v6450_v43  ;;  %8163 = vst [vmem:[#allocation60_spill] sm:$0xff] %v6456_v40  ;;  %v1295_v3 = vrot.slane %v6145_v14, 2 }
  0x61   : > { %5021 = vmatmul.mubr.msk.f32.gmra.mxu1 %vm481_vm2, %v5997_v49  ;;  %5097 = vmatprep.mubr.msk.f32.mxu0 %vm481_vm2, %v6424_v36  ;;  %v1293_v36 = vrot.slane %v6135_v13, 2 }
  0x62   : > { %5023 = vmatprep.mubr.msk.f32.mxu1 %vm481_vm2, %v6027_v57 }
  0x63   : > { %v6466_v33 = vsel %vm1261_vm3, %v1291_v9, %v1293_v36  ;;  %v6472_v56 = vsel %vm1261_vm3, %v1293_v36, %v1295_v3 }
  0x64   : > { %5098 = vmatmul.mubr.msk.f32.gmra.mxu0 %vm481_vm2, %v6434_v6  ;;  %8164 = vst [vmem:[#allocation61_spill] sm:$0xff] %v6466_v33  ;;  %8165 = vst [vmem:[#allocation62_spill] sm:$0xff] %v6472_v56  ;;  %v1299_v6 = vrot.slane %v6181_v44, 2 }
  0x65   : > { %5024 = vmatmul.mubr.msk.f32.gmra.mxu1 %vm481_vm2, %v6037_v61  ;;  %5100 = vmatprep.mubr.msk.f32.mxu0 %vm481_vm2, %v6440_v54  ;;  %v1297_v54 = vrot.slane %v6171_v31, 2 }
  0x66   : > { %5026 = vmatprep.mubr.msk.f32.mxu1 %vm481_vm2, %v6063_v12 }
  0x67   : > { %v6482_v9 = vsel %vm1261_vm3, %v1295_v3, %v1297_v54  ;;  %v6488_v36 = vsel %vm1261_vm3, %v1297_v54, %v1299_v6 }
  0x68   : > { %5101 = vmatmul.mubr.msk.f32.gmra.mxu0 %vm481_vm2, %v6450_v43  ;;  %8166 = vst [vmem:[#allocation63_spill] sm:$0xff] %v6482_v9  ;;  %8167 = vst [vmem:[#allocation64_spill] sm:$0xff] %v6488_v36  ;;  %v1303_v43 = vrot.slane %v6217_v24, 2 }
  0x69   : > { %5027 = vmatmul.mubr.msk.f32.gmra.mxu1 %vm481_vm2, %v6073_v18  ;;  %5103 = vmatprep.mubr.msk.f32.mxu0 %vm481_vm2, %v6456_v40  ;;  %v1301_v40 = vrot.slane %v6207_v46, 2 }
  0x6a   : > { %5029 = vmatprep.mubr.msk.f32.mxu1 %vm481_vm2, %v6099_v39 }
  0x6b   : > { %v6498_v3 = vsel %vm1261_vm3, %v1299_v6, %v1301_v40  ;;  %v6504_v54 = vsel %vm1261_vm3, %v1301_v40, %v1303_v43 }
  0x6c   : > { %5104 = vmatmul.mubr.msk.f32.gmra.mxu0 %vm481_vm2, %v6466_v33  ;;  %8168 = vst [vmem:[#allocation65_spill] sm:$0xff] %v6498_v3  ;;  %8169 = vst [vmem:[#allocation66_spill] sm:$0xff] %v6504_v54  ;;  %v1307_v33 = vrot.slane %v6255_v30, 2 }
  0x6d   : > { %5030 = vmatmul.mubr.msk.f32.gmra.mxu1 %vm481_vm2, %v6109_v52  ;;  %5106 = vmatprep.mubr.msk.f32.mxu0 %vm481_vm2, %v6472_v56  ;;  %v1305_v56 = vrot.slane %v6245_v63, 2 }
  0x6e   : > { %5032 = vmatprep.mubr.msk.f32.mxu1 %vm481_vm2, %v6135_v13 }
  0x6f   : > { %v6514_v6 = vsel %vm1261_vm3, %v1303_v43, %v1305_v56  ;;  %v6520_v40 = vsel %vm1261_vm3, %v1305_v56, %v1307_v33 }
  0x70   : > { %5107 = vmatmul.mubr.msk.f32.gmra.mxu0 %vm481_vm2, %v6482_v9  ;;  %8170 = vst [vmem:[#allocation67_spill] sm:$0xff] %v6514_v6  ;;  %8171 = vst [vmem:[#allocation68_spill] sm:$0xff] %v6520_v40  ;;  %v1311_v9 = vrot.slane %v5891_v8, 2 }
  0x71   : > { %5033 = vmatmul.mubr.msk.f32.gmra.mxu1 %vm481_vm2, %v6145_v14  ;;  %5109 = vmatprep.mubr.msk.f32.mxu0 %vm481_vm2, %v6488_v36  ;;  %v1309_v36 = vrot.slane %v5886_v5, 2 }
  0x72   : > { %5035 = vmatprep.mubr.msk.f32.mxu1 %vm481_vm2, %v6171_v31 }
  0x73   : > { %v6530_v43 = vsel %vm1261_vm3, %v1307_v33, %v1309_v36  ;;  %v6536_v56 = vsel %vm1261_vm3, %v1309_v36, %v1311_v9 }
  0x74   : > { %5110 = vmatmul.mubr.msk.f32.gmra.mxu0 %vm481_vm2, %v6498_v3  ;;  %8172 = vst [vmem:[#allocation69_spill] sm:$0xff] %v6530_v43  ;;  %8173 = vst [vmem:[#allocation70_spill] sm:$0xff] %v6536_v56  ;;  %v1315_v3 = vrot.slane %v5907_v16, 2 }
  0x75   : > { %5036 = vmatmul.mubr.msk.f32.gmra.mxu1 %vm481_vm2, %v6181_v44  ;;  %5112 = vmatprep.mubr.msk.f32.mxu0 %vm481_vm2, %v6504_v54  ;;  %v1313_v54 = vrot.slane %v5898_v11, 2 }
  0x76   : > { %5038 = vmatprep.mubr.msk.f32.mxu1 %vm481_vm2, %v6207_v46 }
  0x77   : > { %v6546_v33 = vsel %vm1261_vm3, %v1311_v9, %v1313_v54  ;;  %v6552_v36 = vsel %vm1261_vm3, %v1313_v54, %v1315_v3 }
  0x78   : > { %5113 = vmatmul.mubr.msk.f32.gmra.mxu0 %vm481_vm2, %v6514_v6  ;;  %8174 = vst [vmem:[#allocation71_spill] sm:$0xff] %v6546_v33  ;;  %8175 = vst [vmem:[#allocation72_spill] sm:$0xff] %v6552_v36  ;;  %v1319_v6 = vrot.slane %v5933_v27, 2 }
  0x79   : > { %5039 = vmatmul.mubr.msk.f32.gmra.mxu1 %vm481_vm2, %v6217_v24  ;;  %5115 = vmatprep.mubr.msk.f32.mxu0 %vm481_vm2, %v6520_v40  ;;  %v1317_v40 = vrot.slane %v5916_v21, 2 }
  0x7a   : > { %5041 = vmatprep.mubr.msk.f32.mxu1 %vm481_vm2, %v6245_v63 }
  0x7b   : > { %v6562_v9 = vsel %vm1261_vm3, %v1315_v3, %v1317_v40  ;;  %v6568_v54 = vsel %vm1261_vm3, %v1317_v40, %v1319_v6 }
  0x7c   : > { %5116 = vmatmul.mubr.msk.f32.gmra.mxu0 %vm481_vm2, %v6530_v43  ;;  %8176 = vst [vmem:[#allocation73_spill] sm:$0xff] %v6562_v9  ;;  %8177 = vst [vmem:[#allocation74_spill] sm:$0xff] %v6568_v54  ;;  %v1323_v43 = vrot.slane %v5954_v35, 2 }
  0x7d   : > { %5042 = vmatmul.mubr.msk.f32.gmra.mxu1 %vm481_vm2, %v6255_v30  ;;  %5118 = vmatprep.mubr.msk.f32.mxu0 %vm481_vm2, %v6536_v56  ;;  %v1321_v56 = vrot.slane %v5939_v29, 2 }
  0x7e   : > { %5044 = vmatprep.mubr.msk.f32.mxu1 %vm481_vm2, %v5886_v5 }
  0x7f   : > { %v6578_v3 = vsel %vm1261_vm3, %v1319_v6, %v1321_v56  ;;  %v6584_v40 = vsel %vm1261_vm3, %v1321_v56, %v1323_v43 }
  0x80   : > { %5119 = vmatmul.mubr.msk.f32.gmra.mxu0 %vm481_vm2, %v6546_v33  ;;  %8178 = vst [vmem:[#allocation75_spill] sm:$0xff] %v6578_v3  ;;  %8179 = vst [vmem:[#allocation76_spill] sm:$0xff] %v6584_v40  ;;  %v1327_v33 = vrot.slane %v6004_v50, 2 }
  0x81   : > { %5045 = vmatmul.mubr.msk.f32.gmra.mxu1 %vm481_vm2, %v5891_v8  ;;  %5121 = vmatprep.mubr.msk.f32.mxu0 %vm481_vm2, %v6552_v36  ;;  %v1325_v36 = vrot.slane %v5994_v48, 2 }
  0x82   : > { %5047 = vmatprep.mubr.msk.f32.mxu1 %vm481_vm2, %v5898_v11 }
  0x83   : > { %v6594_v6 = vsel %vm1261_vm3, %v1323_v43, %v1325_v36  ;;  %v6600_v56 = vsel %vm1261_vm3, %v1325_v36, %v1327_v33 }
  0x84   : > { %5122 = vmatmul.mubr.msk.f32.gmra.mxu0 %vm481_vm2, %v6562_v9  ;;  %8180 = vst [vmem:[#allocation77_spill] sm:$0xff] %v6594_v6  ;;  %8181 = vst [vmem:[#allocation78_spill] sm:$0xff] %v6600_v56  ;;  %v1331_v9 = vrot.slane %v6042_v62, 2 }
  0x85   : > { %5048 = vmatmul.mubr.msk.f32.gmra.mxu1 %vm481_vm2, %v5907_v16  ;;  %5124 = vmatprep.mubr.msk.f32.mxu0 %vm481_vm2, %v6568_v54  ;;  %v1329_v54 = vrot.slane %v6034_v60, 2 }
  0x86   : > { %5050 = vmatprep.mubr.msk.f32.mxu1 %vm481_vm2, %v5916_v21 }
  0x87   : > { %v6610_v43 = vsel %vm1261_vm3, %v1327_v33, %v1329_v54  ;;  %v6616_v36 = vsel %vm1261_vm3, %v1329_v54, %v1331_v9 }
  0x88   : > { %5125 = vmatmul.mubr.msk.f32.gmra.mxu0 %vm481_vm2, %v6578_v3  ;;  %8182 = vst [vmem:[#allocation79_spill] sm:$0xff] %v6610_v43  ;;  %8183 = vst [vmem:[#allocation80_spill] sm:$0xff] %v6616_v36  ;;  %v1335_v3 = vrot.slane %v6078_v19, 2 }
  0x89   : > { %5051 = vmatmul.mubr.msk.f32.gmra.mxu1 %vm481_vm2, %v5933_v27  ;;  %5127 = vmatprep.mubr.msk.f32.mxu0 %vm481_vm2, %v6584_v40  ;;  %v1333_v40 = vrot.slane %v6070_v17, 2 }
  0x8a   : > { %5053 = vmatprep.mubr.msk.f32.mxu1 %vm481_vm2, %v5939_v29 }
  0x8b   : > { %v6626_v33 = vsel %vm1261_vm3, %v1331_v9, %v1333_v40  ;;  %v6632_v54 = vsel %vm1261_vm3, %v1333_v40, %v1335_v3 }
  0x8c   : > { %5128 = vmatmul.mubr.msk.f32.gmra.mxu0 %vm481_vm2, %v6594_v6  ;;  %8184 = vst [vmem:[#allocation81_spill] sm:$0xff] %v6626_v33  ;;  %8185 = vst [vmem:[#allocation82_spill] sm:$0xff] %v6632_v54  ;;  %v1339_v6 = vrot.slane %v6114_v55, 2 }
  0x8d   : > { %5054 = vmatmul.mubr.msk.f32.gmra.mxu1 %vm481_vm2, %v5954_v35  ;;  %5130 = vmatprep.mubr.msk.f32.mxu0 %vm481_vm2, %v6600_v56  ;;  %v1337_v56 = vrot.slane %v6106_v47, 2 }
  0x8e   : > { %5056 = vmatprep.mubr.msk.f32.mxu1 %vm481_vm2, %v5994_v48 }
  0x8f   : > { %v6642_v9 = vsel %vm1261_vm3, %v1335_v3, %v1337_v56  ;;  %v6648_v40 = vsel %vm1261_vm3, %v1337_v56, %v1339_v6 }
  0x90   : > { %5131 = vmatmul.mubr.msk.f32.gmra.mxu0 %vm481_vm2, %v6610_v43  ;;  %8186 = vst [vmem:[#allocation83_spill] sm:$0xff] %v6642_v9  ;;  %8187 = vst [vmem:[#allocation84_spill] sm:$0xff] %v6648_v40  ;;  %v1343_v43 = vrot.slane %v6150_v26, 2 }
  0x91   : > { %5057 = vmatmul.mubr.msk.f32.gmra.mxu1 %vm481_vm2, %v6004_v50  ;;  %5133 = vmatprep.mubr.msk.f32.mxu0 %vm481_vm2, %v6616_v36  ;;  %v1341_v36 = vrot.slane %v6142_v58, 2 }
  0x92   : > { %5059 = vmatprep.mubr.msk.f32.mxu1 %vm481_vm2, %v6034_v60 }
  0x93   : > { %v6658_v3 = vsel %vm1261_vm3, %v1339_v6, %v1341_v36  ;;  %v6664_v56 = vsel %vm1261_vm3, %v1341_v36, %v1343_v43 }
  0x94   : > { %5134 = vmatmul.mubr.msk.f32.gmra.mxu0 %vm481_vm2, %v6626_v33  ;;  %8188 = vst [vmem:[#allocation85_spill] sm:$0xff] %v6658_v3  ;;  %8189 = vst [vmem:[#allocation86_spill] sm:$0xff] %v6664_v56  ;;  %v1347_v33 = vrot.slane %v6186_v59, 2 }
  0x95   : > { %5060 = vmatmul.mubr.msk.f32.gmra.mxu1 %vm481_vm2, %v6042_v62  ;;  %5136 = vmatprep.mubr.msk.f32.mxu0 %vm481_vm2, %v6632_v54  ;;  %v1345_v54 = vrot.slane %v6178_v23, 2 }
  0x96   : > { %5062 = vmatprep.mubr.msk.f32.mxu1 %vm481_vm2, %v6070_v17 }
  0x97   : > { %v6674_v6 = vsel %vm1261_vm3, %v1343_v43, %v1345_v54  ;;  %v6680_v36 = vsel %vm1261_vm3, %v1345_v54, %v1347_v33 }
  0x98   : > { %5137 = vmatmul.mubr.msk.f32.gmra.mxu0 %vm481_vm2, %v6642_v9  ;;  %8190 = vst [vmem:[#allocation87_spill] sm:$0xff] %v6680_v36  ;;  %v8191_v9 = vld [vmem:[#allocation36_spill] sm:$0xff] }
  0x99   : > { %5063 = vmatmul.mubr.msk.f32.gmra.mxu1 %vm481_vm2, %v6078_v19  ;;  %5139 = vmatprep.mubr.msk.f32.mxu0 %vm481_vm2, %v6648_v40  ;;  %v1349_v40 = vrot.slane %v6214_v38, 2  ;;  %v1351_v10 = vrot.slane %v8191_v9, 2 }
  0x9a   : > { %5065 = vmatprep.mubr.msk.f32.mxu1 %vm481_vm2, %v6106_v47 }
  0x9b   : > { %v6690_v43 = vsel %vm1261_vm3, %v1347_v33, %v1349_v40  ;;  %v6696_v54 = vsel %vm1261_vm3, %v1349_v40, %v1351_v10 }
  0x9c   : > { %5140 = vmatmul.mubr.msk.f32.gmra.mxu0 %vm481_vm2, %v6658_v3  ;;  %v1355_v3 = vrot.slane %v6260_v25, 2 }
  0x9d   : > { %5066 = vmatmul.mubr.msk.f32.gmra.mxu1 %vm481_vm2, %v6114_v55  ;;  %5142 = vmatprep.mubr.msk.f32.mxu0 %vm481_vm2, %v6664_v56  ;;  %v1353_v56 = vrot.slane %v6252_v51, 2 }
  0x9e   : > { %5068 = vmatprep.mubr.msk.f32.mxu1 %vm481_vm2, %v6142_v58 }
  0x9f   : > { %v6706_v33 = vsel %vm1261_vm3, %v1351_v10, %v1353_v56  ;;  %v6712_v40 = vsel %vm1261_vm3, %v1353_v56, %v1355_v3  ;;  %v8193_v56 = vld [vmem:[#allocation8_spill] sm:$0xff] }
  0xa0   : > { %5143 = vmatmul.mubr.msk.f32.gmra.mxu0 %vm481_vm2, %v6674_v6  ;;  %8192 = vst [vmem:[#allocation36_spill] sm:$0xff] %v6712_v40 }
  0xa1   : > { %5069 = vmatmul.mubr.msk.f32.gmra.mxu1 %vm481_vm2, %v6150_v26  ;;  %5145 = vmatprep.mubr.msk.f32.mxu0 %vm481_vm2, %v6680_v36  ;;  %v8092_v36 = vrot.slane %v6290_v1, 2 }
  0xa2   : > { %5071 = vmatprep.mubr.msk.f32.mxu1 %vm481_vm2, %v6178_v23 }
  0xa3   : > { %v6723_v10 = vsel %vm1261_vm3, %v1355_v3, %v8092_v36  ;;  %v6740_v3 = vld [vmem:[%s7933_s2 + $0x1c] sm:$0x7]  ;;  %v8208_v36 = vld [vmem:[#allocation39_spill] sm:$0xff] }
  0xa4   : > { %5146 = vmatmul.mubr.msk.f32.gmra.mxu0 %vm481_vm2, %v6690_v43 }
  0xa5   : > { %5072 = vmatmul.mubr.msk.f32.gmra.mxu1 %vm481_vm2, %v6186_v59  ;;  %5148 = vmatprep.mubr.msk.f32.mxu0 %vm481_vm2, %v6696_v54 }
  0xa6   : > { %5074 = vmatprep.mubr.msk.f32.mxu1 %vm481_vm2, %v6214_v38 }
  0xa8   : > { %5149 = vmatmul.mubr.msk.f32.gmra.mxu0 %vm481_vm2, %v6706_v33 }
  0xa9   : > { %5075 = vmatmul.mubr.msk.f32.gmra.mxu1 %vm481_vm2, %v8191_v9  ;;  %5151 = vmatprep.mubr.msk.f32.mxu0 %vm481_vm2, %v6712_v40  ;;  %v8194_v40 = vld [vmem:[#allocation10_spill] sm:$0xff] }
  0xaa   : > { %5077 = vmatprep.mubr.msk.f32.mxu1 %vm481_vm2, %v6252_v51 }
  0xac   : > { %5152 = vmatmul.mubr.msk.f32.gmra.mxu0 %vm481_vm2, %v6723_v10 }
  0xad   : > { %5078 = vmatmul.mubr.msk.f32.gmra.mxu1 %vm481_vm2, %v6260_v25  ;;  %5230 = vmatprep.mubr.msk.f32.mxu0 %vm481_vm2, %v8193_v56  ;;  %v6749_v56 = vld [vmem:[%s7933_s2 + $0x20] sm:$0x7] }
  0xae   : > { %5156 = vmatprep.mubr.msk.f32.mxu1 %vm481_vm2, %v5904_v15  ;;  %v8195_v15 = vld [vmem:[#allocation12_spill] sm:$0xff] }
  0xb0   : > { %5231 = vmatmul.mubr.msk.f32.vlgmr.msra.gmra.mxu0 %vm481_vm2, %v8194_v40  ;;  %v8200_v40 = vld [vmem:[#allocation22_spill] sm:$0xff] }
  0xb1   : > { %5157 = vmatmul.mubr.msk.f32.vlgmr.msra.gmra.mxu1 %vm481_vm2, %v5913_v20  ;;  %5377 = vmatpush3.msk.msra.mxu0 %vm578_vm0, %v6364_v41  ;;  %v8196_v20 = vld [vmem:[#allocation14_spill] sm:$0xff]  ;;  %v8197_v41 = vld [vmem:[#allocation16_spill] sm:$0xff] }
  0xb2   : > { %5303 = vmatpush3.msk.msra.mxu1 %vm578_vm0, %v6351_v53  ;;  %5159 = vmatprep.mubr.msk.f32.mxu1 %vm481_vm2, %v5919_v22  ;;  %v8198_v22 = vld [vmem:[#allocation18_spill] sm:$0xff]  ;;  %v8199_v53 = vld [vmem:[#allocation20_spill] sm:$0xff] }
  0xb3   : > { %5233 = vmatprep.mubr.msk.f32.mxu0 %vm481_vm2, %v8195_v15  ;;  %5450 = vmatprep.subr.msk.mxu1 %vm578_vm0, %v6740_v3  ;;  %v8207_v15 = vld [vmem:[#allocation37_spill] sm:$0xff] }
  0xb4   : > { %5234 = vmatmul.mubr.msk.f32.gmra.mxu0 %vm481_vm2, %v8196_v20  ;;  %5524 = vmatprep.subr.msk.mxu0 %vm578_vm0, %v6749_v56  ;;  %v5660_v20 = vld [vmem:[%s5877_s13 + $0x30] sm:$0xff] }
  0xb5   : > { %5160 = vmatmul.mubr.msk.f32.gmra.mxu1 %vm481_vm2, %v5936_v28  ;;  %5236 = vmatprep.mubr.msk.f32.mxu0 %vm481_vm2, %v8197_v41  ;;  %v8201_v28 = vld [vmem:[#allocation24_spill] sm:$0xff] }
  0xb6   : > { %5162 = vmatprep.mubr.msk.f32.mxu1 %vm481_vm2, %v5951_v34  ;;  %v8202_v34 = vld [vmem:[#allocation26_spill] sm:$0xff] }
  0xb8   : > { %5237 = vmatmul.mubr.msk.f32.gmra.mxu0 %vm481_vm2, %v8198_v22 }
  0xb9   : > { %5163 = vmatmul.mubr.msk.f32.gmra.mxu1 %vm481_vm2, %v5985_v45  ;;  %5239 = vmatprep.mubr.msk.f32.mxu0 %vm481_vm2, %v8199_v53  ;;  %v8203_v45 = vld [vmem:[#allocation28_spill] sm:$0xff] }
  0xba   : > { %5165 = vmatprep.mubr.msk.f32.mxu1 %vm481_vm2, %v5997_v49  ;;  %v8204_v49 = vld [vmem:[#allocation30_spill] sm:$0xff] }
  0xbc   : > { %5240 = vmatmul.mubr.msk.f32.gmra.mxu0 %vm481_vm2, %v8200_v40 }
  0xbd   : > { %5166 = vmatmul.mubr.msk.f32.gmra.mxu1 %vm481_vm2, %v6027_v57  ;;  %5242 = vmatprep.mubr.msk.f32.mxu0 %vm481_vm2, %v8201_v28  ;;  %v8205_v57 = vld [vmem:[#allocation32_spill] sm:$0xff] }
  0xbe   : > { %5168 = vmatprep.mubr.msk.f32.mxu1 %vm481_vm2, %v6037_v61  ;;  %v8206_v61 = vld [vmem:[#allocation34_spill] sm:$0xff] }
  0xc0   : > { %5243 = vmatmul.mubr.msk.f32.gmra.mxu0 %vm481_vm2, %v8202_v34  ;;  %v6961_v34 = vld [vmem:[%s6265_s5 + $0x10] sm:$0xff] }
  0xc1   : > { %5169 = vmatmul.mubr.msk.f32.gmra.mxu1 %vm481_vm2, %v6063_v12  ;;  %5245 = vmatprep.mubr.msk.f32.mxu0 %vm481_vm2, %v8203_v45 }
  0xc2   : > { %5171 = vmatprep.mubr.msk.f32.mxu1 %vm481_vm2, %v6073_v18 }
  0xc4   : > { %5246 = vmatmul.mubr.msk.f32.gmra.mxu0 %vm481_vm2, %v8204_v49  ;;  %v8225_v49 = vld [vmem:[#allocation31_spill] sm:$0xff] }
  0xc5   : > { %5172 = vmatmul.mubr.msk.f32.gmra.mxu1 %vm481_vm2, %v6099_v39  ;;  %5248 = vmatprep.mubr.msk.f32.mxu0 %vm481_vm2, %v8205_v57  ;;  %v8209_v57 = vld [vmem:[#allocation41_spill] sm:$0xff] }
  0xc6   : > { %5174 = vmatprep.mubr.msk.f32.mxu1 %vm481_vm2, %v6109_v52 }
  0xc8   : > { %5249 = vmatmul.mubr.msk.f32.gmra.mxu0 %vm481_vm2, %v8206_v61  ;;  %v8210_v61 = vld [vmem:[#allocation43_spill] sm:$0xff] }
  0xc9   : > { %5175 = vmatmul.mubr.msk.f32.gmra.mxu1 %vm481_vm2, %v6135_v13  ;;  %5251 = vmatprep.mubr.msk.f32.mxu0 %vm481_vm2, %v8207_v15 }
  0xca   : > { %5177 = vmatprep.mubr.msk.f32.mxu1 %vm481_vm2, %v6145_v14 }
  0xcc   : > { %5252 = vmatmul.mubr.msk.f32.gmra.mxu0 %vm481_vm2, %v8208_v36  ;;  %v8219_v36 = vld [vmem:[#allocation19_spill] sm:$0xff] }
  0xcd   : > { %5178 = vmatmul.mubr.msk.f32.gmra.mxu1 %vm481_vm2, %v6171_v31  ;;  %5254 = vmatprep.mubr.msk.f32.mxu0 %vm481_vm2, %v8209_v57 }
  0xce   : > { %5180 = vmatprep.mubr.msk.f32.mxu1 %vm481_vm2, %v6181_v44 }
  0xd0   : > { %5255 = vmatmul.mubr.msk.f32.gmra.mxu0 %vm481_vm2, %v8210_v61  ;;  %v8211_v61 = vld [vmem:[#allocation5_spill] sm:$0xff] }
  0xd1   : > { %5181 = vmatmul.mubr.msk.f32.gmra.mxu1 %vm481_vm2, %v6207_v46  ;;  %5257 = vmatprep.mubr.msk.f32.mxu0 %vm481_vm2, %v6299_v32  ;;  %v8212_v32 = vld [vmem:[#allocation6_spill] sm:$0xff] }
  0xd2   : > { %5183 = vmatprep.mubr.msk.f32.mxu1 %vm481_vm2, %v6217_v24 }
  0xd4   : > { %5258 = vmatmul.mubr.msk.f32.gmra.mxu0 %vm481_vm2, %v6308_v0  ;;  %v8213_v0 = vld [vmem:[#allocation7_spill] sm:$0xff] }
  0xd5   : > { %5184 = vmatmul.mubr.msk.f32.gmra.mxu1 %vm481_vm2, %v6245_v63  ;;  %5260 = vmatprep.mubr.msk.f32.mxu0 %vm481_vm2, %v6325_v7  ;;  %v8214_v7 = vld [vmem:[#allocation9_spill] sm:$0xff] }
  0xd6   : > { %5186 = vmatprep.mubr.msk.f32.mxu1 %vm481_vm2, %v6255_v30 }
  0xd8   : > { %5261 = vmatmul.mubr.msk.f32.gmra.mxu0 %vm481_vm2, %v8211_v61 }
  0xd9   : > { %5187 = vmatmul.mubr.msk.f32.gmra.mxu1 %vm481_vm2, %v5886_v5  ;;  %5263 = vmatprep.mubr.msk.f32.mxu0 %vm481_vm2, %v8212_v32  ;;  %v8215_v5 = vld [vmem:[#allocation11_spill] sm:$0xff] }
  0xda   : > { %5189 = vmatprep.mubr.msk.f32.mxu1 %vm481_vm2, %v5891_v8  ;;  %v8216_v8 = vld [vmem:[#allocation13_spill] sm:$0xff] }
  0xdc   : > { %5264 = vmatmul.mubr.msk.f32.gmra.mxu0 %vm481_vm2, %v8213_v0  ;;  %v8217_v0 = vld [vmem:[#allocation15_spill] sm:$0xff] }
  0xdd   : > { %5190 = vmatmul.mubr.msk.f32.gmra.mxu1 %vm481_vm2, %v5898_v11  ;;  %5266 = vmatprep.mubr.msk.f32.mxu0 %vm481_vm2, %v8214_v7 }
  0xde   : > { %5192 = vmatprep.mubr.msk.f32.mxu1 %vm481_vm2, %v5907_v16 }
  0xe0   : > { %v6849_v61 = vpop.f32.mrf.mxu0  ;;  %5267 = vmatmul.mubr.msk.f32.gmra.mxu0 %vm481_vm2, %v8215_v5 }
  0xe1   : > { %v6853_v32 = vpop.f32.mrf.mxu1  ;;  %5193 = vmatmul.mubr.msk.f32.gmra.mxu1 %vm481_vm2, %v5916_v21  ;;  %5269 = vmatprep.mubr.msk.f32.mxu0 %vm481_vm2, %v8216_v8  ;;  %v8218_v21 = vld [vmem:[#allocation17_spill] sm:$0xff] }
  0xe2   : > { %v6859_v11 = vpop.f32.mrf.mxu0  ;;  %5195 = vmatprep.mubr.msk.f32.mxu1 %vm481_vm2, %v5933_v27 }
  0xe3   : > { %v6863_v7 = vpop.f32.mrf.mxu1 }
  0xe4   : > { %v6865_v16 = vpop.f32.mrf.mxu0  ;;  %5270 = vmatmul.mubr.msk.f32.gmra.mxu0 %vm481_vm2, %v8217_v0  ;;  %v8220_v0 = vld [vmem:[#allocation21_spill] sm:$0xff] }
  0xe5   : > { %v6869_v5 = vpop.f32.mrf.mxu1  ;;  %5196 = vmatmul.mubr.msk.f32.gmra.mxu1 %vm481_vm2, %v5939_v29  ;;  %5272 = vmatprep.mubr.msk.f32.mxu0 %vm481_vm2, %v8218_v21 }
  0xe6   : > { %v658_v8 = vpop.f32.mrf.mxu0  ;;  %5198 = vmatprep.mubr.msk.f32.mxu1 %vm481_vm2, %v5954_v35 }
  0xe7   : > { %v770_v27 = vpop.f32.mrf.mxu1 }
  0xe8   : > { %v4942_v57 = vpop.f32.mrf.mxu0  ;;  %5273 = vmatmul.mubr.msk.f32.gmra.mxu0 %vm481_vm2, %v8219_v36  ;;  %v8223_v36 = vld [vmem:[#allocation27_spill] sm:$0xff] }
  0xe9   : > { %v4978_v15 = vpop.f32.mrf.mxu1  ;;  %5199 = vmatmul.mubr.msk.f32.gmra.mxu1 %vm481_vm2, %v5994_v48  ;;  %5275 = vmatprep.mubr.msk.f32.mxu0 %vm481_vm2, %v8220_v0  ;;  %v8221_v57 = vld [vmem:[#allocation23_spill] sm:$0xff]  ;;  %v8222_v48 = vld [vmem:[#allocation25_spill] sm:$0xff] }
  0xea   : > { %v6883_v29 = vpop.f32.mrf.mxu0  ;;  %5201 = vmatprep.mubr.msk.f32.mxu1 %vm481_vm2, %v6004_v50 }
  0xeb   : > { %v6887_v8 = vpop.f32.mrf.mxu1 }
  0xec   : > { %v6889_v35 = vpop.f32.mrf.mxu0  ;;  %5276 = vmatmul.mubr.msk.f32.gmra.mxu0 %vm481_vm2, %v8221_v57 }
  0xed   : > { %v6893_v27 = vpop.f32.mrf.mxu1  ;;  %5202 = vmatmul.mubr.msk.f32.gmra.mxu1 %vm481_vm2, %v6034_v60  ;;  %5278 = vmatprep.mubr.msk.f32.mxu0 %vm481_vm2, %v8222_v48  ;;  %v8224_v60 = vld [vmem:[#allocation29_spill] sm:$0xff] }
  0xee   : > { %v6899_v15 = vpop.f32.mrf.mxu0  ;;  %5204 = vmatprep.mubr.msk.f32.mxu1 %vm481_vm2, %v6042_v62 }
  0xef   : > { %v6903_v50 = vpop.f32.mrf.mxu1 }
  0xf0   : > { %v6905_v0 = vpop.f32.mrf.mxu0  ;;  %5279 = vmatmul.mubr.msk.f32.gmra.mxu0 %vm481_vm2, %v8223_v36  ;;  %v8226_v36 = vld [vmem:[#allocation33_spill] sm:$0xff] }
  0xf1   : > { %v6909_v57 = vpop.f32.mrf.mxu1  ;;  %5205 = vmatmul.mubr.msk.f32.gmra.mxu1 %vm481_vm2, %v6070_v17  ;;  %5281 = vmatprep.mubr.msk.f32.mxu0 %vm481_vm2, %v8224_v60 }
  0xf2   : > { %v686_v48 = vpop.f32.mrf.mxu0  ;;  %5207 = vmatprep.mubr.msk.f32.mxu1 %vm481_vm2, %v6078_v19 }
  0xf3   : > { %v798_v62 = vpop.f32.mrf.mxu1 }
  0xf4   : > { %v4951_v21 = vpop.f32.mrf.mxu0  ;;  %5282 = vmatmul.mubr.msk.f32.gmra.mxu0 %vm481_vm2, %v8225_v49  ;;  %v8229_v49 = vld [vmem:[#allocation40_spill] sm:$0xff] }
  0xf5   : > { %v4987_v45 = vpop.f32.mrf.mxu1  ;;  %5208 = vmatmul.mubr.msk.f32.gmra.mxu1 %vm481_vm2, %v6106_v47  ;;  %5284 = vmatprep.mubr.msk.f32.mxu0 %vm481_vm2, %v8226_v36  ;;  %v8227_v21 = vld [vmem:[#allocation35_spill] sm:$0xff]  ;;  %v8228_v47 = vld [vmem:[#allocation38_spill] sm:$0xff] }
  0xf6   : > { %v6923_v17 = vpop.f32.mrf.mxu0  ;;  %5210 = vmatprep.mubr.msk.f32.mxu1 %vm481_vm2, %v6114_v55 }
  0xf7   : > { %v6927_v48 = vpop.f32.mrf.mxu1 }
  0xf8   : > { %v6929_v19 = vpop.f32.mrf.mxu0  ;;  %5285 = vmatmul.mubr.msk.f32.gmra.mxu0 %vm481_vm2, %v8227_v21 }
  0xf9   : > { %v6933_v45 = vpop.f32.mrf.mxu1  ;;  %5211 = vmatmul.mubr.msk.f32.gmra.mxu1 %vm481_vm2, %v6142_v58  ;;  %5287 = vmatprep.mubr.msk.f32.mxu0 %vm481_vm2, %v8228_v47  ;;  %v8230_v58 = vld [vmem:[#allocation42_spill] sm:$0xff] }
  0xfa   : > { %v6939_v62 = vpop.f32.mrf.mxu0  ;;  %5213 = vmatprep.mubr.msk.f32.mxu1 %vm481_vm2, %v6150_v26  ;;  %v6958_v26 = vld [vmem:[%s6265_s5 + $0x8] sm:$0xff] }
  0xfb   : > { %v6943_v55 = vpop.f32.mrf.mxu1 }
  0xfc   : > { %v6945_v36 = vpop.f32.mrf.mxu0  ;;  %5288 = vmatmul.mubr.msk.f32.gmra.mxu0 %vm481_vm2, %v8229_v49  ;;  %v8231_v49 = vld [vmem:[#allocation44_spill] sm:$0xff] }
  0xfd   : > { %v6949_v21 = vpop.f32.mrf.mxu1  ;;  %5214 = vmatmul.mubr.msk.f32.gmra.mxu1 %vm481_vm2, %v6178_v23  ;;  %5290 = vmatprep.mubr.msk.f32.mxu0 %vm481_vm2, %v8230_v58  ;;  %v8232_v23 = vld [vmem:[#allocation46_spill] sm:$0xff] }
  0xfe   : > { %v714_v47 = vpop.f32.mrf.mxu0  ;;  %5216 = vmatprep.mubr.msk.f32.mxu1 %vm481_vm2, %v6186_v59  ;;  %v2118_v59 = vrot.slane %v6961_v34, 1 }
  0xff   : > { %v826_v60 = vpop.f32.mrf.mxu1  ;;  %v2116_v47 = vrot.slane %v6958_v26, 1 }
 0x100   : > { %v4960_v28 = vpop.f32.mrf.mxu0  ;;  %5291 = vmatmul.mubr.msk.f32.gmra.mxu0 %vm481_vm2, %v8231_v49 }
 0x101   : > { %v4996_v40 = vpop.f32.mrf.mxu1  ;;  %5217 = vmatmul.mubr.msk.f32.gmra.mxu1 %vm481_vm2, %v6214_v38  ;;  %5293 = vmatprep.mubr.msk.f32.mxu0 %vm481_vm2, %v8232_v23  ;;  %v6976_v28 = vld [vmem:[%s6265_s5 + $0x18] sm:$0xff] }
 0x102   : > { %v6970_v58 = vpop.f32.mrf.mxu0  ;;  %5219 = vmatprep.mubr.msk.f32.mxu1 %vm481_vm2, %v8191_v9  ;;  %8233 = vst [vmem:[#allocation8_spill] sm:$0xff] %v6976_v28  ;;  %v8234_v9 = vrot.slane %v6290_v1, 1  ;;  %v8100_v49 = vrot.slane %v6976_v28, 1 }
 0x103   : > { %v6978_v60 = vpop.f32.mrf.mxu1 }
 0x104   : > { %v6980_v40 = vpop.f32.mrf.mxu0  ;;  %5294 = vmatmul.mubr.msk.f32.gmra.mxu0 %vm481_vm2, %v6313_v42  ;;  %v6993_v23 = vsel %vm383_vm1, %v8234_v9, %v2116_v47  ;;  %v7001_v42 = vsel %vm383_vm1, %v2116_v47, %v2118_v59 }
 0x105   : > { %v6984_v38 = vpop.f32.mrf.mxu1  ;;  %5220 = vmatmul.mubr.msk.f32.gmra.mxu1 %vm481_vm2, %v6252_v51  ;;  %5296 = vmatprep.mubr.msk.f32.mxu0 %vm481_vm2, %v6332_v37  ;;  %8235 = vst [vmem:[#allocation10_spill] sm:$0xff] %v6993_v23  ;;  %8236 = vst [vmem:[#allocation12_spill] sm:$0xff] %v7001_v42 }
 0x106   : > { %v6996_v53 = vpop.f32.mrf.mxu0  ;;  %5222 = vmatprep.mubr.msk.f32.mxu1 %vm481_vm2, %v6260_v25  ;;  %v7018_v25 = vsel %vm383_vm1, %v2118_v59, %v8100_v49 }
 0x107   : > { %v7003_v51 = vpop.f32.mrf.mxu1  ;;  %8238 = vst [vmem:[#allocation89_spill] sm:$0xff] %v7018_v25 }
 0x108   : > { %v7005_v22 = vpop.f32.mrf.mxu0  ;;  %5297 = vmatmul.mubr.msk.f32.gmra.mxu0 %vm481_vm2, %v6993_v23 }
 0x109   : > { %v7009_v9 = vpop.f32.mrf.mxu1  ;;  %5223 = vmatmul.mubr.msk.f32.gmra.mxu1 %vm481_vm2, %v6290_v1  ;;  %5299 = vmatprep.mubr.msk.f32.mxu0 %vm481_vm2, %v7001_v42 }
 0x10a   : > { %8237 = vst [vmem:[#allocation88_spill] sm:$0xff] %v7009_v9  ;;  %v742_v47 = vpop.f32.mrf.mxu0  ;;  %5225 = vmatprep.mubr.msk.f32.mxu1 %vm481_vm2, %v6958_v26 }
 0x10b   : > { %v854_v37 = vpop.f32.mrf.mxu1  ;;  %v8240_v47 = vld [vmem:[#allocation51_spill] sm:$0xff] }
 0x10c   : > { %v4969_v23 = vpop.f32.mrf.mxu0  ;;  %5300 = vmatmul.mubr.msk.f32.gmra.mxu0 %vm481_vm2, %v7018_v25  ;;  %v5662_v25 = vld [vmem:[%s5877_s13 + $0x40] sm:$0xff] }
 0x10d   : > { %v5005_v41 = vpop.f32.mrf.mxu1  ;;  %5226 = vmatmul.mubr.msk.f32.gmra.mxu1 %vm481_vm2, %v6961_v34  ;;  %5378 = vmatprep.mubr.msk.f32.mxu0 %vm481_vm2, %v5660_v20  ;;  %v5661_v23 = vld [vmem:[%s5877_s13 + $0x38] sm:$0xff] }
 0x10e   : > { %v7028_v42 = vpop.f32.mrf.mxu0  ;;  %5304 = vmatprep.mubr.msk.f32.mxu1 %vm481_vm2, %v6358_v2 }
 0x10f   : > { %v7032_v59 = vpop.f32.mrf.mxu1 }
 0x110   : > { %8239 = vst [vmem:[#allocation90_spill] sm:$0xff] %v7032_v59  ;;  %v5084_v37 = vpop.f32.mrf.mxu0  ;;  %5379 = vmatmul.mubr.msk.f32.vlgmr.msra.gmra.mxu0 %vm481_vm2, %v5661_v23 }
 0x111   : > { %v5010_v41 = vpop.f32.mrf.mxu1  ;;  %5305 = vmatmul.mubr.msk.f32.vlgmr.msra.gmra.mxu1 %vm481_vm2, %v6371_v4  ;;  %5525 = vmatpush3.msk.msra.mxu0 %vm578_vm0, %v6749_v56  ;;  %v5663_v56 = vld [vmem:[%s5877_s13 + $0x48] sm:$0xff] }
 0x112   : > { %v1042_v20 = vadd.f32 %v5010_v41, %v6849_v61  ;;  %5451 = vmatpush3.msk.msra.mxu1 %vm578_vm0, %v6740_v3  ;;  %v1524_v2 = vpop.f32.mrf.mxu0  ;;  %5307 = vmatprep.mubr.msk.f32.mxu1 %vm481_vm2, %v8240_v47  ;;  %v8242_v41 = vld [vmem:[#allocation52_spill] sm:$0xff]  ;;  %v5664_v3 = vld [vmem:[%s5877_s13 + $0x50] sm:$0xff] }
 0x113   : > { %v1036_v49 = vpop.f32.mrf.mxu1  ;;  %5381 = vmatprep.mubr.msk.f32.mxu0 %vm481_vm2, %v5662_v25 }
 0x114   : > { %v7047_v23 = vadd.f32 %v5084_v37, %v1042_v20  ;;  %v1037_v4 = vadd.f32 %v1036_v49, %v6859_v11  ;;  %v5087_v59 = vpop.f32.mrf.mxu0  ;;  %5382 = vmatmul.mubr.msk.f32.gmra.mxu0 %vm481_vm2, %v5663_v56  ;;  %v8243_v20 = vld [vmem:[#allocation53_spill] sm:$0xff]  ;;  %v5665_v56 = vld [vmem:[%s5877_s13 + $0x58] sm:$0xff] }
 0x115   : > { %v5013_v61 = vpop.f32.mrf.mxu1  ;;  %5308 = vmatmul.mubr.msk.f32.gmra.mxu1 %vm481_vm2, %v8242_v41  ;;  %5384 = vmatprep.mubr.msk.f32.mxu0 %vm481_vm2, %v5664_v3  ;;  %v8245_v41 = vld [vmem:[#allocation54_spill] sm:$0xff]  ;;  %v8247_v3 = vld [vmem:[#allocation56_spill] sm:$0xff] }
 0x116   : > { %8241 = vst [vmem:[#allocation51_spill] sm:$0xff] %v7047_v23  ;;  %v7056_v47 = vadd.f32 %v1524_v2, %v1037_v4  ;;  %v1051_v25 = vadd.f32 %v5013_v61, %v6865_v16  ;;  %v1534_v37 = vpop.f32.mrf.mxu0  ;;  %5310 = vmatprep.mubr.msk.f32.mxu1 %vm481_vm2, %v8243_v20  ;;  %v8246_v16 = vld [vmem:[#allocation55_spill] sm:$0xff] }
 0x117   : > { %v1046_v49 = vpop.f32.mrf.mxu1  ;;  %v8248_v37 = vld [vmem:[#allocation57_spill] sm:$0xff] }
 0x118   : > { %v7061_v11 = vadd.f32 %v5087_v59, %v1051_v25  ;;  %v5090_v23 = vpop.f32.mrf.mxu0  ;;  %5385 = vmatmul.mubr.msk.f32.gmra.mxu0 %vm481_vm2, %v5665_v56 }
 0x119   : > { %v5016_v9 = vpop.f32.mrf.mxu1  ;;  %5311 = vmatmul.mubr.msk.f32.gmra.mxu1 %vm481_vm2, %v8245_v41  ;;  %5387 = vmatprep.mubr.msk.f32.mxu0 %vm481_vm2, %v6063_v12 }
 0x11a   : > { %8244 = vst [vmem:[#allocation53_spill] sm:$0xff] %v7061_v11  ;;  %v1543_v2 = vpop.f32.mrf.mxu0  ;;  %5313 = vmatprep.mubr.msk.f32.mxu1 %vm481_vm2, %v8246_v16  ;;  %v8249_v11 = vld [vmem:[#allocation58_spill] sm:$0xff] }
 0x11b   : > { %v1055_v4 = vpop.f32.mrf.mxu1 }
 0x11c   : > { %v1056_v61 = vadd.f32 %v1055_v4, %v6883_v29  ;;  %v5093_v59 = vpop.f32.mrf.mxu0  ;;  %5388 = vmatmul.mubr.msk.f32.gmra.mxu0 %vm481_vm2, %v6073_v18 }
 0x11d   : > { %v5019_v23 = vpop.f32.mrf.mxu1  ;;  %5314 = vmatmul.mubr.msk.f32.gmra.mxu1 %vm481_vm2, %v8247_v3  ;;  %5390 = vmatprep.mubr.msk.f32.mxu0 %vm481_vm2, %v6099_v39 }
 0x11e   : > { %v7078_v9 = vadd.f32 %v1543_v2, %v1056_v61  ;;  %v1070_v12 = vadd.f32 %v5019_v23, %v6889_v35  ;;  %v1552_v25 = vpop.f32.mrf.mxu0  ;;  %5316 = vmatprep.mubr.msk.f32.mxu1 %vm481_vm2, %v8248_v37  ;;  %v8250_v61 = vld [vmem:[#allocation59_spill] sm:$0xff] }
 0x11f   : > { %v1064_v29 = vpop.f32.mrf.mxu1 }
 0x120   : > { %v7083_v49 = vadd.f32 %v5093_v59, %v1070_v12  ;;  %v1065_v18 = vadd.f32 %v1064_v29, %v6899_v15  ;;  %v5096_v56 = vpop.f32.mrf.mxu0  ;;  %5391 = vmatmul.mubr.msk.f32.gmra.mxu0 %vm481_vm2, %v6109_v52  ;;  %v8251_v12 = vld [vmem:[#allocation60_spill] sm:$0xff] }
 0x121   : > { %v5022_v4 = vpop.f32.mrf.mxu1  ;;  %5317 = vmatmul.mubr.msk.f32.gmra.mxu1 %vm481_vm2, %v8249_v11  ;;  %5393 = vmatprep.mubr.msk.f32.mxu0 %vm481_vm2, %v6135_v13 }
 0x122   : > { %v7092_v39 = vadd.f32 %v1552_v25, %v1065_v18  ;;  %v1079_v35 = vadd.f32 %v5022_v4, %v6905_v0  ;;  %v1562_v2 = vpop.f32.mrf.mxu0  ;;  %5319 = vmatprep.mubr.msk.f32.mxu1 %vm481_vm2, %v8250_v61  ;;  %v8252_v0 = vld [vmem:[#allocation61_spill] sm:$0xff] }
 0x123   : > { %v1074_v15 = vpop.f32.mrf.mxu1  ;;  %v8254_v2 = vld [vmem:[#allocation63_spill] sm:$0xff] }
 0x124   : > { %v7097_v59 = vadd.f32 %v5096_v56, %v1079_v35  ;;  %v5099_v23 = vpop.f32.mrf.mxu0  ;;  %5394 = vmatmul.mubr.msk.f32.gmra.mxu0 %vm481_vm2, %v6145_v14  ;;  %v8253_v14 = vld [vmem:[#allocation62_spill] sm:$0xff] }
 0x125   : > { %v5025_v52 = vpop.f32.mrf.mxu1  ;;  %5320 = vmatmul.mubr.msk.f32.gmra.mxu1 %vm481_vm2, %v8251_v12  ;;  %5396 = vmatprep.mubr.msk.f32.mxu0 %vm481_vm2, %v6171_v31 }
 0x126   : > { %v1571_v13 = vpop.f32.mrf.mxu0  ;;  %5322 = vmatprep.mubr.msk.f32.mxu1 %vm481_vm2, %v8252_v0 }
 0x127   : > { %v1083_v25 = vpop.f32.mrf.mxu1 }
 0x128   : > { %v1084_v29 = vadd.f32 %v1083_v25, %v6923_v17  ;;  %v5102_v18 = vpop.f32.mrf.mxu0  ;;  %5397 = vmatmul.mubr.msk.f32.gmra.mxu0 %vm481_vm2, %v6181_v44 }
 0x129   : > { %v5028_v56 = vpop.f32.mrf.mxu1  ;;  %5323 = vmatmul.mubr.msk.f32.gmra.mxu1 %vm481_vm2, %v8253_v14  ;;  %5399 = vmatprep.mubr.msk.f32.mxu0 %vm481_vm2, %v6207_v46  ;;  %v8255_v46 = vld [vmem:[#allocation64_spill] sm:$0xff] }
 0x12a   : > { %v7114_v4 = vadd.f32 %v1571_v13, %v1084_v29  ;;  %v1098_v31 = vadd.f32 %v5028_v56, %v6929_v19  ;;  %v1580_v35 = vpop.f32.mrf.mxu0  ;;  %5325 = vmatprep.mubr.msk.f32.mxu1 %vm481_vm2, %v8254_v2  ;;  %v8256_v29 = vld [vmem:[#allocation65_spill] sm:$0xff] }
 0x12b   : > { %v1092_v17 = vpop.f32.mrf.mxu1 }
 0x12c   : > { %v7119_v15 = vadd.f32 %v5102_v18, %v1098_v31  ;;  %v1093_v44 = vadd.f32 %v1092_v17, %v6939_v62  ;;  %v5105_v23 = vpop.f32.mrf.mxu0  ;;  %5400 = vmatmul.mubr.msk.f32.gmra.mxu0 %vm481_vm2, %v6217_v24  ;;  %v8258_v31 = vld [vmem:[#allocation66_spill] sm:$0xff] }
 0x12d   : > { %v5031_v52 = vpop.f32.mrf.mxu1  ;;  %5326 = vmatmul.mubr.msk.f32.gmra.mxu1 %vm481_vm2, %v8255_v46  ;;  %5402 = vmatprep.mubr.msk.f32.mxu0 %vm481_vm2, %v6245_v63  ;;  %v5666_v63 = vld [vmem:[%s5877_s13 + $0xc0] sm:$0xff] }
 0x12e   : > { %v7128_v19 = vadd.f32 %v1580_v35, %v1093_v44  ;;  %v1107_v13 = vadd.f32 %v5031_v52, %v6945_v36  ;;  %v1590_v25 = vpop.f32.mrf.mxu0  ;;  %5328 = vmatprep.mubr.msk.f32.mxu1 %vm481_vm2, %v8256_v29  ;;  %v8259_v35 = vld [vmem:[#allocation67_spill] sm:$0xff]  ;;  %v5667_v52 = vld [vmem:[%s5877_s13 + $0xc8] sm:$0xff] }
 0x12f   : > { %v1102_v62 = vpop.f32.mrf.mxu1  ;;  %v5668_v25 = vld [vmem:[%s5877_s13 + $0xd0] sm:$0xff] }
 0x130   : > { %v7133_v18 = vadd.f32 %v5105_v23, %v1107_v13  ;;  %v5108_v24 = vpop.f32.mrf.mxu0  ;;  %5403 = vmatmul.mubr.msk.f32.gmra.mxu0 %vm481_vm2, %v6255_v30  ;;  %v8260_v13 = vld [vmem:[#allocation68_spill] sm:$0xff] }
 0x131   : > { %v5034_v56 = vpop.f32.mrf.mxu1  ;;  %5329 = vmatmul.mubr.msk.f32.gmra.mxu1 %vm481_vm2, %v8258_v31  ;;  %5405 = vmatprep.mubr.msk.f32.mxu0 %vm481_vm2, %v5666_v63  ;;  %v8262_v63 = vld [vmem:[#allocation69_spill] sm:$0xff] }
 0x132   : > { %8257 = vst [vmem:[#allocation54_spill] sm:$0xff] %v7133_v18  ;;  %v1599_v36 = vpop.f32.mrf.mxu0  ;;  %5331 = vmatprep.mubr.msk.f32.mxu1 %vm481_vm2, %v8259_v35  ;;  %v5669_v35 = vld [vmem:[%s5877_s13 + $0xd8] sm:$0xff] }
 0x133   : > { %v1111_v17 = vpop.f32.mrf.mxu1 }
 0x134   : > { %v1112_v44 = vadd.f32 %v1111_v17, %v6970_v58  ;;  %v5111_v23 = vpop.f32.mrf.mxu0  ;;  %5406 = vmatmul.mubr.msk.f32.gmra.mxu0 %vm481_vm2, %v5667_v52 }
 0x135   : > { %v5037_v30 = vpop.f32.mrf.mxu1  ;;  %5332 = vmatmul.mubr.msk.f32.gmra.mxu1 %vm481_vm2, %v8260_v13  ;;  %5408 = vmatprep.mubr.msk.f32.mxu0 %vm481_vm2, %v5668_v25 }
 0x136   : > { %v7150_v62 = vadd.f32 %v1599_v36, %v1112_v44  ;;  %v1126_v24 = vadd.f32 %v5037_v30, %v6980_v40  ;;  %v1608_v56 = vpop.f32.mrf.mxu0  ;;  %5334 = vmatprep.mubr.msk.f32.mxu1 %vm481_vm2, %v8262_v63  ;;  %v8264_v36 = vld [vmem:[#allocation70_spill] sm:$0xff]  ;;  %v5670_v40 = vld [vmem:[%s5877_s13 + $0xe0] sm:$0xff] }
 0x137   : > { %v1120_v58 = vpop.f32.mrf.mxu1 }
 0x138   : > { %8261 = vst [vmem:[#allocation55_spill] sm:$0xff] %v7150_v62  ;;  %v7155_v17 = vadd.f32 %v5111_v23, %v1126_v24  ;;  %v1121_v52 = vadd.f32 %v1120_v58, %v6996_v53  ;;  %v5114_v18 = vpop.f32.mrf.mxu0  ;;  %5409 = vmatmul.mubr.msk.f32.gmra.mxu0 %vm481_vm2, %v5669_v35  ;;  %v8266_v24 = vld [vmem:[#allocation71_spill] sm:$0xff] }
 0x139   : > { %v5040_v25 = vpop.f32.mrf.mxu1  ;;  %5335 = vmatmul.mubr.msk.f32.gmra.mxu1 %vm481_vm2, %v8264_v36  ;;  %5411 = vmatprep.mubr.msk.f32.mxu0 %vm481_vm2, %v5670_v40  ;;  %v8268_v36 = vld [vmem:[#allocation72_spill] sm:$0xff] }
 0x13a   : > { %8263 = vst [vmem:[#allocation56_spill] sm:$0xff] %v7155_v17  ;;  %v7164_v44 = vadd.f32 %v1608_v56, %v1121_v52  ;;  %v1135_v23 = vadd.f32 %v5040_v25, %v7005_v22  ;;  %v1618_v30 = vpop.f32.mrf.mxu0  ;;  %5337 = vmatprep.mubr.msk.f32.mxu1 %vm481_vm2, %v8266_v24  ;;  %v5671_v17 = vld [vmem:[%s5877_s13 + $0xe8] sm:$0xff]  ;;  %v5672_v56 = vld [vmem:[%s5877_s13 + $0xf0] sm:$0xff]  ;;  %v8269_v52 = vld [vmem:[#allocation73_spill] sm:$0xff] }
 0x13b   : > { %v1130_v53 = vpop.f32.mrf.mxu1  ;;  %v5674_v30 = vld [vmem:[%s5877_s13 + $0x100] sm:$0xff] }
 0x13c   : > { %8265 = vst [vmem:[#allocation57_spill] sm:$0xff] %v7164_v44  ;;  %v7169_v58 = vadd.f32 %v5114_v18, %v1135_v23  ;;  %v5117_v35 = vpop.f32.mrf.mxu0  ;;  %5412 = vmatmul.mubr.msk.f32.gmra.mxu0 %vm481_vm2, %v5671_v17  ;;  %v5673_v23 = vld [vmem:[%s5877_s13 + $0xf8] sm:$0xff]  ;;  %v5675_v44 = vld [vmem:[%s5877_s13 + $0x108] sm:$0xff] }
 0x13d   : > { %v5043_v62 = vpop.f32.mrf.mxu1  ;;  %5338 = vmatmul.mubr.msk.f32.gmra.mxu1 %vm481_vm2, %v8268_v36  ;;  %5414 = vmatprep.mubr.msk.f32.mxu0 %vm481_vm2, %v5672_v56 }
 0x13e   : > { %8267 = vst [vmem:[#allocation58_spill] sm:$0xff] %v7169_v58  ;;  %v1627_v22 = vpop.f32.mrf.mxu0  ;;  %5340 = vmatprep.mubr.msk.f32.mxu1 %vm481_vm2, %v8269_v52  ;;  %v8270_v62 = vld [vmem:[#allocation74_spill] sm:$0xff]  ;;  %v8272_v58 = vld [vmem:[#allocation75_spill] sm:$0xff] }
 0x13f   : > { %v1139_v25 = vpop.f32.mrf.mxu1 }
 0x140   : > { %v1140_v18 = vadd.f32 %v1139_v25, %v7028_v42  ;;  %v5120_v40 = vpop.f32.mrf.mxu0  ;;  %5415 = vmatmul.mubr.msk.f32.gmra.mxu0 %vm481_vm2, %v5673_v23 }
 0x141   : > { %v5046_v17 = vpop.f32.mrf.mxu1  ;;  %5341 = vmatmul.mubr.msk.f32.gmra.mxu1 %vm481_vm2, %v8270_v62  ;;  %5417 = vmatprep.mubr.msk.f32.mxu0 %vm481_vm2, %v5674_v30 }
 0x142   : > { %v7186_v53 = vadd.f32 %v1627_v22, %v1140_v18  ;;  %v1154_v35 = vadd.f32 %v5046_v17, %v6853_v32  ;;  %v1636_v56 = vpop.f32.mrf.mxu0  ;;  %5343 = vmatprep.mubr.msk.f32.mxu1 %vm481_vm2, %v8272_v58  ;;  %v8274_v22 = vld [vmem:[#allocation76_spill] sm:$0xff]  ;;  %v5676_v32 = vld [vmem:[%s5877_s13 + $0x110] sm:$0xff] }
 0x143   : > { %v1148_v42 = vpop.f32.mrf.mxu1 }
 0x144   : > { %8271 = vst [vmem:[#allocation59_spill] sm:$0xff] %v7186_v53  ;;  %v7191_v25 = vadd.f32 %v5120_v40, %v1154_v35  ;;  %v1149_v23 = vadd.f32 %v1148_v42, %v6863_v7  ;;  %v5123_v52 = vpop.f32.mrf.mxu0  ;;  %5418 = vmatmul.mubr.msk.f32.gmra.mxu0 %vm481_vm2, %v5675_v44  ;;  %v8276_v35 = vld [vmem:[#allocation77_spill] sm:$0xff] }
 0x145   : > { %v5049_v30 = vpop.f32.mrf.mxu1  ;;  %5344 = vmatmul.mubr.msk.f32.gmra.mxu1 %vm481_vm2, %v8274_v22  ;;  %5420 = vmatprep.mubr.msk.f32.mxu0 %vm481_vm2, %v5676_v32  ;;  %v8278_v22 = vld [vmem:[#allocation78_spill] sm:$0xff] }
 0x146   : > { %8273 = vst [vmem:[#allocation60_spill] sm:$0xff] %v7191_v25  ;;  %v7200_v18 = vadd.f32 %v1636_v56, %v1149_v23  ;;  %v1163_v40 = vadd.f32 %v5049_v30, %v6869_v5  ;;  %v1646_v17 = vpop.f32.mrf.mxu0  ;;  %5346 = vmatprep.mubr.msk.f32.mxu1 %vm481_vm2, %v8276_v35  ;;  %v5677_v25 = vld [vmem:[%s5877_s13 + $0x118] sm:$0xff]  ;;  %v5678_v56 = vld [vmem:[%s5877_s13 + $0x120] sm:$0xff]  ;;  %v8279_v23 = vld [vmem:[#allocation79_spill] sm:$0xff] }
 0x147   : > { %v1158_v7 = vpop.f32.mrf.mxu1  ;;  %v5680_v17 = vld [vmem:[%s5877_s13 + $0x130] sm:$0xff] }
 0x148   : > { %8275 = vst [vmem:[#allocation61_spill] sm:$0xff] %v7200_v18  ;;  %v7205_v42 = vadd.f32 %v5123_v52, %v1163_v40  ;;  %v5126_v44 = vpop.f32.mrf.mxu0  ;;  %5421 = vmatmul.mubr.msk.f32.gmra.mxu0 %vm481_vm2, %v5677_v25  ;;  %v5679_v40 = vld [vmem:[%s5877_s13 + $0x128] sm:$0xff]  ;;  %v5681_v18 = vld [vmem:[%s5877_s13 + $0x138] sm:$0xff] }
 0x149   : > { %v5052_v53 = vpop.f32.mrf.mxu1  ;;  %5347 = vmatmul.mubr.msk.f32.gmra.mxu1 %vm481_vm2, %v8278_v22  ;;  %5423 = vmatprep.mubr.msk.f32.mxu0 %vm481_vm2, %v5678_v56 }
 0x14a   : > { %8277 = vst [vmem:[#allocation62_spill] sm:$0xff] %v7205_v42  ;;  %v1655_v5 = vpop.f32.mrf.mxu0  ;;  %5349 = vmatprep.mubr.msk.f32.mxu1 %vm481_vm2, %v8279_v23  ;;  %v8280_v53 = vld [vmem:[#allocation80_spill] sm:$0xff]  ;;  %v8282_v42 = vld [vmem:[#allocation81_spill] sm:$0xff] }
 0x14b   : > { %v1167_v30 = vpop.f32.mrf.mxu1 }
 0x14c   : > { %v1168_v52 = vadd.f32 %v1167_v30, %v6887_v8  ;;  %v5129_v32 = vpop.f32.mrf.mxu0  ;;  %5424 = vmatmul.mubr.msk.f32.gmra.mxu0 %vm481_vm2, %v5679_v40 }
 0x14d   : > { %v5055_v25 = vpop.f32.mrf.mxu1  ;;  %5350 = vmatmul.mubr.msk.f32.gmra.mxu1 %vm481_vm2, %v8280_v53  ;;  %5426 = vmatprep.mubr.msk.f32.mxu0 %vm481_vm2, %v5680_v17 }
 0x14e   : > { %v7222_v7 = vadd.f32 %v1655_v5, %v1168_v52  ;;  %v1182_v44 = vadd.f32 %v5055_v25, %v6893_v27  ;;  %v1664_v56 = vpop.f32.mrf.mxu0  ;;  %5352 = vmatprep.mubr.msk.f32.mxu1 %vm481_vm2, %v8282_v42  ;;  %v8284_v5 = vld [vmem:[#allocation82_spill] sm:$0xff]  ;;  %v5682_v27 = vld [vmem:[%s5877_s13 + $0x140] sm:$0xff] }
 0x14f   : > { %v1176_v8 = vpop.f32.mrf.mxu1 }
 0x150   : > { %8281 = vst [vmem:[#allocation63_spill] sm:$0xff] %v7222_v7  ;;  %v7227_v30 = vadd.f32 %v5129_v32, %v1182_v44  ;;  %v1177_v40 = vadd.f32 %v1176_v8, %v6903_v50  ;;  %v5132_v23 = vpop.f32.mrf.mxu0  ;;  %5427 = vmatmul.mubr.msk.f32.gmra.mxu0 %vm481_vm2, %v5681_v18  ;;  %v8285_v44 = vld [vmem:[#allocation83_spill] sm:$0xff] }
 0x151   : > { %v5058_v17 = vpop.f32.mrf.mxu1  ;;  %5353 = vmatmul.mubr.msk.f32.gmra.mxu1 %vm481_vm2, %v8284_v5  ;;  %5429 = vmatprep.mubr.msk.f32.mxu0 %vm481_vm2, %v5682_v27  ;;  %v8287_v5 = vld [vmem:[#allocation84_spill] sm:$0xff] }
 0x152   : > { %8283 = vst [vmem:[#allocation64_spill] sm:$0xff] %v7227_v30  ;;  %v7236_v52 = vadd.f32 %v1664_v56, %v1177_v40  ;;  %v1191_v32 = vadd.f32 %v5058_v17, %v6909_v57  ;;  %v1674_v25 = vpop.f32.mrf.mxu0  ;;  %5355 = vmatprep.mubr.msk.f32.mxu1 %vm481_vm2, %v8285_v44  ;;  %v5683_v30 = vld [vmem:[%s5877_s13 + $0x148] sm:$0xff]  ;;  %v5684_v56 = vld [vmem:[%s5877_s13 + $0x150] sm:$0xff]  ;;  %v8288_v40 = vld [vmem:[#allocation85_spill] sm:$0xff] }
 0x153   : > { %v1186_v50 = vpop.f32.mrf.mxu1  ;;  %v5686_v25 = vld [vmem:[%s5877_s13 + $0x160] sm:$0xff] }
 0x154   : > { %v7241_v8 = vadd.f32 %v5132_v23, %v1191_v32  ;;  %v5135_v18 = vpop.f32.mrf.mxu0  ;;  %5430 = vmatmul.mubr.msk.f32.gmra.mxu0 %vm481_vm2, %v5683_v30  ;;  %v5685_v32 = vld [vmem:[%s5877_s13 + $0x158] sm:$0xff] }
 0x155   : > { %v5061_v7 = vpop.f32.mrf.mxu1  ;;  %5356 = vmatmul.mubr.msk.f32.gmra.mxu1 %vm481_vm2, %v8287_v5  ;;  %5432 = vmatprep.mubr.msk.f32.mxu0 %vm481_vm2, %v5684_v56 }
 0x156   : > { %8286 = vst [vmem:[#allocation65_spill] sm:$0xff] %v7241_v8  ;;  %v1683_v57 = vpop.f32.mrf.mxu0  ;;  %5358 = vmatprep.mubr.msk.f32.mxu1 %vm481_vm2, %v8288_v40  ;;  %v8289_v7 = vld [vmem:[#allocation86_spill] sm:$0xff] }
 0x157   : > { %v1195_v17 = vpop.f32.mrf.mxu1  ;;  %v5687_v40 = vld [vmem:[%s5877_s13 + $0x168] sm:$0xff] }
 0x158   : > { %v1196_v23 = vadd.f32 %v1195_v17, %v6927_v48  ;;  %v5138_v27 = vpop.f32.mrf.mxu0  ;;  %5433 = vmatmul.mubr.msk.f32.gmra.mxu0 %vm481_vm2, %v5685_v32 }
 0x159   : > { %v5064_v30 = vpop.f32.mrf.mxu1  ;;  %5359 = vmatmul.mubr.msk.f32.gmra.mxu1 %vm481_vm2, %v8289_v7  ;;  %5435 = vmatprep.mubr.msk.f32.mxu0 %vm481_vm2, %v5686_v25 }
 0x15a   : > { %v7258_v50 = vadd.f32 %v1683_v57, %v1196_v23  ;;  %v1210_v18 = vadd.f32 %v5064_v30, %v6933_v45  ;;  %v1692_v56 = vpop.f32.mrf.mxu0  ;;  %5361 = vmatprep.mubr.msk.f32.mxu1 %vm481_vm2, %v6674_v6  ;;  %v8291_v57 = vld [vmem:[#allocation87_spill] sm:$0xff] }
 0x15b   : > { %v1204_v48 = vpop.f32.mrf.mxu1  ;;  %v5688_v45 = vld [vmem:[%s5877_s13 + $0x170] sm:$0xff] }
 0x15c   : > { %v7263_v17 = vadd.f32 %v5138_v27, %v1210_v18  ;;  %v1205_v32 = vadd.f32 %v1204_v48, %v6943_v55  ;;  %v5141_v8 = vpop.f32.mrf.mxu0  ;;  %5436 = vmatmul.mubr.msk.f32.gmra.mxu0 %vm481_vm2, %v5687_v40  ;;  %v5689_v48 = vld [vmem:[%s5877_s13 + $0x178] sm:$0xff]  ;;  %s248_s13 = sand.u32 1, %s5751_s16  }
 0x15d   : > { %v5067_v25 = vpop.f32.mrf.mxu1  ;;  %5362 = vmatmul.mubr.msk.f32.gmra.mxu1 %vm481_vm2, %v8291_v57  ;;  %5438 = vmatprep.mubr.msk.f32.mxu0 %vm481_vm2, %v5688_v45  ;;  %v5690_v45 = vld [vmem:[%s6265_s5] sm:$0xff]  ;;  %s4030_s24 = sshll.u32 %s248_s13, 8  ;;  %s7886_s8 = scalar_lea.sflag [#allocation3], %s248_s13 }
 0x15e   : > { %8290 = vst [vmem:[#allocation66_spill] sm:$0xff] %v7263_v17  ;;  %v7272_v23 = vadd.f32 %v1692_v56, %v1205_v32  ;;  %v1219_v27 = vadd.f32 %v5067_v25, %v6949_v21  ;;  %v1702_v30 = vpop.f32.mrf.mxu0  ;;  %5364 = vmatprep.mubr.msk.f32.mxu1 %vm481_vm2, %v6690_v43  ;;  %v2454_v21 = vrot.slane %v6958_v26, 2  ;;  %v2456_v32 = vrot.slane %v6961_v34, 2  ;;  %s7750_s26 = scalar_lea.vmem [#allocation2], %s4030_s24 }
 0x15f   : > { %v1214_v55 = vpop.f32.mrf.mxu1  ;;  %v8293_v30 = vld [vmem:[#allocation36_spill] sm:$0xff]  ;;  %s3922_s30 = sshll.u32 %s7750_s26, 4  ;;  %s7880_s30 = int_to_ptr.vmem [resolvable:$true] %s3922_s30 }
 0x160   : > { %v7277_v18 = vadd.f32 %v5141_v8, %v1219_v27  ;;  %v5144_v40 = vpop.f32.mrf.mxu0  ;;  %5439 = vmatmul.mubr.msk.f32.gmra.mxu0 %vm481_vm2, %v5689_v48  ;;  %s5691_s18 = scalar_lea.vmem %s7880_s30, 4096  ;;  %p5698_p1 = scmp.lt.s32.totalorder %s7880_s30, %s5696_s10 }
 0x161   : > { %v5070_v17 = vpop.f32.mrf.mxu1  ;;  %5365 = vmatmul.mubr.msk.f32.gmra.mxu1 %vm481_vm2, %v6696_v54  ;;  %5441 = vmatprep.mubr.msk.f32.mxu0 %vm481_vm2, %v5690_v45  ;;  %v7307_v45 = vld [vmem:[%s6265_s5 + $0x20] sm:$0xff]  ;;  %p5692_p12 = scmp.ne.s32.totalorder %s7880_s30, %s5691_s18  ;;  %p5699_p2 = scmp.lt.s32.totalorder %s5697_s11, %s5691_s18 }
 0x162   : > { %8292 = vst [vmem:[#allocation68_spill] sm:$0xff] %v7277_v18  ;;  %v1711_v56 = vpop.f32.mrf.mxu0  ;;  %5367 = vmatprep.mubr.msk.f32.mxu1 %vm481_vm2, %v6706_v33 }
 0x163   : > { %v1223_v8 = vpop.f32.mrf.mxu1  ;;  %p5693_p13 = pnand %p5692_p12, %p5837_p4  ;;  %p5700_p3 = por %p5699_p2, %p5698_p1 }
 0x164   : > { %v1224_v25 = vadd.f32 %v1223_v8, %v6978_v60  ;;  %v5147_v27 = vpop.f32.mrf.mxu0  ;;  %5442 = vmatmul.mubr.msk.f32.gmra.mxu0 %vm481_vm2, %v6958_v26  ;;  %v8295_v60 = vrot.slane %v6290_v1, 2  ;;  %v8102_v8 = vrot.slane %v6976_v28, 2 }
 0x165   : > { %v5073_v17 = vpop.f32.mrf.mxu1  ;;  %5368 = vmatmul.mubr.msk.f32.gmra.mxu1 %vm481_vm2, %v8293_v30  ;;  %5444 = vmatprep.mubr.msk.f32.mxu0 %vm481_vm2, %v6961_v34  ;;  %v7311_v34 = vsel %vm1261_vm3, %v2454_v21, %v2456_v32  ;;  %p5694_p0 = pneg %p5693_p13 }
 0x166   : > { %v7296_v55 = vadd.f32 %v1711_v56, %v1224_v25  ;;  %v1238_v40 = vadd.f32 %v5073_v17, %v6984_v38  ;;  %v1720_v48 = vpop.f32.mrf.mxu0  ;;  %5370 = vmatprep.mubr.msk.f32.mxu1 %vm481_vm2, %v6723_v10  ;;  %v7304_v26 = vsel %vm1261_vm3, %v8295_v60, %v2454_v21  ;;  %v7323_v17 = vld [vmem:[%s6265_s5 + $0x28] sm:$0xff]  ;;  %v8298_v21 = vld [vmem:[#allocation88_spill] sm:$0xff] }
 0x167   : > { %v1232_v18 = vpop.f32.mrf.mxu1  ;;  %p5701_p5 = pnand %p5700_p3, %p5694_p0 }
 0x168   : > { %8294 = vst [vmem:[#allocation69_spill] sm:$0xff] %v7296_v55  ;;  %v7313_v56 = vadd.f32 %v5147_v27, %v1238_v40  ;;  %v1233_v38 = vadd.f32 %v1232_v18, %v7003_v51  ;;  %v5150_v25 = vpop.f32.mrf.mxu0  ;;  %5445 = vmatmul.mubr.msk.f32.gmra.mxu0 %vm481_vm2, %v6976_v28  ;;  %v7333_v51 = vsel %vm1261_vm3, %v2456_v32, %v8102_v8  ;;  %v8306_v28 = vld [vmem:[#allocation20_spill] sm:$0xff] }
 0x169   : > { %v5076_v1 = vpop.f32.mrf.mxu1  ;;  %5371 = vmatmul.mubr.msk.f32.gmra.mxu1 %vm481_vm2, %v7304_v26  ;;  %5447 = vmatprep.mubr.msk.f32.mxu0 %vm481_vm2, %v7307_v45 }
 0x16a   : > { %8296 = vst [vmem:[#allocation71_spill] sm:$0xff] %v7313_v56  ;;  %v7325_v60 = vadd.f32 %v1720_v48, %v1233_v38  ;;  %v1247_v27 = vadd.f32 %v5076_v1, %v8298_v21  ;;  %v1730_v40 = vpop.f32.mrf.mxu0  ;;  %5373 = vmatprep.mubr.msk.f32.mxu1 %vm481_vm2, %v7311_v34  ;;  %v8300_v38 = vld [vmem:[#allocation52_spill] sm:$0xff]  ;;  %v8301_v21 = vld [vmem:[#allocation14_spill] sm:$0xff] }
 0x16b   : > { %v1242_v18 = vpop.f32.mrf.mxu1  ;;  %v8302_v40 = vld [vmem:[#allocation90_spill] sm:$0xff] }
 0x16c   : > { %8297 = vst [vmem:[#allocation72_spill] sm:$0xff] %v7325_v60  ;;  %v7335_v56 = vadd.f32 %v5150_v25, %v1247_v27  ;;  %v5153_v55 = vpop.f32.mrf.mxu0  ;;  %5448 = vmatmul.mubr.msk.f32.gmra.mxu0 %vm481_vm2, %v7323_v17  ;;  %v8303_v27 = vld [vmem:[#allocation16_spill] sm:$0xff] }
 0x16d   : > { %v5079_v48 = vpop.f32.mrf.mxu1  ;;  %5374 = vmatmul.mubr.msk.f32.gmra.mxu1 %vm481_vm2, %v7333_v51  ;;  %5526 = vmatprep.mubr.msk.f32.mxu0 %vm481_vm2, %v8300_v38  ;;  %v8304_v38 = vld [vmem:[#allocation51_spill] sm:$0xff] }
 0x16e   : > { %8299 = vst [vmem:[#allocation74_spill] sm:$0xff] %v7335_v56  ;;  %v1739_v1 = vpop.f32.mrf.mxu0  ;;  %5452 = vmatprep.mubr.msk.f32.mxu1 %vm481_vm2, %v8301_v21  ;;  %v8305_v21 = vld [vmem:[#allocation18_spill] sm:$0xff] }
 0x16f   : > { %v1251_v32 = vpop.f32.mrf.mxu1 }
 0x170   : > { %v1252_v18 = vadd.f32 %v1251_v32, %v8302_v40  ;;  %v5232_v25 = vpop.f32.mrf.mxu0  ;;  %5527 = vmatmul.mubr.msk.f32.vlgmr.msra.gmra.mxu0 %vm481_vm2, %v8243_v20 }
 0x171   : > { %v5158_v55 = vpop.f32.mrf.mxu1  ;;  %5453 = vmatmul.mubr.msk.f32.vlgmr.msra.gmra.mxu1 %vm481_vm2, %v8303_v27  ;;  %5529 = vmatprep.mubr.msk.f32.mxu0 %vm481_vm2, %v8245_v41 }
 0x172   : > { %v7352_v48 = vadd.f32 %v1739_v1, %v1252_v18  ;;  %v2082_v8 = vadd.f32 %v5158_v55, %v8304_v38  ;;  %v2197_v56 = vpop.f32.mrf.mxu0  ;;  %5455 = vmatprep.mubr.msk.f32.mxu1 %vm481_vm2, %v8305_v21  ;;  %v8307_v1 = vld [vmem:[#allocation53_spill] sm:$0xff] }
 0x173   : > { %v1858_v32 = vpop.f32.mrf.mxu1 }
 0x174   : > { %v7357_v40 = vadd.f32 %v5232_v25, %v2082_v8  ;;  %v2081_v20 = vadd.f32 %v1858_v32, %v7056_v47  ;;  %v5235_v60 = vpop.f32.mrf.mxu0  ;;  %5530 = vmatmul.mubr.msk.f32.gmra.mxu0 %vm481_vm2, %v8246_v16  ;;  %v8308_v8 = vld [vmem:[#allocation22_spill] sm:$0xff] }
 0x175   : > { %v5161_v27 = vpop.f32.mrf.mxu1  ;;  %5456 = vmatmul.mubr.msk.f32.gmra.mxu1 %vm481_vm2, %v8306_v28  ;;  %5532 = vmatprep.mubr.msk.f32.mxu0 %vm481_vm2, %v8247_v3  ;;  %v8309_v28 = vld [vmem:[#allocation24_spill] sm:$0xff] }
 0x176   : > { %v7366_v41 = vadd.f32 %v2197_v56, %v2081_v20  ;;  %v2083_v18 = vadd.f32 %v5161_v27, %v8307_v1  ;;  %v2207_v55 = vpop.f32.mrf.mxu0  ;;  %5458 = vmatprep.mubr.msk.f32.mxu1 %vm481_vm2, %v8308_v8  ;;  %v8310_v56 = vld [vmem:[#allocation26_spill] sm:$0xff] }
 0x177   : > { %v1868_v47 = vpop.f32.mrf.mxu1 }
 0x178   : > { %v7371_v25 = vadd.f32 %v5235_v60, %v2083_v18  ;;  %v5238_v38 = vpop.f32.mrf.mxu0  ;;  %5533 = vmatmul.mubr.msk.f32.gmra.mxu0 %vm481_vm2, %v8248_v37  ;;  %v8311_v37 = vld [vmem:[#allocation28_spill] sm:$0xff]  ;;  %v8312_v18 = vld [vmem:[#allocation30_spill] sm:$0xff] }
 0x179   : > { %v5164_v16 = vpop.f32.mrf.mxu1  ;;  %5459 = vmatmul.mubr.msk.f32.gmra.mxu1 %vm481_vm2, %v8309_v28  ;;  %5535 = vmatprep.mubr.msk.f32.mxu0 %vm481_vm2, %v8249_v11  ;;  %v8313_v38 = vld [vmem:[#allocation32_spill] sm:$0xff]  ;;  %v8314_v28 = vld [vmem:[#allocation34_spill] sm:$0xff] }
 0x17a   : > { %v2216_v3 = vpop.f32.mrf.mxu0  ;;  %5461 = vmatprep.mubr.msk.f32.mxu1 %vm481_vm2, %v8310_v56 }
 0x17b   : > { %v1877_v21 = vpop.f32.mrf.mxu1 }
 0x17c   : > { %v2084_v32 = vadd.f32 %v1877_v21, %v7078_v9  ;;  %v5241_v60 = vpop.f32.mrf.mxu0  ;;  %5536 = vmatmul.mubr.msk.f32.gmra.mxu0 %vm481_vm2, %v8250_v61  ;;  %v8315_v21 = vld [vmem:[#allocation37_spill] sm:$0xff] }
 0x17d   : > { %v5167_v20 = vpop.f32.mrf.mxu1  ;;  %5462 = vmatmul.mubr.msk.f32.gmra.mxu1 %vm481_vm2, %v8311_v37  ;;  %5538 = vmatprep.mubr.msk.f32.mxu0 %vm481_vm2, %v8251_v12 }
 0x17e   : > { %v7388_v27 = vadd.f32 %v2216_v3, %v2084_v32  ;;  %v2086_v11 = vadd.f32 %v5167_v20, %v7083_v49  ;;  %v2225_v1 = vpop.f32.mrf.mxu0  ;;  %5464 = vmatprep.mubr.msk.f32.mxu1 %vm481_vm2, %v8312_v18  ;;  %v8318_v18 = vld [vmem:[#allocation43_spill] sm:$0xff] }
 0x17f   : > { %v1886_v9 = vpop.f32.mrf.mxu1 }
 0x180   : > { %v7393_v55 = vadd.f32 %v5241_v60, %v2086_v11  ;;  %v2085_v61 = vadd.f32 %v1886_v9, %v7092_v39  ;;  %v5244_v8 = vpop.f32.mrf.mxu0  ;;  %5539 = vmatmul.mubr.msk.f32.gmra.mxu0 %vm481_vm2, %v8252_v0 }
 0x181   : > { %v5170_v47 = vpop.f32.mrf.mxu1  ;;  %5465 = vmatmul.mubr.msk.f32.gmra.mxu1 %vm481_vm2, %v8313_v38  ;;  %5541 = vmatprep.mubr.msk.f32.mxu0 %vm481_vm2, %v8253_v14  ;;  %v8320_v38 = vld [vmem:[#allocation45_spill] sm:$0xff] }
 0x182   : > { %v7402_v49 = vadd.f32 %v2225_v1, %v2085_v61  ;;  %v2087_v12 = vadd.f32 %v5170_v47, %v7097_v59  ;;  %v2235_v16 = vpop.f32.mrf.mxu0  ;;  %5467 = vmatprep.mubr.msk.f32.mxu1 %vm481_vm2, %v8314_v28  ;;  %v8316_v59 = vld [vmem:[#allocation39_spill] sm:$0xff] }
 0x183   : > { %v1896_v39 = vpop.f32.mrf.mxu1  ;;  %v8322_v28 = vld [vmem:[#allocation47_spill] sm:$0xff] }
 0x184   : > { %v7407_v3 = vadd.f32 %v5244_v8, %v2087_v12  ;;  %v5247_v56 = vpop.f32.mrf.mxu0  ;;  %5542 = vmatmul.mubr.msk.f32.gmra.mxu0 %vm481_vm2, %v8254_v2  ;;  %v8317_v2 = vld [vmem:[#allocation41_spill] sm:$0xff]  ;;  %v8319_v8 = vld [vmem:[#allocation67_spill] sm:$0xff] }
 0x185   : > { %v5173_v0 = vpop.f32.mrf.mxu1  ;;  %5468 = vmatmul.mubr.msk.f32.gmra.mxu1 %vm481_vm2, %v8315_v21  ;;  %5544 = vmatprep.mubr.msk.f32.mxu0 %vm481_vm2, %v8255_v46  ;;  %v8323_v21 = vld [vmem:[#allocation49_spill] sm:$0xff] }
 0x186   : > { %v2244_v14 = vpop.f32.mrf.mxu0  ;;  %5470 = vmatprep.mubr.msk.f32.mxu1 %vm481_vm2, %v8316_v59  ;;  %v8325_v59 = vld [vmem:[#allocation5_spill] sm:$0xff] }
 0x187   : > { %v1905_v32 = vpop.f32.mrf.mxu1 }
 0x188   : > { %v2088_v60 = vadd.f32 %v1905_v32, %v7114_v4  ;;  %v5250_v20 = vpop.f32.mrf.mxu0  ;;  %5545 = vmatmul.mubr.msk.f32.gmra.mxu0 %vm481_vm2, %v8256_v29 }
 0x189   : > { %v5176_v37 = vpop.f32.mrf.mxu1  ;;  %5471 = vmatmul.mubr.msk.f32.gmra.mxu1 %vm481_vm2, %v8317_v2  ;;  %5547 = vmatprep.mubr.msk.f32.mxu0 %vm481_vm2, %v8258_v31  ;;  %v8321_v31 = vld [vmem:[#allocation54_spill] sm:$0xff] }
 0x18a   : > { %v7424_v11 = vadd.f32 %v2244_v14, %v2088_v60  ;;  %v2090_v46 = vadd.f32 %v5176_v37, %v7119_v15  ;;  %v2253_v1 = vpop.f32.mrf.mxu0  ;;  %5473 = vmatprep.mubr.msk.f32.mxu1 %vm481_vm2, %v8318_v18  ;;  %v8326_v60 = vld [vmem:[#allocation55_spill] sm:$0xff] }
 0x18b   : > { %v1914_v4 = vpop.f32.mrf.mxu1 }
 0x18c   : > { %v7429_v9 = vadd.f32 %v5250_v20, %v2090_v46  ;;  %v2089_v29 = vadd.f32 %v1914_v4, %v7128_v19  ;;  %v5253_v61 = vpop.f32.mrf.mxu0  ;;  %5548 = vmatmul.mubr.msk.f32.gmra.mxu0 %vm481_vm2, %v8319_v8 }
 0x18d   : > { %v5179_v47 = vpop.f32.mrf.mxu1  ;;  %5474 = vmatmul.mubr.msk.f32.gmra.mxu1 %vm481_vm2, %v8320_v38  ;;  %5550 = vmatprep.mubr.msk.f32.mxu0 %vm481_vm2, %v8260_v13  ;;  %v8324_v13 = vld [vmem:[#allocation70_spill] sm:$0xff] }
 0x18e   : > { %v7438_v15 = vadd.f32 %v2253_v1, %v2089_v29  ;;  %v2091_v12 = vadd.f32 %v5179_v47, %v8321_v31  ;;  %v2263_v16 = vpop.f32.mrf.mxu0  ;;  %5476 = vmatprep.mubr.msk.f32.mxu1 %vm481_vm2, %v8322_v28  ;;  %v8328_v1 = vld [vmem:[#allocation56_spill] sm:$0xff]  ;;  %v8329_v29 = vld [vmem:[#allocation7_spill] sm:$0xff]  ;;  %v8330_v47 = vld [vmem:[#allocation57_spill] sm:$0xff] }
 0x18f   : > { %v1924_v19 = vpop.f32.mrf.mxu1  ;;  %v8331_v31 = vld [vmem:[#allocation73_spill] sm:$0xff]  ;;  %v8333_v28 = vld [vmem:[#allocation58_spill] sm:$0xff] }
 0x190   : > { %v7443_v39 = vadd.f32 %v5253_v61, %v2091_v12  ;;  %v5256_v56 = vpop.f32.mrf.mxu0  ;;  %5551 = vmatmul.mubr.msk.f32.gmra.mxu0 %vm481_vm2, %v8262_v63  ;;  %v8327_v63 = vld [vmem:[#allocation6_spill] sm:$0xff]  ;;  %v8332_v16 = vld [vmem:[#allocation9_spill] sm:$0xff] }
 0x191   : > { %v5182_v0 = vpop.f32.mrf.mxu1  ;;  %5477 = vmatmul.mubr.msk.f32.gmra.mxu1 %vm481_vm2, %v8323_v21  ;;  %5553 = vmatprep.mubr.msk.f32.mxu0 %vm481_vm2, %v8324_v13 }
 0x192   : > { %v2272_v14 = vpop.f32.mrf.mxu0  ;;  %5479 = vmatprep.mubr.msk.f32.mxu1 %vm481_vm2, %v8325_v59  ;;  %v8334_v0 = vld [vmem:[#allocation11_spill] sm:$0xff] }
 0x193   : > { %v1933_v32 = vpop.f32.mrf.mxu1 }
 0x194   : > { %v2092_v20 = vadd.f32 %v1933_v32, %v8326_v60  ;;  %v5259_v37 = vpop.f32.mrf.mxu0  ;;  %5554 = vmatmul.mubr.msk.f32.gmra.mxu0 %vm481_vm2, %v8266_v24  ;;  %v8335_v32 = vld [vmem:[#allocation13_spill] sm:$0xff] }
 0x195   : > { %v5185_v2 = vpop.f32.mrf.mxu1  ;;  %5480 = vmatmul.mubr.msk.f32.gmra.mxu1 %vm481_vm2, %v8327_v63  ;;  %5556 = vmatprep.mubr.msk.f32.mxu0 %vm481_vm2, %v8268_v36 }
 0x196   : > { %v7460_v46 = vadd.f32 %v2272_v14, %v2092_v20  ;;  %v2094_v18 = vadd.f32 %v5185_v2, %v8328_v1  ;;  %v2281_v4 = vpop.f32.mrf.mxu0  ;;  %5482 = vmatprep.mubr.msk.f32.mxu1 %vm481_vm2, %v8329_v29  ;;  %v8337_v20 = vld [vmem:[#allocation15_spill] sm:$0xff]  ;;  %v8340_v29 = vld [vmem:[#allocation60_spill] sm:$0xff] }
 0x197   : > { %v1942_v61 = vpop.f32.mrf.mxu1  ;;  %v8338_v2 = vld [vmem:[#allocation59_spill] sm:$0xff] }
 0x198   : > { %v7465_v8 = vadd.f32 %v5259_v37, %v2094_v18  ;;  %v2093_v24 = vadd.f32 %v1942_v61, %v8330_v47  ;;  %v5262_v38 = vpop.f32.mrf.mxu0  ;;  %5557 = vmatmul.mubr.msk.f32.gmra.mxu0 %vm481_vm2, %v8331_v31 }
 0x199   : > { %v5188_v12 = vpop.f32.mrf.mxu1  ;;  %5483 = vmatmul.mubr.msk.f32.gmra.mxu1 %vm481_vm2, %v8332_v16  ;;  %5559 = vmatprep.mubr.msk.f32.mxu0 %vm481_vm2, %v8270_v62  ;;  %v8336_v62 = vld [vmem:[#allocation76_spill] sm:$0xff] }
 0x19a   : > { %v7474_v36 = vadd.f32 %v2281_v4, %v2093_v24  ;;  %v2095_v19 = vadd.f32 %v5188_v12, %v8333_v28  ;;  %v2291_v56 = vpop.f32.mrf.mxu0  ;;  %5485 = vmatprep.mubr.msk.f32.mxu1 %vm481_vm2, %v8334_v0  ;;  %v8341_v24 = vld [vmem:[#allocation19_spill] sm:$0xff]  ;;  %v8342_v12 = vld [vmem:[#allocation61_spill] sm:$0xff]  ;;  %v8345_v0 = vld [vmem:[#allocation62_spill] sm:$0xff] }
 0x19b   : > { %v1952_v21 = vpop.f32.mrf.mxu1  ;;  %v8343_v28 = vld [vmem:[#allocation79_spill] sm:$0xff]  ;;  %v8344_v56 = vld [vmem:[#allocation21_spill] sm:$0xff] }
 0x19c   : > { %v7479_v13 = vadd.f32 %v5262_v38, %v2095_v19  ;;  %v5265_v14 = vpop.f32.mrf.mxu0  ;;  %5560 = vmatmul.mubr.msk.f32.gmra.mxu0 %vm481_vm2, %v8272_v58  ;;  %v8339_v58 = vld [vmem:[#allocation17_spill] sm:$0xff] }
 0x19d   : > { %v5191_v59 = vpop.f32.mrf.mxu1  ;;  %5486 = vmatmul.mubr.msk.f32.gmra.mxu1 %vm481_vm2, %v8335_v32  ;;  %5562 = vmatprep.mubr.msk.f32.mxu0 %vm481_vm2, %v8336_v62 }
 0x19e   : > { %v2300_v60 = vpop.f32.mrf.mxu0  ;;  %5488 = vmatprep.mubr.msk.f32.mxu1 %vm481_vm2, %v8337_v20  ;;  %v8346_v59 = vld [vmem:[#allocation23_spill] sm:$0xff] }
 0x19f   : > { %v1961_v37 = vpop.f32.mrf.mxu1 }
 0x1a0   : > { %v2096_v63 = vadd.f32 %v1961_v37, %v8338_v2  ;;  %v5268_v1 = vpop.f32.mrf.mxu0  ;;  %5563 = vmatmul.mubr.msk.f32.gmra.mxu0 %vm481_vm2, %v8276_v35  ;;  %v8347_v37 = vld [vmem:[#allocation25_spill] sm:$0xff] }
 0x1a1   : > { %v5194_v18 = vpop.f32.mrf.mxu1  ;;  %5489 = vmatmul.mubr.msk.f32.gmra.mxu1 %vm481_vm2, %v8339_v58  ;;  %5565 = vmatprep.mubr.msk.f32.mxu0 %vm481_vm2, %v8278_v22 }
 0x1a2   : > { %v7496_v4 = vadd.f32 %v2300_v60, %v2096_v63  ;;  %v2098_v61 = vadd.f32 %v5194_v18, %v8340_v29  ;;  %v2309_v47 = vpop.f32.mrf.mxu0  ;;  %5491 = vmatprep.mubr.msk.f32.mxu1 %vm481_vm2, %v8341_v24  ;;  %v8349_v63 = vld [vmem:[#allocation27_spill] sm:$0xff]  ;;  %v8352_v24 = vld [vmem:[#allocation64_spill] sm:$0xff] }
 0x1a3   : > { %v1970_v38 = vpop.f32.mrf.mxu1  ;;  %v8350_v18 = vld [vmem:[#allocation63_spill] sm:$0xff] }
 0x1a4   : > { %v7501_v31 = vadd.f32 %v5268_v1, %v2098_v61  ;;  %v2097_v35 = vadd.f32 %v1970_v38, %v8342_v12  ;;  %v5271_v16 = vpop.f32.mrf.mxu0  ;;  %5566 = vmatmul.mubr.msk.f32.gmra.mxu0 %vm481_vm2, %v8343_v28 }
 0x1a5   : > { %v5197_v19 = vpop.f32.mrf.mxu1  ;;  %5492 = vmatmul.mubr.msk.f32.gmra.mxu1 %vm481_vm2, %v8344_v56  ;;  %5568 = vmatprep.mubr.msk.f32.mxu0 %vm481_vm2, %v8280_v53  ;;  %v8348_v53 = vld [vmem:[#allocation82_spill] sm:$0xff]  ;;  %v8354_v56 = vld [vmem:[#allocation85_spill] sm:$0xff] }
 0x1a6   : > { %v7510_v22 = vadd.f32 %v2309_v47, %v2097_v35  ;;  %v2099_v21 = vadd.f32 %v5197_v19, %v8345_v0  ;;  %v2319_v14 = vpop.f32.mrf.mxu0  ;;  %5494 = vmatprep.mubr.msk.f32.mxu1 %vm481_vm2, %v8346_v59  ;;  %v8353_v35 = vld [vmem:[#allocation31_spill] sm:$0xff] }
 0x1a7   : > { %v1980_v32 = vpop.f32.mrf.mxu1  ;;  %v8356_v14 = vld [vmem:[#allocation65_spill] sm:$0xff] }
 0x1a8   : > { %v7515_v62 = vadd.f32 %v5271_v16, %v2099_v21  ;;  %v5274_v60 = vpop.f32.mrf.mxu0  ;;  %5569 = vmatmul.mubr.msk.f32.gmra.mxu0 %vm481_vm2, %v8282_v42  ;;  %v8351_v42 = vld [vmem:[#allocation29_spill] sm:$0xff] }
 0x1a9   : > { %v5200_v20 = vpop.f32.mrf.mxu1  ;;  %5495 = vmatmul.mubr.msk.f32.gmra.mxu1 %vm481_vm2, %v8347_v37  ;;  %5571 = vmatprep.mubr.msk.f32.mxu0 %vm481_vm2, %v8348_v53  ;;  %v8355_v21 = vld [vmem:[#allocation33_spill] sm:$0xff]  ;;  %v8357_v60 = vld [vmem:[#allocation35_spill] sm:$0xff] }
 0x1aa   : > { %v2328_v2 = vpop.f32.mrf.mxu0  ;;  %5497 = vmatprep.mubr.msk.f32.mxu1 %vm481_vm2, %v8349_v63  ;;  %v8359_v63 = vld [vmem:[#allocation40_spill] sm:$0xff] }
 0x1ab   : > { %v1989_v1 = vpop.f32.mrf.mxu1 }
 0x1ac   : > { %v2100_v58 = vadd.f32 %v1989_v1, %v8350_v18  ;;  %v5277_v29 = vpop.f32.mrf.mxu0  ;;  %5572 = vmatmul.mubr.msk.f32.gmra.mxu0 %vm481_vm2, %v8285_v44 }
 0x1ad   : > { %v5203_v61 = vpop.f32.mrf.mxu1  ;;  %5498 = vmatmul.mubr.msk.f32.gmra.mxu1 %vm481_vm2, %v8351_v42  ;;  %5574 = vmatprep.mubr.msk.f32.mxu0 %vm481_vm2, %v8287_v5 }
 0x1ae   : > { %v7532_v47 = vadd.f32 %v2328_v2, %v2100_v58  ;;  %v2102_v38 = vadd.f32 %v5203_v61, %v8352_v24  ;;  %v2337_v12 = vpop.f32.mrf.mxu0  ;;  %5500 = vmatprep.mubr.msk.f32.mxu1 %vm481_vm2, %v8353_v35  ;;  %v8358_v2 = vld [vmem:[#allocation38_spill] sm:$0xff] }
 0x1af   : > { %v1998_v16 = vpop.f32.mrf.mxu1 }
 0x1b0   : > { %v7537_v28 = vadd.f32 %v5277_v29, %v2102_v38  ;;  %v2101_v44 = vadd.f32 %v1998_v16, %v7236_v52  ;;  %v5280_v19 = vpop.f32.mrf.mxu0  ;;  %5575 = vmatmul.mubr.msk.f32.gmra.mxu0 %vm481_vm2, %v8354_v56  ;;  %v8362_v38 = vld [vmem:[#allocation44_spill] sm:$0xff] }
 0x1b1   : > { %v5206_v0 = vpop.f32.mrf.mxu1  ;;  %5501 = vmatmul.mubr.msk.f32.gmra.mxu1 %vm481_vm2, %v8355_v21  ;;  %5577 = vmatprep.mubr.msk.f32.mxu0 %vm481_vm2, %v8289_v7  ;;  %v8365_v21 = vld [vmem:[#allocation48_spill] sm:$0xff] }
 0x1b2   : > { %v7546_v5 = vadd.f32 %v2337_v12, %v2101_v44  ;;  %v2103_v59 = vadd.f32 %v5206_v0, %v8356_v14  ;;  %v2347_v32 = vpop.f32.mrf.mxu0  ;;  %5503 = vmatprep.mubr.msk.f32.mxu1 %vm481_vm2, %v8357_v60  ;;  %v8363_v44 = vld [vmem:[#allocation46_spill] sm:$0xff] }
 0x1b3   : > { %v2008_v52 = vpop.f32.mrf.mxu1  ;;  %v8366_v60 = vld [vmem:[#allocation50_spill] sm:$0xff] }
 0x1b4   : > { %v7551_v20 = vadd.f32 %v5280_v19, %v2103_v59  ;;  %v5283_v37 = vpop.f32.mrf.mxu0  ;;  %5578 = vmatmul.mubr.msk.f32.gmra.mxu0 %vm481_vm2, %v6674_v6  ;;  %v8360_v6 = vld [vmem:[#allocation42_spill] sm:$0xff]  ;;  %v8364_v19 = vld [vmem:[#allocation68_spill] sm:$0xff]  ;;  %v3127_v59 = vrot.slane %v7307_v45, 1 }
 0x1b5   : > { %v5209_v53 = vpop.f32.mrf.mxu1  ;;  %5504 = vmatmul.mubr.msk.f32.gmra.mxu1 %vm481_vm2, %v8358_v2  ;;  %5580 = vmatprep.mubr.msk.f32.mxu0 %vm481_vm2, %v8291_v57  ;;  %v8361_v57 = vld [vmem:[#allocation66_spill] sm:$0xff]  ;;  %v330_v2 = vld [vmem:[%s6265_s5 + $0x30] sm:$0xff] }
 0x1b6   : > { %v2356_v7 = vpop.f32.mrf.mxu0  ;;  %5506 = vmatprep.mubr.msk.f32.mxu1 %vm481_vm2, %v8359_v63  ;;  %v8367_v37 = vld [vmem:[#allocation10_spill] sm:$0xff]  ;;  %v3467_v53 = vrot.slane %v7323_v17, 2  ;;  %v8368_v63 = vld [vmem:[#allocation69_spill] sm:$0xff] }
 0x1b7   : > { %v2017_v1 = vpop.f32.mrf.mxu1 }
 0x1b8   : > { %v2104_v18 = vadd.f32 %v2017_v1, %v7258_v50  ;;  %v5286_v58 = vpop.f32.mrf.mxu0  ;;  %5581 = vmatmul.mubr.msk.f32.gmra.mxu0 %vm481_vm2, %v6690_v43 }
 0x1b9   : > { %v5212_v29 = vpop.f32.mrf.mxu1  ;;  %5507 = vmatmul.mubr.msk.f32.gmra.mxu1 %vm481_vm2, %v8360_v6  ;;  %5583 = vmatprep.mubr.msk.f32.mxu0 %vm481_vm2, %v6696_v54 }
 0x1ba   : > { %v7568_v61 = vadd.f32 %v2356_v7, %v2104_v18  ;;  %v2106_v42 = vadd.f32 %v5212_v29, %v8361_v57  ;;  %v2365_v24 = vpop.f32.mrf.mxu0  ;;  %5509 = vmatprep.mubr.msk.f32.mxu1 %vm481_vm2, %v8362_v38  ;;  %v8373_v38 = vld [vmem:[#allocation71_spill] sm:$0xff] }
 0x1bb   : > { %v2026_v50 = vpop.f32.mrf.mxu1 }
 0x1bc   : > { %v7573_v12 = vadd.f32 %v5286_v58, %v2106_v42  ;;  %v2105_v43 = vadd.f32 %v2026_v50, %v7272_v23  ;;  %v5289_v35 = vpop.f32.mrf.mxu0  ;;  %5584 = vmatmul.mubr.msk.f32.gmra.mxu0 %vm481_vm2, %v6706_v33  ;;  %v8369_v58 = vld [vmem:[#allocation12_spill] sm:$0xff]  ;;  %v3469_v42 = vrot.slane %v330_v2, 2 }
 0x1bd   : > { %v5215_v16 = vpop.f32.mrf.mxu1  ;;  %5510 = vmatmul.mubr.msk.f32.gmra.mxu1 %vm481_vm2, %v8363_v44  ;;  %5586 = vmatprep.mubr.msk.f32.mxu0 %vm481_vm2, %v8293_v30  ;;  %v3465_v30 = vrot.slane %v7307_v45, 2 }
 0x1be   : > { %v7582_v54 = vadd.f32 %v2365_v24, %v2105_v43  ;;  %v2107_v56 = vadd.f32 %v5215_v16, %v8364_v19  ;;  %v2375_v0 = vpop.f32.mrf.mxu0  ;;  %5512 = vmatprep.mubr.msk.f32.mxu1 %vm481_vm2, %v8365_v21  ;;  %v8374_v43 = vld [vmem:[#allocation89_spill] sm:$0xff] }
 0x1bf   : > { %v2036_v23 = vpop.f32.mrf.mxu1 }
 0x1c0   : > { %v7587_v14 = vadd.f32 %v5289_v35, %v2107_v56  ;;  %v5292_v33 = vpop.f32.mrf.mxu0  ;;  %5587 = vmatmul.mubr.msk.f32.gmra.mxu0 %vm481_vm2, %v6723_v10  ;;  %v3129_v10 = vrot.slane %v7323_v17, 1  ;;  %v3468_v35 = vsel %vm1261_vm3, %v3465_v30, %v3467_v53  ;;  %v8375_v56 = vld [vmem:[#allocation72_spill] sm:$0xff] }
 0x1c1   : > { %v5218_v32 = vpop.f32.mrf.mxu1  ;;  %5513 = vmatmul.mubr.msk.f32.gmra.mxu1 %vm481_vm2, %v8366_v60  ;;  %5589 = vmatprep.mubr.msk.f32.mxu0 %vm481_vm2, %v7304_v26  ;;  %v8370_v26 = vld [vmem:[#allocation8_spill] sm:$0xff]  ;;  %v3470_v33 = vsel %vm1261_vm3, %v3467_v53, %v3469_v42 }
 0x1c2   : > { %v2384_v52 = vpop.f32.mrf.mxu0  ;;  %5515 = vmatprep.mubr.msk.f32.mxu1 %vm481_vm2, %v8367_v37  ;;  %v8371_v29 = vrot.slane %v8370_v26, 1  ;;  %v8372_v57 = vrot.slane %v8370_v26, 2  ;;  %v3130_v44 = vsel %vm383_vm1, %v3127_v59, %v3129_v10 }
 0x1c3   : > { %v2045_v7 = vpop.f32.mrf.mxu1 }
 0x1c4   : > { %v2108_v1 = vadd.f32 %v2045_v7, %v8368_v63  ;;  %v5295_v45 = vpop.f32.mrf.mxu0  ;;  %5590 = vmatmul.mubr.msk.f32.gmra.mxu0 %vm481_vm2, %v7311_v34  ;;  %v3128_v6 = vsel %vm383_vm1, %v8371_v29, %v3127_v59  ;;  %v3466_v17 = vsel %vm1261_vm3, %v8372_v57, %v3465_v30  ;;  %v8376_v30 = vld [vmem:[#allocation74_spill] sm:$0xff] }
 0x1c5   : > { %v5221_v18 = vpop.f32.mrf.mxu1  ;;  %5516 = vmatmul.mubr.msk.f32.gmra.mxu1 %vm481_vm2, %v8369_v58  ;;  %5592 = vmatprep.mubr.msk.f32.mxu0 %vm481_vm2, %v7333_v51  ;;  %v3131_v51 = vrot.slane %v330_v2, 1 }
 0x1c6   : > { %v7615_v24 = vadd.f32 %v2384_v52, %v2108_v1  ;;  %v2110_v34 = vadd.f32 %v5221_v18, %v8373_v38  ;;  %v2393_v50 = vpop.f32.mrf.mxu0  ;;  %5518 = vmatprep.mubr.msk.f32.mxu1 %vm481_vm2, %v8374_v43 }
 0x1c7   : > { %v2054_v16 = vpop.f32.mrf.mxu1  ;;  %v3132_v59 = vsel %vm383_vm1, %v3129_v10, %v3131_v51 }
 0x1c8   : > { %v7622_v19 = vadd.f32 %v5295_v45, %v2110_v34  ;;  %v2109_v0 = vadd.f32 %v2054_v16, %v8375_v56  ;;  %v5298_v21 = vpop.f32.mrf.mxu0  ;;  %5593 = vmatmul.mubr.msk.f32.gmra.mxu0 %vm481_vm2, %v3466_v17 }
 0x1c9   : > { %v5224_v23 = vpop.f32.mrf.mxu1  ;;  %5519 = vmatmul.mubr.msk.f32.gmra.mxu1 %vm481_vm2, %v3128_v6  ;;  %5595 = vmatprep.mubr.msk.f32.mxu0 %vm481_vm2, %v3468_v35 }
 0x1ca   : > { %v7629_v32 = vadd.f32 %v2393_v50, %v2109_v0  ;;  %v2111_v60 = vadd.f32 %v5224_v23, %v8376_v30  ;;  %v2403_v52 = vpop.f32.mrf.mxu0  ;;  %5521 = vmatprep.mubr.msk.f32.mxu1 %vm481_vm2, %v3130_v44 }
 0x1cb   : > { %v2064_v37 = vpop.f32.mrf.mxu1 }
 0x1cc   : > { %v7634_v2 = vadd.f32 %v5298_v21, %v2111_v60  ;;  %v5301_v7 = vpop.f32.mrf.mxu0  ;;  %5596 = vmatmul.mubr.msk.f32.gmra.mxu0 %vm481_vm2, %v3470_v33 }
 0x1cd   : > { %v5227_v63 = vpop.f32.mrf.mxu1  ;;  %5522 = vmatmul.mubr.msk.f32.gmra.mxu1 %vm481_vm2, %v3132_v59 }
 0x1ce   : > { %v2412_v1 = vpop.f32.mrf.mxu0 }
 0x1cf   : > { %v2073_v53 = vpop.f32.mrf.mxu1 }
 0x1d0   : > { %v2112_v45 = vadd.f32 %v2073_v53, %v7352_v48  ;;  %v5380_v18 = vpop.f32.mrf.mxu0 }
 0x1d1   : > { %v5306_v58 = vpop.f32.mrf.mxu1 }
 0x1d2   : > { %v7639_v26 = vadd.f32 %v2412_v1, %v2112_v45  ;;  %v2759_v29 = vadd.f32 %v5306_v58, %v7357_v40  ;;  %v2869_v10 = vpop.f32.mrf.mxu0 }
 0x1d3   : > { %v2535_v6 = vpop.f32.mrf.mxu1 }
 0x1d4   : > { %v7642_v57 = vadd.f32 %v5380_v18, %v2759_v29  ;;  %v2758_v17 = vadd.f32 %v2535_v6, %v7366_v41  ;;  %v5383_v42 = vpop.f32.mrf.mxu0 }
 0x1d5   : > { %v5309_v38 = vpop.f32.mrf.mxu1 }
 0x1d6   : > { %v7645_v34 = vadd.f32 %v2869_v10, %v2758_v17  ;;  %v2760_v50 = vadd.f32 %v5309_v38, %v7371_v25  ;;  %v2879_v43 = vpop.f32.mrf.mxu0 }
 0x1d7   : > { %v2545_v48 = vpop.f32.mrf.mxu1 }
 0x1d8   : > { %v7648_v35 = vadd.f32 %v5383_v42, %v2760_v50  ;;  %v5386_v51 = vpop.f32.mrf.mxu0 }
 0x1d9   : > { %v5312_v16 = vpop.f32.mrf.mxu1 }
 0x1da   : > { %v2888_v44 = vpop.f32.mrf.mxu0 }
 0x1db   : > { %v2554_v40 = vpop.f32.mrf.mxu1 }
 0x1dc   : > { %v2761_v56 = vadd.f32 %v2554_v40, %v7388_v27  ;;  %v5389_v0 = vpop.f32.mrf.mxu0 }
 0x1dd   : > { %v5315_v21 = vpop.f32.mrf.mxu1 }
 0x1de   : > { %v7651_v23 = vadd.f32 %v2888_v44, %v2761_v56  ;;  %v2763_v41 = vadd.f32 %v5315_v21, %v7393_v55  ;;  %v2897_v33 = vpop.f32.mrf.mxu0 }
 0x1df   : > { %v2563_v30 = vpop.f32.mrf.mxu1 }
 0x1e0   : > { %v7654_v60 = vadd.f32 %v5389_v0, %v2763_v41  ;;  %v2762_v25 = vadd.f32 %v2563_v30, %v7402_v49  ;;  %v5392_v52 = vpop.f32.mrf.mxu0 }
 0x1e1   : > { %v5318_v59 = vpop.f32.mrf.mxu1 }
 0x1e2   : > { %v7657_v37 = vadd.f32 %v2897_v33, %v2762_v25  ;;  %v2764_v7 = vadd.f32 %v5318_v59, %v7407_v3  ;;  %v2907_v63 = vpop.f32.mrf.mxu0 }
 0x1e3   : > { %v2573_v27 = vpop.f32.mrf.mxu1 }
 0x1e4   : > { %v7660_v1 = vadd.f32 %v5392_v52, %v2764_v7  ;;  %v5395_v53 = vpop.f32.mrf.mxu0 }
 0x1e5   : > { %v5321_v45 = vpop.f32.mrf.mxu1 }
 0x1e6   : > { %v2916_v18 = vpop.f32.mrf.mxu0 }
 0x1e7   : > { %v2582_v55 = vpop.f32.mrf.mxu1 }
 0x1e8   : > { %v2765_v58 = vadd.f32 %v2582_v55, %v7424_v11  ;;  %v5398_v29 = vpop.f32.mrf.mxu0 }
 0x1e9   : > { %v5324_v10 = vpop.f32.mrf.mxu1 }
 0x1ea   : > { %v7663_v6 = vadd.f32 %v2916_v18, %v2765_v58  ;;  %v2767_v49 = vadd.f32 %v5324_v10, %v7429_v9  ;;  %v2925_v17 = vpop.f32.mrf.mxu0 }
 0x1eb   : > { %v2591_v42 = vpop.f32.mrf.mxu1 }
 0x1ec   : > { %v7666_v38 = vadd.f32 %v5398_v29, %v2767_v49  ;;  %v2766_v3 = vadd.f32 %v2591_v42, %v7438_v15  ;;  %v5401_v50 = vpop.f32.mrf.mxu0 }
 0x1ed   : > { %v5327_v43 = vpop.f32.mrf.mxu1 }
 0x1ee   : > { %v7669_v48 = vadd.f32 %v2925_v17, %v2766_v3  ;;  %v2768_v51 = vadd.f32 %v5327_v43, %v7443_v39  ;;  %v2935_v16 = vpop.f32.mrf.mxu0 }
 0x1ef   : > { %v2601_v11 = vpop.f32.mrf.mxu1 }
 0x1f0   : > { %v7672_v44 = vadd.f32 %v5401_v50, %v2768_v51  ;;  %v5404_v40 = vpop.f32.mrf.mxu0 }
 0x1f1   : > { %v5330_v56 = vpop.f32.mrf.mxu1 }
 0x1f2   : > { %v2944_v0 = vpop.f32.mrf.mxu0 }
 0x1f3   : > { %v2610_v9 = vpop.f32.mrf.mxu1 }
 0x1f4   : > { %v2769_v21 = vadd.f32 %v2610_v9, %v7460_v46  ;;  %v5407_v41 = vpop.f32.mrf.mxu0 }
 0x1f5   : > { %v5333_v33 = vpop.f32.mrf.mxu1 }
 0x1f6   : > { %v7675_v30 = vadd.f32 %v2944_v0, %v2769_v21  ;;  %v2771_v15 = vadd.f32 %v5333_v33, %v7465_v8  ;;  %v2953_v25 = vpop.f32.mrf.mxu0 }
 0x1f7   : > { %v2619_v52 = vpop.f32.mrf.mxu1 }
 0x1f8   : > { %v7678_v59 = vadd.f32 %v5407_v41, %v2771_v15  ;;  %v2770_v39 = vadd.f32 %v2619_v52, %v7474_v36  ;;  %v5410_v7 = vpop.f32.mrf.mxu0 }
 0x1f9   : > { %v5336_v63 = vpop.f32.mrf.mxu1 }
 0x1fa   : > { %v7681_v27 = vadd.f32 %v2953_v25, %v2770_v39  ;;  %v2772_v53 = vadd.f32 %v5336_v63, %v7479_v13  ;;  %v2963_v45 = vpop.f32.mrf.mxu0 }
 0x1fb   : > { %v2629_v46 = vpop.f32.mrf.mxu1 }
 0x1fc   : > { %v7684_v18 = vadd.f32 %v5410_v7, %v2772_v53  ;;  %v5413_v55 = vpop.f32.mrf.mxu0 }
 0x1fd   : > { %v5339_v58 = vpop.f32.mrf.mxu1 }
 0x1fe   : > { %v2972_v29 = vpop.f32.mrf.mxu0 }
 0x1ff   : > { %v2638_v8 = vpop.f32.mrf.mxu1 }
 0x200   : > { %v2773_v10 = vadd.f32 %v2638_v8, %v7496_v4  ;;  %v5416_v49 = vpop.f32.mrf.mxu0 }
 0x201   : > { %v5342_v17 = vpop.f32.mrf.mxu1 }
 0x202   : > { %v7687_v42 = vadd.f32 %v2972_v29, %v2773_v10  ;;  %v2775_v36 = vadd.f32 %v5342_v17, %v7501_v31  ;;  %v2981_v3 = vpop.f32.mrf.mxu0 }
 0x203   : > { %v2647_v50 = vpop.f32.mrf.mxu1 }
 0x204   : > { %v7690_v43 = vadd.f32 %v5416_v49, %v2775_v36  ;;  %v2774_v13 = vadd.f32 %v2647_v50, %v7510_v22  ;;  %v5419_v51 = vpop.f32.mrf.mxu0 }
 0x205   : > { %v5345_v16 = vpop.f32.mrf.mxu1 }
 0x206   : > { %v7693_v11 = vadd.f32 %v2981_v3, %v2774_v13  ;;  %v2776_v40 = vadd.f32 %v5345_v16, %v7515_v62  ;;  %v2991_v56 = vpop.f32.mrf.mxu0 }
 0x207   : > { %v2657_v4 = vpop.f32.mrf.mxu1 }
 0x208   : > { %v7696_v0 = vadd.f32 %v5419_v51, %v2776_v40  ;;  %v5422_v9 = vpop.f32.mrf.mxu0 }
 0x209   : > { %v5348_v21 = vpop.f32.mrf.mxu1 }
 0x20a   : > { %v3000_v41 = vpop.f32.mrf.mxu0 }
 0x20b   : > { %v2666_v31 = vpop.f32.mrf.mxu1 }
 0x20c   : > { %v2777_v33 = vadd.f32 %v2666_v31, %v7532_v47  ;;  %v5425_v15 = vpop.f32.mrf.mxu0 }
 0x20d   : > { %v5351_v25 = vpop.f32.mrf.mxu1 }
 0x20e   : > { %v7699_v52 = vadd.f32 %v3000_v41, %v2777_v33  ;;  %v2779_v22 = vadd.f32 %v5351_v25, %v7537_v28  ;;  %v3009_v39 = vpop.f32.mrf.mxu0 }
 0x20f   : > { %v2675_v7 = vpop.f32.mrf.mxu1 }
 0x210   : > { %v7702_v63 = vadd.f32 %v5425_v15, %v2779_v22  ;;  %v2778_v62 = vadd.f32 %v2675_v7, %v7546_v5  ;;  %v5428_v53 = vpop.f32.mrf.mxu0 }
 0x211   : > { %v5354_v45 = vpop.f32.mrf.mxu1 }
 0x212   : > { %v7705_v46 = vadd.f32 %v3009_v39, %v2778_v62  ;;  %v2780_v55 = vadd.f32 %v5354_v45, %v7551_v20  ;;  %v3019_v58 = vpop.f32.mrf.mxu0 }
 0x213   : > { %v2685_v47 = vpop.f32.mrf.mxu1 }
 0x214   : > { %v7708_v29 = vadd.f32 %v5428_v53, %v2780_v55  ;;  %v5431_v8 = vpop.f32.mrf.mxu0 }
 0x215   : > { %v5357_v10 = vpop.f32.mrf.mxu1 }
 0x216   : > { %v3028_v49 = vpop.f32.mrf.mxu0 }
 0x217   : > { %v2694_v28 = vpop.f32.mrf.mxu1 }
 0x218   : > { %v2781_v17 = vadd.f32 %v2694_v28, %v7568_v61  ;;  %v5434_v36 = vpop.f32.mrf.mxu0 }
 0x219   : > { %v5360_v3 = vpop.f32.mrf.mxu1 }
 0x21a   : > { %v7711_v50 = vadd.f32 %v3028_v49, %v2781_v17  ;;  %v2783_v5 = vadd.f32 %v5360_v3, %v7573_v12  ;;  %v3037_v13 = vpop.f32.mrf.mxu0 }
 0x21b   : > { %v2703_v51 = vpop.f32.mrf.mxu1 }
 0x21c   : > { %v7714_v16 = vadd.f32 %v5434_v36, %v2783_v5  ;;  %v2782_v20 = vadd.f32 %v2703_v51, %v7582_v54  ;;  %v5437_v40 = vpop.f32.mrf.mxu0 }
 0x21d   : > { %v5363_v56 = vpop.f32.mrf.mxu1 }
 0x21e   : > { %v7717_v4 = vadd.f32 %v3037_v13, %v2782_v20  ;;  %v2784_v9 = vadd.f32 %v5363_v56, %v7587_v14  ;;  %v3047_v21 = vpop.f32.mrf.mxu0 }
 0x21f   : > { %v2713_v61 = vpop.f32.mrf.mxu1 }
 0x220   : > { %v7720_v41 = vadd.f32 %v5437_v40, %v2784_v9  ;;  %v5440_v31 = vpop.f32.mrf.mxu0 }
 0x221   : > { %v5366_v33 = vpop.f32.mrf.mxu1 }
 0x222   : > { %v3056_v15 = vpop.f32.mrf.mxu0 }
 0x223   : > { %v2722_v12 = vpop.f32.mrf.mxu1 }
 0x224   : > { %v2785_v25 = vadd.f32 %v2722_v12, %v7615_v24  ;;  %v5443_v22 = vpop.f32.mrf.mxu0 }
 0x225   : > { %v5369_v39 = vpop.f32.mrf.mxu1 }
 0x226   : > { %v7723_v7 = vadd.f32 %v3056_v15, %v2785_v25  ;;  %v2787_v54 = vadd.f32 %v5369_v39, %v7622_v19  ;;  %v3065_v62 = vpop.f32.mrf.mxu0 }
 0x227   : > { %v2731_v53 = vpop.f32.mrf.mxu1 }
 0x228   : > { %v7726_v45 = vadd.f32 %v5443_v22, %v2787_v54  ;;  %v2786_v14 = vadd.f32 %v2731_v53, %v7629_v32  ;;  %v5446_v55 = vpop.f32.mrf.mxu0 }
 0x229   : > { %v5372_v58 = vpop.f32.mrf.mxu1 }
 0x22a   : > { %v7729_v47 = vadd.f32 %v3065_v62, %v2786_v14  ;;  %v2788_v8 = vadd.f32 %v5372_v58, %v7634_v2  ;;  %v3075_v24 = vpop.f32.mrf.mxu0  ;;  %v7742_v2 = vld [vmem:[%s7934_s3] ss:$0 sm:$0xff] }
 0x22b   : > { %v2741_v10 = vpop.f32.mrf.mxu1 }
 0x22c   : > { %v7732_v49 = vadd.f32 %v5446_v55, %v2788_v8  ;;  %v5449_v28 = vpop.f32.mrf.mxu0 }
 0x22d   : > { %v5375_v19 = vpop.f32.mrf.mxu1 }
 0x22e   : > { %v3084_v17 = vpop.f32.mrf.mxu0 }
 0x22f   : > { %v2750_v36 = vpop.f32.mrf.mxu1 }
 0x230   : > { %v2789_v3 = vadd.f32 %v2750_v36, %v7639_v26  ;;  %v5528_v5 = vpop.f32.mrf.mxu0 }
 0x231   : > { %v5454_v13 = vpop.f32.mrf.mxu1 }
 0x232   : > { %v7736_v32 = vadd.f32 %v3084_v17, %v2789_v3  ;;  %v3432_v51 = vadd.f32 %v5454_v13, %v7642_v57  ;;  %v3546_v20 = vpop.f32.mrf.mxu0 }
 0x233   : > { %v3208_v40 = vpop.f32.mrf.mxu1 }
 0x234   : > { %v3770_v56 = vadd.f32 %v5528_v5, %v3432_v51  ;;  %v3431_v9 = vadd.f32 %v3208_v40, %v7645_v34  ;;  %v5531_v26 = vpop.f32.mrf.mxu0 }
 0x235   : > { %v5457_v21 = vpop.f32.mrf.mxu1 }
 0x236   : > { %v3809_v61 = vadd.f32 %v7742_v2, %v3770_v56  ;;  %v3769_v31 = vadd.f32 %v3546_v20, %v3431_v9  ;;  %v3433_v33 = vadd.f32 %v5457_v21, %v7648_v35  ;;  %v3556_v57 = vpop.f32.mrf.mxu0 }
 0x237   : > { %v3218_v15 = vpop.f32.mrf.mxu1 }
 0x238   : > { %v3841_v12 = vmax.f32 %v3809_v61, 0.0  ;;  %v3808_v25 = vadd.f32 %v7742_v2, %v3769_v31  ;;  %v3771_v22 = vadd.f32 %v5531_v26, %v3433_v33  ;;  %v5534_v39 = vpop.f32.mrf.mxu0 }
 0x239   : > { %v5460_v54 = vpop.f32.mrf.mxu1 }
 0x23a   : > { %3874 = vst.msk [vmem:[%s7750_s26 + $0x8] sm:$0xff] %vm3872_vm4, %v3841_v12  ;;  %v3840_v34 = vmax.f32 %v3808_v25, 0.0  ;;  %v3810_v62 = vadd.f32 %v7742_v2, %v3771_v22  ;;  %v3565_v35 = vpop.f32.mrf.mxu0 }
 0x23b   : > { %v3227_v53 = vpop.f32.mrf.mxu1 }
 0x23c   : > { %3873 = vst.msk [vmem:[%s7750_s26] sm:$0xff] %vm3872_vm4, %v3840_v34  ;;  %v3842_v14 = vmax.f32 %v3810_v62, 0.0  ;;  %v3434_v55 = vadd.f32 %v3227_v53, %v7651_v23  ;;  %v5537_v58 = vpop.f32.mrf.mxu0 }
 0x23d   : > { %v5463_v8 = vpop.f32.mrf.mxu1 }
 0x23e   : > { %3875 = vst.msk [vmem:[%s7750_s26 + $0x10] sm:$0xff] %vm3872_vm4, %v3842_v14  ;;  %v3772_v24 = vadd.f32 %v3565_v35, %v3434_v55  ;;  %v3436_v10 = vadd.f32 %v5463_v8, %v7654_v60  ;;  %v3574_v28 = vpop.f32.mrf.mxu0 }
 0x23f   : > { %v3236_v19 = vpop.f32.mrf.mxu1 }
 0x240   : > { %v3811_v17 = vadd.f32 %v7742_v2, %v3772_v24  ;;  %v3774_v36 = vadd.f32 %v5537_v58, %v3436_v10  ;;  %v3435_v3 = vadd.f32 %v3236_v19, %v7657_v37  ;;  %v5540_v5 = vpop.f32.mrf.mxu0 }
 0x241   : > { %v5466_v13 = vpop.f32.mrf.mxu1 }
 0x242   : > { %v3843_v51 = vmax.f32 %v3811_v17, 0.0  ;;  %v3813_v23 = vadd.f32 %v7742_v2, %v3774_v36  ;;  %v3773_v20 = vadd.f32 %v3574_v28, %v3435_v3  ;;  %v3437_v40 = vadd.f32 %v5466_v13, %v7660_v1  ;;  %v3584_v56 = vpop.f32.mrf.mxu0 }
 0x243   : > { %v3246_v9 = vpop.f32.mrf.mxu1 }
 0x244   : > { %3876 = vst.msk [vmem:[%s7750_s26 + $0x18] sm:$0xff] %vm3872_vm4, %v3843_v51  ;;  %v3845_v60 = vmax.f32 %v3813_v23, 0.0  ;;  %v3812_v26 = vadd.f32 %v7742_v2, %v3773_v20  ;;  %v3775_v21 = vadd.f32 %v5540_v5, %v3437_v40  ;;  %v5543_v61 = vpop.f32.mrf.mxu0 }
 0x245   : > { %v5469_v37 = vpop.f32.mrf.mxu1 }
 0x246   : > { %3878 = vst.msk [vmem:[%s7750_s26 + $0x28] sm:$0xff] %vm3872_vm4, %v3845_v60  ;;  %v3844_v31 = vmax.f32 %v3812_v26, 0.0  ;;  %v3814_v33 = vadd.f32 %v7742_v2, %v3775_v21  ;;  %v3593_v57 = vpop.f32.mrf.mxu0 }
 0x247   : > { %v3255_v15 = vpop.f32.mrf.mxu1 }
 0x248   : > { %3877 = vst.msk [vmem:[%s7750_s26 + $0x20] sm:$0xff] %vm3872_vm4, %v3844_v31  ;;  %v3846_v1 = vmax.f32 %v3814_v33, 0.0  ;;  %v3438_v12 = vadd.f32 %v3255_v15, %v7663_v6  ;;  %v5546_v25 = vpop.f32.mrf.mxu0 }
 0x249   : > { %v5472_v22 = vpop.f32.mrf.mxu1 }
 0x24a   : > { %3879 = vst.msk [vmem:[%s7750_s26 + $0x30] sm:$0xff] %vm3872_vm4, %v3846_v1  ;;  %v3776_v39 = vadd.f32 %v3593_v57, %v3438_v12  ;;  %v3440_v54 = vadd.f32 %v5472_v22, %v7666_v38  ;;  %v3602_v34 = vpop.f32.mrf.mxu0 }
 0x24b   : > { %v3264_v62 = vpop.f32.mrf.mxu1 }
 0x24c   : > { %v3815_v35 = vadd.f32 %v7742_v2, %v3776_v39  ;;  %v3778_v53 = vadd.f32 %v5546_v25, %v3440_v54  ;;  %v3439_v14 = vadd.f32 %v3264_v62, %v7669_v48  ;;  %v5549_v55 = vpop.f32.mrf.mxu0 }
 0x24d   : > { %v5475_v58 = vpop.f32.mrf.mxu1 }
 0x24e   : > { %v3847_v8 = vmax.f32 %v3815_v35, 0.0  ;;  %v3817_v6 = vadd.f32 %v7742_v2, %v3778_v53  ;;  %v3777_v24 = vadd.f32 %v3602_v34, %v3439_v14  ;;  %v3441_v10 = vadd.f32 %v5475_v58, %v7672_v44  ;;  %v3612_v28 = vpop.f32.mrf.mxu0 }
 0x24f   : > { %v3274_v19 = vpop.f32.mrf.mxu1 }
 0x250   : > { %3880 = vst.msk [vmem:[%s7750_s26 + $0x38] sm:$0xff] %vm3872_vm4, %v3847_v8  ;;  %v3849_v38 = vmax.f32 %v3817_v6, 0.0  ;;  %v3816_v17 = vadd.f32 %v7742_v2, %v3777_v24  ;;  %v3779_v36 = vadd.f32 %v5549_v55, %v3441_v10  ;;  %v5552_v3 = vpop.f32.mrf.mxu0 }
 0x251   : > { %v5478_v48 = vpop.f32.mrf.mxu1 }
 0x252   : > { %3882 = vst.msk [vmem:[%s7750_s26 + $0x48] sm:$0xff] %vm3872_vm4, %v3849_v38  ;;  %v3848_v5 = vmax.f32 %v3816_v17, 0.0  ;;  %v3818_v13 = vadd.f32 %v7742_v2, %v3779_v36  ;;  %v3621_v51 = vpop.f32.mrf.mxu0 }
 0x253   : > { %v3283_v23 = vpop.f32.mrf.mxu1 }
 0x254   : > { %3881 = vst.msk [vmem:[%s7750_s26 + $0x40] sm:$0xff] %vm3872_vm4, %v3848_v5  ;;  %v3850_v44 = vmax.f32 %v3818_v13, 0.0  ;;  %v3442_v20 = vadd.f32 %v3283_v23, %v7675_v30  ;;  %v5555_v40 = vpop.f32.mrf.mxu0 }
 0x255   : > { %v5481_v56 = vpop.f32.mrf.mxu1 }
 0x256   : > { %3883 = vst.msk [vmem:[%s7750_s26 + $0x50] sm:$0xff] %vm3872_vm4, %v3850_v44  ;;  %v3780_v9 = vadd.f32 %v3621_v51, %v3442_v20  ;;  %v3444_v60 = vadd.f32 %v5481_v56, %v7678_v59  ;;  %v3630_v26 = vpop.f32.mrf.mxu0 }
 0x257   : > { %v3292_v21 = vpop.f32.mrf.mxu1 }
 0x258   : > { %v3819_v61 = vadd.f32 %v7742_v2, %v3780_v9  ;;  %v3782_v37 = vadd.f32 %v5555_v40, %v3444_v60  ;;  %v3443_v31 = vadd.f32 %v3292_v21, %v7681_v27  ;;  %v5558_v33 = vpop.f32.mrf.mxu0 }
 0x259   : > { %v5484_v57 = vpop.f32.mrf.mxu1 }
 0x25a   : > { %v3851_v15 = vmax.f32 %v3819_v61, 0.0  ;;  %v3821_v30 = vadd.f32 %v7742_v2, %v3782_v37  ;;  %v3781_v1 = vadd.f32 %v3630_v26, %v3443_v31  ;;  %v3445_v12 = vadd.f32 %v5484_v57, %v7684_v18  ;;  %v3640_v25 = vpop.f32.mrf.mxu0 }
 0x25b   : > { %v3302_v22 = vpop.f32.mrf.mxu1 }
 0x25c   : > { %3884 = vst.msk [vmem:[%s7750_s26 + $0x58] sm:$0xff] %vm3872_vm4, %v3851_v15  ;;  %v3853_v59 = vmax.f32 %v3821_v30, 0.0  ;;  %v3820_v39 = vadd.f32 %v7742_v2, %v3781_v1  ;;  %v3783_v54 = vadd.f32 %v5558_v33, %v3445_v12  ;;  %v5561_v34 = vpop.f32.mrf.mxu0 }
 0x25d   : > { %v5487_v27 = vpop.f32.mrf.mxu1 }
 0x25e   : > { %3886 = vst.msk [vmem:[%s7750_s26 + $0x68] sm:$0xff] %vm3872_vm4, %v3853_v59  ;;  %v3852_v62 = vmax.f32 %v3820_v39, 0.0  ;;  %v3822_v35 = vadd.f32 %v7742_v2, %v3783_v54  ;;  %v3649_v53 = vpop.f32.mrf.mxu0 }
 0x25f   : > { %v3311_v14 = vpop.f32.mrf.mxu1 }
 0x260   : > { %3885 = vst.msk [vmem:[%s7750_s26 + $0x60] sm:$0xff] %vm3872_vm4, %v3852_v62  ;;  %v3854_v18 = vmax.f32 %v3822_v35, 0.0  ;;  %v3446_v55 = vadd.f32 %v3311_v14, %v7687_v42  ;;  %v5564_v58 = vpop.f32.mrf.mxu0 }
 0x261   : > { %v5490_v8 = vpop.f32.mrf.mxu1 }
 0x262   : > { %3887 = vst.msk [vmem:[%s7750_s26 + $0x70] sm:$0xff] %vm3872_vm4, %v3854_v18  ;;  %v3784_v6 = vadd.f32 %v3649_v53, %v3446_v55  ;;  %v3448_v24 = vadd.f32 %v5490_v8, %v7690_v43  ;;  %v3658_v10 = vpop.f32.mrf.mxu0 }
 0x263   : > { %v3320_v28 = vpop.f32.mrf.mxu1 }
 0x264   : > { %v3823_v19 = vadd.f32 %v7742_v2, %v3784_v6  ;;  %v3786_v38 = vadd.f32 %v5564_v58, %v3448_v24  ;;  %v3447_v17 = vadd.f32 %v3320_v28, %v7693_v11  ;;  %v5567_v36 = vpop.f32.mrf.mxu0 }
 0x265   : > { %v5493_v3 = vpop.f32.mrf.mxu1 }
 0x266   : > { %v3855_v48 = vmax.f32 %v3823_v19, 0.0  ;;  %v3825_v42 = vadd.f32 %v7742_v2, %v3786_v38  ;;  %v3785_v5 = vadd.f32 %v3658_v10, %v3447_v17  ;;  %v3449_v13 = vadd.f32 %v5493_v3, %v7696_v0  ;;  %v3668_v51 = vpop.f32.mrf.mxu0 }
 0x267   : > { %v3330_v23 = vpop.f32.mrf.mxu1 }
 0x268   : > { %3888 = vst.msk [vmem:[%s7750_s26 + $0x78] sm:$0xff] %vm3872_vm4, %v3855_v48  ;;  %v3857_v43 = vmax.f32 %v3825_v42, 0.0  ;;  %v3824_v44 = vadd.f32 %v7742_v2, %v3785_v5  ;;  %v3787_v20 = vadd.f32 %v5567_v36, %v3449_v13  ;;  %v5570_v40 = vpop.f32.mrf.mxu0 }
 0x269   : > { %v5496_v11 = vpop.f32.mrf.mxu1 }
 0x26a   : > { %3890 = vst.msk [vmem:[%s7750_s26 + $0x88] sm:$0xff] %vm3872_vm4, %v3857_v43  ;;  %v3856_v56 = vmax.f32 %v3824_v44, 0.0  ;;  %v3826_v9 = vadd.f32 %v7742_v2, %v3787_v20  ;;  %v3677_v60 = vpop.f32.mrf.mxu0 }
 0x26b   : > { %v3339_v26 = vpop.f32.mrf.mxu1 }
 0x26c   : > { %3889 = vst.msk [vmem:[%s7750_s26 + $0x80] sm:$0xff] %vm3872_vm4, %v3856_v56  ;;  %v3858_v0 = vmax.f32 %v3826_v9, 0.0  ;;  %v3450_v21 = vadd.f32 %v3339_v26, %v7699_v52  ;;  %v5573_v61 = vpop.f32.mrf.mxu0 }
 0x26d   : > { %v5499_v37 = vpop.f32.mrf.mxu1 }
 0x26e   : > { %3891 = vst.msk [vmem:[%s7750_s26 + $0x90] sm:$0xff] %vm3872_vm4, %v3858_v0  ;;  %v3788_v31 = vadd.f32 %v3677_v60, %v3450_v21  ;;  %v3452_v33 = vadd.f32 %v5499_v37, %v7702_v63  ;;  %v3686_v57 = vpop.f32.mrf.mxu0 }
 0x26f   : > { %v3348_v15 = vpop.f32.mrf.mxu1 }
 0x270   : > { %v3827_v30 = vadd.f32 %v7742_v2, %v3788_v31  ;;  %v3790_v1 = vadd.f32 %v5573_v61, %v3452_v33  ;;  %v3451_v12 = vadd.f32 %v3348_v15, %v7705_v46  ;;  %v5576_v25 = vpop.f32.mrf.mxu0 }
 0x271   : > { %v5502_v22 = vpop.f32.mrf.mxu1 }
 0x272   : > { %v3859_v59 = vmax.f32 %v3827_v30, 0.0  ;;  %v3829_v52 = vadd.f32 %v7742_v2, %v3790_v1  ;;  %v3789_v39 = vadd.f32 %v3686_v57, %v3451_v12  ;;  %v3453_v54 = vadd.f32 %v5502_v22, %v7708_v29  ;;  %v3696_v34 = vpop.f32.mrf.mxu0 }
 0x273   : > { %v3358_v27 = vpop.f32.mrf.mxu1 }
 0x274   : > { %3892 = vst.msk [vmem:[%s7750_s26 + $0x98] sm:$0xff] %vm3872_vm4, %v3859_v59  ;;  %v3861_v63 = vmax.f32 %v3829_v52, 0.0  ;;  %v3828_v62 = vadd.f32 %v7742_v2, %v3789_v39  ;;  %v3791_v35 = vadd.f32 %v5576_v25, %v3453_v54  ;;  %v5579_v53 = vpop.f32.mrf.mxu0 }
 0x275   : > { %v5505_v46 = vpop.f32.mrf.mxu1 }
 0x276   : > { %3894 = vst.msk [vmem:[%s7750_s26 + $0xa8] sm:$0xff] %vm3872_vm4, %v3861_v63  ;;  %v3860_v14 = vmax.f32 %v3828_v62, 0.0  ;;  %v3830_v18 = vadd.f32 %v7742_v2, %v3791_v35  ;;  %v3705_v55 = vpop.f32.mrf.mxu0 }
 0x277   : > { %v3367_v58 = vpop.f32.mrf.mxu1 }
 0x278   : > { %3893 = vst.msk [vmem:[%s7750_s26 + $0xa0] sm:$0xff] %vm3872_vm4, %v3860_v14  ;;  %v3862_v29 = vmax.f32 %v3830_v18, 0.0  ;;  %v3454_v8 = vadd.f32 %v3367_v58, %v7711_v50  ;;  %v5582_v6 = vpop.f32.mrf.mxu0 }
 0x279   : > { %v5508_v24 = vpop.f32.mrf.mxu1 }
 0x27a   : > { %3895 = vst.msk [vmem:[%s7750_s26 + $0xb0] sm:$0xff] %vm3872_vm4, %v3862_v29  ;;  %v3792_v10 = vadd.f32 %v3705_v55, %v3454_v8  ;;  %v3456_v28 = vadd.f32 %v5508_v24, %v7714_v16  ;;  %v3714_v19 = vpop.f32.mrf.mxu0 }
 0x27b   : > { %v3376_v38 = vpop.f32.mrf.mxu1 }
 0x27c   : > { %v3831_v17 = vadd.f32 %v7742_v2, %v3792_v10  ;;  %v3794_v36 = vadd.f32 %v5582_v6, %v3456_v28  ;;  %v3455_v3 = vadd.f32 %v3376_v38, %v7717_v4  ;;  %v5585_v48 = vpop.f32.mrf.mxu0 }
 0x27d   : > { %v5511_v42 = vpop.f32.mrf.mxu1 }
 0x27e   : > { %v3863_v5 = vmax.f32 %v3831_v17, 0.0  ;;  %v3833_v50 = vadd.f32 %v7742_v2, %v3794_v36  ;;  %v3793_v13 = vadd.f32 %v3714_v19, %v3455_v3  ;;  %v3457_v51 = vadd.f32 %v5511_v42, %v7720_v41  ;;  %v3724_v23 = vpop.f32.mrf.mxu0 }
 0x27f   : > { %v3386_v43 = vpop.f32.mrf.mxu1 }
 0x280   : > { %3896 = vst.msk [vmem:[%s7750_s26 + $0xb8] sm:$0xff] %vm3872_vm4, %v3863_v5  ;;  %v3865_v16 = vmax.f32 %v3833_v50, 0.0  ;;  %v3832_v44 = vadd.f32 %v7742_v2, %v3793_v13  ;;  %v3795_v20 = vadd.f32 %v5585_v48, %v3457_v51  ;;  %v5588_v40 = vpop.f32.mrf.mxu0 }
 0x281   : > { %v5514_v4 = vpop.f32.mrf.mxu1 }
 0x282   : > { %3898 = vst.msk [vmem:[%s7750_s26 + $0xc8] sm:$0xff] %vm3872_vm4, %v3865_v16  ;;  %v3864_v11 = vmax.f32 %v3832_v44, 0.0  ;;  %v3834_v56 = vadd.f32 %v7742_v2, %v3795_v20  ;;  %v3733_v9 = vpop.f32.mrf.mxu0 }
 0x283   : > { %v3395_v60 = vpop.f32.mrf.mxu1 }
 0x284   : > { %3897 = vst.msk [vmem:[%s7750_s26 + $0xc0] sm:$0xff] %vm3872_vm4, %v3864_v11  ;;  %v3866_v41 = vmax.f32 %v3834_v56, 0.0  ;;  %v3458_v26 = vadd.f32 %v3395_v60, %v7723_v7  ;;  %v5591_v0 = vpop.f32.mrf.mxu0 }
 0x285   : > { %v5517_v21 = vpop.f32.mrf.mxu1 }
 0x286   : > { %3899 = vst.msk [vmem:[%s7750_s26 + $0xd0] sm:$0xff] %vm3872_vm4, %v3866_v41  ;;  %v3796_v61 = vadd.f32 %v3733_v9, %v3458_v26  ;;  %v3460_v37 = vadd.f32 %v5517_v21, %v7726_v45  ;;  %v3742_v31 = vpop.f32.mrf.mxu0 }
 0x287   : > { %v3404_v33 = vpop.f32.mrf.mxu1 }
 0x288   : > { %v3835_v57 = vadd.f32 %v7742_v2, %v3796_v61  ;;  %v3798_v15 = vadd.f32 %v5591_v0, %v3460_v37  ;;  %v3459_v30 = vadd.f32 %v3404_v33, %v7729_v47  ;;  %v5594_v1 = vpop.f32.mrf.mxu0 }
 0x289   : > { %v5520_v12 = vpop.f32.mrf.mxu1 }
 0x28a   : > { %v3867_v25 = vmax.f32 %v3835_v57, 0.0  ;;  %v3837_v7 = vadd.f32 %v7742_v2, %v3798_v15  ;;  %v3797_v22 = vadd.f32 %v3742_v31, %v3459_v30  ;;  %v3461_v59 = vadd.f32 %v5520_v12, %v7732_v49  ;;  %v3752_v52 = vpop.f32.mrf.mxu0 }
 0x28b   : > { %v3414_v45 = vpop.f32.mrf.mxu1 }
 0x28c   : > { %3900 = vst.msk [vmem:[%s7750_s26 + $0xd8] sm:$0xff] %vm3872_vm4, %v3867_v25  ;;  %v3869_v39 = vmax.f32 %v3837_v7, 0.0  ;;  %v3836_v54 = vadd.f32 %v7742_v2, %v3797_v22  ;;  %v3799_v47 = vadd.f32 %v5594_v1, %v3461_v59  ;;  %v5597_v34 = vpop.f32.mrf.mxu0 }
 0x28d   : > { %v5523_v27 = vpop.f32.mrf.mxu1 }
 0x28e   : > { %3902 = vst.msk [vmem:[%s7750_s26 + $0xe8] sm:$0xff] %vm3872_vm4, %v3869_v39  ;;  %v3868_v63 = vmax.f32 %v3836_v54, 0.0  ;;  %v3838_v49 = vadd.f32 %v7742_v2, %v3799_v47  ;;  %v3761_v46 = vpop.f32.mrf.mxu0 }
 0x28f   : > { %v3423_v62 = vpop.f32.mrf.mxu1 }
 0x290   : > { %3901 = vst.msk [vmem:[%s7750_s26 + $0xe0] sm:$0xff] %vm3872_vm4, %v3868_v63  ;;  %v3870_v35 = vmax.f32 %v3838_v49, 0.0  ;;  %v3462_v53 = vadd.f32 %v3423_v62, %v7736_v32 }
 0x292   : > { %3903 = vst.msk [vmem:[%s7750_s26 + $0xf0] sm:$0xff] %vm3872_vm4, %v3870_v35  ;;  %v3800_v14 = vadd.f32 %v3761_v46, %v3462_v53 }
 0x294   : > { %v3839_v18 = vadd.f32 %v7742_v2, %v3800_v14 }
 0x296   : > { %v3871_v55 = vmax.f32 %v3839_v18, 0.0 }
 0x298   : > { %3904 = vst.msk [vmem:[%s7750_s26 + $0xf8] sm:$0xff] %vm3872_vm4, %v3871_v55 }
 0x299   : > { %5704 = shalt.err (!%p5701_p5)
}
 0x29a   : > { %s5705_s12 = scalar_lea.hbm %s7878_s7, 4096  ;;  %s5709_s21 = scalar_lea.hbm %s7935_s4, 8192 }
 0x29b   : > { %p5706_p6 = scmp.ne.s32.totalorder %s7878_s7, %s5705_s12  ;;  %p5710_p10 = scmp.lt.s32.totalorder %s7878_s7, %s7935_s4 }
 0x29c   : > { %p5711_p11 = scmp.lt.s32.totalorder %s5709_s21, %s5705_s12 }
 0x29d   : > { %p5707_p7 = pnand %p5706_p6, %p5837_p4 }
 0x29e   : > { %p5712_p12 = por %p5711_p11, %p5710_p10 }
 0x29f   : > { %p5708_p9 = pneg %p5707_p7 }
 0x2a1   : > { %p5713_p13 = pnand %p5712_p12, %p5708_p9 }
 0x2a3   : > { %5716 = shalt.err (!%p5713_p13)
}
 0x2a4   : > { %s5770_s26 = smov 128   ;;  %s5771_s29 = smov 8  }
 0x2a5   : > { %5602 = dma.vmem_to_hbm [thread:$0]  (%p5837_p4), %s7880_s30, 4096, %s7878_s7, %s7886_s8, %s5770_s26, %s5770_s26, %s5771_s29  }
 0x2a6 PF: > { %p5609_p0 = scmp.ge.s32.totalorder %s5767_s20, 2  ;;  %s3937_s5 = sand.u32 1, %s5747_s15  }
 0x2a7   : > { %s3938_s6 = scalar_lea.sflag [#allocation3], %s3937_s5 }
 0x2a8   : > { %p5605_p1 = pnand %p5609_p0, %p5844_p8 }
 0x2aa   : > { %p5606_p2 = pneg %p5605_p1 }
 0x2ac   : > { %5742 = dma.done.wait (%p5606_p2), %s3938_s6, 4096  }
 0x2ad   : > { %5744 = vsyncadd (%p5606_p2), %s3938_s6, 4294963200  ;;  %s17_s20 = sadd.s32 1, %s5767_s20   ;;  %s8377_s15 = smov %s5751_s16 }
 0x2ae   : > { %p14_p3 = scmp.ge.s32.totalorder %s17_s20, 4   ;;  %s8378_s16 = smov %s5755_s17 }
 0x2af   : > { %s8379_s17 = smov %s5850_s28  ;;  %s8380_s18 = smov %s5763_s19 }
 0x2b0   : > { %s8381_s19 = smov %s8383_s23  ;;  %16 = sbr.rel (!%p14_p3) target bundleno = 4 (0x4), region = 82 }
 0x2b5   :  { %3943 = vsyncpa [#allocation3], 1 }
 0x2b6   :  { %3945 = vsyncpa [#allocation3 + $0x1], 1 }

</bundles_post_ra>
